<compile_context>
chip_gen: v5e
topology: v5e:2x2
jax: 0.10.0
libtpu: 0.0.40
codegen_flags: <defaults>
</compile_context>

<pallas_src>
import numpy as np
import jax
import jax.numpy as jnp
from jax import lax
from jax.experimental import pallas as pl
from jax.experimental.pallas import tpu as pltpu

PAD = 8  # column offset of the interior inside the halo scratch (sublane-aligned)


def _im2col(xpad, H, W, col0):
    """xpad: (H+2, Wp, C) f32 padded slab -> (H*W, 9*C) patch matrix.

    col0 is the column of the left conv halo.  The (H, W, C) -> (H*W, C)
    reshape is layout-preserving because W is a multiple of 8 (sublane tile).
    """
    C = xpad.shape[-1]
    cols = []
    for ky in range(3):
        for kx in range(3):
            sl = xpad[ky:ky + H, col0 + kx:col0 + kx + W, :]   # (H, W, C)
            cols.append(sl.reshape(H * W, C))
    return jnp.concatenate(cols, axis=-1)                      # (H*W, 9*C)


def unblocks_kernel(x_ref, w1_ref, s1_ref, b1_ref, w2_ref, s2_ref, b2_ref,
                    o_ref, xpad_ref, mid_ref):
    """One grid step = one image; both conv+BN+ReLU stages fused.

    x_ref : (1, H, W, Cin)        bf16 NHWC input tile
    w1_ref: (9*Cin, Cout)         bf16 stage-1 im2col weights
    s1/b1 : (1, Cout)             f32 folded BN1 scale / shift
    w2_ref: (Cout, 9*Cout)        bf16 stage-2 im2col weights (pre-transposed)
    s2/b2 : (Cout, 1)             f32 folded BN2 scale / shift
    o_ref : (1, Cout, H*W)        f32 channel-major (lane-dense) output
    xpad_ref: (H+2, W+2*PAD, Cin) f32 halo scratch, interior at column PAD
    mid_ref : (H+2, W+2*PAD, Cout) f32 halo scratch for the intermediate
    """
    _, H, W, Cin = x_ref.shape
    Cout = o_ref.shape[1]
    HW = H * W

    # ---------------- stage 1: conv1 -> bn1 -> relu -----------------------
    xpad_ref[...] = jnp.zeros_like(xpad_ref)                 # zero halo
    xpad_ref[1:H + 1, PAD:PAD + W, :] = x_ref[0].astype(jnp.float32)
    p1 = _im2col(xpad_ref[...], H, W, PAD - 1).astype(jnp.bfloat16)
    y1 = lax.dot_general(p1, w1_ref[...], (((1,), (0,)), ((), ())),
                         preferred_element_type=jnp.float32)  # (HW, Cout) f32
    y1 = jnp.maximum(y1 * s1_ref[0] + b1_ref[0], 0.0)

    # -------- stage 2: conv2 -> bn2 -> relu (intermediate stays in VMEM) --
    mid_ref[...] = jnp.zeros_like(mid_ref)
    mid_ref[1:H + 1, PAD:PAD + W, :] = y1.reshape(H, W, Cout)
    p2 = _im2col(mid_ref[...], H, W, PAD - 1).astype(jnp.bfloat16)
    # Contract the last dims of both operands -> (Cout, HW): the result is
    # channel-major, so the store is lane-dense (HW lanes) and the wrapper
    # gets NCHW back with a free reshape instead of a transpose.
    y2 = lax.dot_general(w2_ref[...], p2, (((1,), (1,)), ((), ())),
                         preferred_element_type=jnp.float32)  # (Cout, HW) f32
    o_ref[0] = jnp.maximum(y2 * s2_ref[...] + b2_ref[...], 0.0)


@jax.jit
def unblocks_forward(x_nchw, params1, params2):
    """Full UNBlocks forward: relu(bn2(conv2(relu(bn1(conv1(x))))))."""
    B, Cin, H, W = x_nchw.shape
    w1_taps, scale1, shift1 = params1
    w2_taps, scale2, shift2 = params2
    Cout = w1_taps.shape[-1]
    assert W % 8 == 0, "kernel assumes W is a multiple of the sublane tile (8)"

    # Single input-side layout change (NHWC + bf16); no output-side transpose.
    x_nhwc = jnp.transpose(x_nchw, (0, 2, 3, 1)).astype(jnp.bfloat16)
    w1 = w1_taps.reshape(9 * Cin, Cout).astype(jnp.bfloat16)        # (9Cin, Co)
    w2 = w2_taps.reshape(9 * Cout, Cout).T.astype(jnp.bfloat16)     # (Co, 9Co)
    s1 = scale1.reshape(1, Cout)
    b1 = shift1.reshape(1, Cout)
    s2 = scale2.reshape(Cout, 1)
    b2 = shift2.reshape(Cout, 1)

    Wp = W + 2 * PAD
    out = pl.pallas_call(
        unblocks_kernel,
        out_shape=jax.ShapeDtypeStruct((B, Cout, H * W), jnp.float32),
        grid=(B,),
        in_specs=[
            pl.BlockSpec((1, H, W, Cin), lambda b: (b, 0, 0, 0)),   # x (bf16)
            pl.BlockSpec((9 * Cin, Cout), lambda b: (0, 0)),        # w1
            pl.BlockSpec((1, Cout), lambda b: (0, 0)),              # scale1
            pl.BlockSpec((1, Cout), lambda b: (0, 0)),              # shift1
            pl.BlockSpec((Cout, 9 * Cout), lambda b: (0, 0)),       # w2 (T)
            pl.BlockSpec((Cout, 1), lambda b: (0, 0)),              # scale2
            pl.BlockSpec((Cout, 1), lambda b: (0, 0)),              # shift2
        ],
        out_specs=pl.BlockSpec((1, Cout, H * W), lambda b: (b, 0, 0)),
        scratch_shapes=[
            pltpu.VMEM((H + 2, Wp, Cin), jnp.float32),   # padded input slab
            pltpu.VMEM((H + 2, Wp, Cout), jnp.float32),  # padded intermediate
        ],
        compiler_params=pltpu.CompilerParams(
            dimension_semantics=("parallel",),
            vmem_limit_bytes=32 * 1024 * 1024),
    )(x_nhwc, w1, s1, b1, w2, s2, b2)

    # (B, Cout, H*W) -> (B, Cout, H, W): bitcast-able reshape, not a transpose.
    return out.reshape(B, Cout, H, W)


def make_params(key, in_feats, out_feats):
    """Deterministic synthetic parameters for conv(no bias) + BN (eval mode)."""
    k1, k2, k3, k4, k5 = jax.random.split(key, 5)
    # Tap-major (kH*kW, Cin, Cout) conv weights (HWIO flattened over kH,kW).
    w = jax.random.normal(k1, (3, 3, in_feats, out_feats), jnp.float32) * 0.1
    w_taps = w.reshape(9, in_feats, out_feats)
    gamma = 1.0 + 0.1 * jax.random.normal(k2, (out_feats,), jnp.float32)
    beta = 0.1 * jax.random.normal(k3, (out_feats,), jnp.float32)
    running_mean = 0.05 * jax.random.normal(k4, (out_feats,), jnp.float32)
    running_var = jnp.abs(1.0 + 0.1 * jax.random.normal(k5, (out_feats,),
                                                        jnp.float32))
    eps = 1e-5
    scale = gamma / jnp.sqrt(running_var + eps)
    shift = beta - running_mean * scale
    return w_taps, scale, shift


def reference_forward(x_nchw, params1, params2):
    """Pure-JAX f32 reference (lax.conv) for correctness checking."""
    def stage(x, w_taps, scale, shift):
        Cin, Cout = w_taps.shape[1], w_taps.shape[2]
        w = w_taps.reshape(3, 3, Cin, Cout).transpose(3, 2, 0, 1)   # OIHW
        y = lax.conv_general_dilated(
            x, w, window_strides=(1, 1), padding="SAME",
            dimension_numbers=("NCHW", "OIHW", "NCHW"))
        y = y * scale[None, :, None, None] + shift[None, :, None, None]
        return jnp.maximum(y, 0.0)
    return stage(stage(x_nchw, *params1), *params2)


if __name__ == "__main__":
    in_feats, out_feats = 4, 8
    B, H, W = 2, 16, 16

    key = jax.random.PRNGKey(0)
    kx, kp1, kp2 = jax.random.split(key, 3)
    x = jax.random.normal(kx, (B, in_feats, H, W), jnp.float32)
    params1 = make_params(kp1, in_feats, out_feats)
    params2 = make_params(kp2, out_feats, out_feats)

    out = jax.block_until_ready(unblocks_forward(x, params1, params2))
    ref = jax.block_until_ready(reference_forward(x, params1, params2))

    assert out.shape == (B, out_feats, H, W)
    # bf16 matmul inputs (f32 accumulation) -> loosen from the f32-only 1e-4.
    np.testing.assert_allclose(np.asarray(out), np.asarray(ref),
                               rtol=2e-2, atol=2e-2)
    print("KERNEL_OK")
</pallas_src>

<mosaic_0001>
module attributes {stable_mosaic.version = 11 : i64} {
  func.func @unblocks_kernel(%arg0: i32, %arg1: memref<1x16x16x4xbf16, #tpu.memory_space<vmem>>, %arg2: memref<36x8xbf16, #tpu.memory_space<vmem>>, %arg3: memref<1x8xf32, #tpu.memory_space<vmem>>, %arg4: memref<1x8xf32, #tpu.memory_space<vmem>>, %arg5: memref<8x72xbf16, #tpu.memory_space<vmem>>, %arg6: memref<8x1xf32, #tpu.memory_space<vmem>>, %arg7: memref<8x1xf32, #tpu.memory_space<vmem>>, %arg8: memref<1x8x256xf32, #tpu.memory_space<vmem>>, %arg9: memref<18x32x4xf32, #tpu.memory_space<vmem>>, %arg10: memref<18x32x8xf32, #tpu.memory_space<vmem>>) attributes {dimension_semantics = [#tpu.dimension_semantics<parallel>], iteration_bounds = array<i64: 2>, scalar_prefetch = 0 : i64, scratch_operands = 2 : i64, tpu.core_type = #tpu.core_type<tc>, window_params = [{transform_indices = @transform_0, window_bounds = array<i64: 1, 16, 16, 4>}, {pipeline_mode = #tpu.pipeline_mode<synchronous>, transform_indices = @transform_1, window_bounds = array<i64: 36, 8>}, {pipeline_mode = #tpu.pipeline_mode<synchronous>, transform_indices = @transform_2, window_bounds = array<i64: 1, 8>}, {pipeline_mode = #tpu.pipeline_mode<synchronous>, transform_indices = @transform_3, window_bounds = array<i64: 1, 8>}, {pipeline_mode = #tpu.pipeline_mode<synchronous>, transform_indices = @transform_4, window_bounds = array<i64: 8, 72>}, {pipeline_mode = #tpu.pipeline_mode<synchronous>, transform_indices = @transform_5, window_bounds = array<i64: 8, 1>}, {pipeline_mode = #tpu.pipeline_mode<synchronous>, transform_indices = @transform_6, window_bounds = array<i64: 8, 1>}, {transform_indices = @transform_7, window_bounds = array<i64: 1, 8, 256>}]} {
    %cst = arith.constant 0.000000e+00 : f32
    %0 = vector.broadcast %cst : f32 to vector<18x32x4xf32>
    %c0 = arith.constant 0 : index
    %c0_0 = arith.constant 0 : index
    %c0_1 = arith.constant 0 : index
    %1 = vector.load %arg9[%c0, %c0_0, %c0_1] : memref<18x32x4xf32, #tpu.memory_space<vmem>>, vector<18x32x4xf32>
    tpu.vector_store %arg9[%c0, %c0_0, %c0_1], %0 {strides = array<i32>} : memref<18x32x4xf32, #tpu.memory_space<vmem>>, vector<18x32x4xf32>,
    %c0_2 = arith.constant 0 : index
    %c0_3 = arith.constant 0 : index
    %c0_4 = arith.constant 0 : index
    %c0_5 = arith.constant 0 : index
    %2 = vector.load %arg1[%c0_2, %c0_3, %c0_4, %c0_5] : memref<1x16x16x4xbf16, #tpu.memory_space<vmem>>, vector<1x16x16x4xbf16>
    %3 = vector.shape_cast %2 : vector<1x16x16x4xbf16> to vector<16x16x4xbf16>
    %4 = arith.extf %3 : vector<16x16x4xbf16> to vector<16x16x4xf32>
    %c1 = arith.constant 1 : index
    %c8 = arith.constant 8 : index
    %c0_6 = arith.constant 0 : index
    %5 = vector.load %arg9[%c1, %c8, %c0_6] : memref<18x32x4xf32, #tpu.memory_space<vmem>>, vector<16x16x4xf32>
    tpu.vector_store %arg9[%c1, %c8, %c0_6], %4 {strides = array<i32>} : memref<18x32x4xf32, #tpu.memory_space<vmem>>, vector<16x16x4xf32>,
    %c0_7 = arith.constant 0 : index
    %c0_8 = arith.constant 0 : index
    %c0_9 = arith.constant 0 : index
    %6 = vector.load %arg9[%c0_7, %c0_8, %c0_9] : memref<18x32x4xf32, #tpu.memory_space<vmem>>, vector<18x32x4xf32>
    %7 = vector.extract_strided_slice %6 {offsets = [0, 7, 0], sizes = [16, 16, 4], strides = [1, 1, 1]} : vector<18x32x4xf32> to vector<16x16x4xf32>
    %8 = vector.shape_cast %7 : vector<16x16x4xf32> to vector<256x4xf32>
    %9 = vector.extract_strided_slice %6 {offsets = [0, 8, 0], sizes = [16, 16, 4], strides = [1, 1, 1]} : vector<18x32x4xf32> to vector<16x16x4xf32>
    %10 = vector.shape_cast %9 : vector<16x16x4xf32> to vector<256x4xf32>
    %11 = vector.extract_strided_slice %6 {offsets = [0, 9, 0], sizes = [16, 16, 4], strides = [1, 1, 1]} : vector<18x32x4xf32> to vector<16x16x4xf32>
    %12 = vector.shape_cast %11 : vector<16x16x4xf32> to vector<256x4xf32>
    %13 = vector.extract_strided_slice %6 {offsets = [1, 7, 0], sizes = [16, 16, 4], strides = [1, 1, 1]} : vector<18x32x4xf32> to vector<16x16x4xf32>
    %14 = vector.shape_cast %13 : vector<16x16x4xf32> to vector<256x4xf32>
    %15 = vector.extract_strided_slice %6 {offsets = [1, 8, 0], sizes = [16, 16, 4], strides = [1, 1, 1]} : vector<18x32x4xf32> to vector<16x16x4xf32>
    %16 = vector.shape_cast %15 : vector<16x16x4xf32> to vector<256x4xf32>
    %17 = vector.extract_strided_slice %6 {offsets = [1, 9, 0], sizes = [16, 16, 4], strides = [1, 1, 1]} : vector<18x32x4xf32> to vector<16x16x4xf32>
    %18 = vector.shape_cast %17 : vector<16x16x4xf32> to vector<256x4xf32>
    %19 = vector.extract_strided_slice %6 {offsets = [2, 7, 0], sizes = [16, 16, 4], strides = [1, 1, 1]} : vector<18x32x4xf32> to vector<16x16x4xf32>
    %20 = vector.shape_cast %19 : vector<16x16x4xf32> to vector<256x4xf32>
    %21 = vector.extract_strided_slice %6 {offsets = [2, 8, 0], sizes = [16, 16, 4], strides = [1, 1, 1]} : vector<18x32x4xf32> to vector<16x16x4xf32>
    %22 = vector.shape_cast %21 : vector<16x16x4xf32> to vector<256x4xf32>
    %23 = vector.extract_strided_slice %6 {offsets = [2, 9, 0], sizes = [16, 16, 4], strides = [1, 1, 1]} : vector<18x32x4xf32> to vector<16x16x4xf32>
    %24 = vector.shape_cast %23 : vector<16x16x4xf32> to vector<256x4xf32>
    %25 = tpu.concatenate %8, %10, %12, %14, %16, %18, %20, %22, %24 in 1 : vector<256x4xf32>, vector<256x4xf32>, vector<256x4xf32>, vector<256x4xf32>, vector<256x4xf32>, vector<256x4xf32>, vector<256x4xf32>, vector<256x4xf32>, vector<256x4xf32> -> vector<256x36xf32>
    %26 = arith.truncf %25 : vector<256x36xf32> to vector<256x36xbf16>
    %c0_10 = arith.constant 0 : index
    %c0_11 = arith.constant 0 : index
    %27 = vector.load %arg2[%c0_10, %c0_11] : memref<36x8xbf16, #tpu.memory_space<vmem>>, vector<36x8xbf16>
    %cst_12 = arith.constant dense<0.000000e+00> : vector<256x8xf32>
    %28 = tpu.matmul %26, %27, %cst_12 {dimension_numbers = #tpu.dot_dimension_numbers<[1], [0], [0], [1], [0, 0, 1, 1], [], []>} : vector<256x36xbf16>, vector<36x8xbf16>, vector<256x8xf32> -> vector<256x8xf32>
    %c0_13 = arith.constant 0 : index
    %c0_14 = arith.constant 0 : index
    %29 = vector.load %arg3[%c0_13, %c0_14] : memref<1x8xf32, #tpu.memory_space<vmem>>, vector<1x8xf32>
    %30 = vector.shape_cast %29 : vector<1x8xf32> to vector<8xf32>
    %31 = vector.shape_cast %30 : vector<8xf32> to vector<1x8xf32>
    %32 = vector.broadcast %31 : vector<1x8xf32> to vector<256x8xf32>
    %33 = arith.mulf %28, %32 : vector<256x8xf32>
    %c0_15 = arith.constant 0 : index
    %c0_16 = arith.constant 0 : index
    %34 = vector.load %arg4[%c0_15, %c0_16] : memref<1x8xf32, #tpu.memory_space<vmem>>, vector<1x8xf32>
    %35 = vector.shape_cast %34 : vector<1x8xf32> to vector<8xf32>
    %36 = vector.shape_cast %35 : vector<8xf32> to vector<1x8xf32>
    %37 = vector.broadcast %36 : vector<1x8xf32> to vector<256x8xf32>
    %38 = arith.addf %33, %37 : vector<256x8xf32>
    %cst_17 = arith.constant 0.000000e+00 : f32
    %39 = vector.broadcast %cst_17 : f32 to vector<256x8xf32>
    %40 = arith.maximumf %38, %39 : vector<256x8xf32>
    %cst_18 = arith.constant 0.000000e+00 : f32
    %41 = vector.broadcast %cst_18 : f32 to vector<18x32x8xf32>
    %c0_19 = arith.constant 0 : index
    %c0_20 = arith.constant 0 : index
    %c0_21 = arith.constant 0 : index
    %42 = vector.load %arg10[%c0_19, %c0_20, %c0_21] : memref<18x32x8xf32, #tpu.memory_space<vmem>>, vector<18x32x8xf32>
    tpu.vector_store %arg10[%c0_19, %c0_20, %c0_21], %41 {strides = array<i32>} : memref<18x32x8xf32, #tpu.memory_space<vmem>>, vector<18x32x8xf32>,
    %43 = vector.shape_cast %40 : vector<256x8xf32> to vector<16x16x8xf32>
    %c1_22 = arith.constant 1 : index
    %c8_23 = arith.constant 8 : index
    %c0_24 = arith.constant 0 : index
    %44 = vector.load %arg10[%c1_22, %c8_23, %c0_24] : memref<18x32x8xf32, #tpu.memory_space<vmem>>, vector<16x16x8xf32>
    tpu.vector_store %arg10[%c1_22, %c8_23, %c0_24], %43 {strides = array<i32>} : memref<18x32x8xf32, #tpu.memory_space<vmem>>, vector<16x16x8xf32>,
    %c0_25 = arith.constant 0 : index
    %c0_26 = arith.constant 0 : index
    %c0_27 = arith.constant 0 : index
    %45 = vector.load %arg10[%c0_25, %c0_26, %c0_27] : memref<18x32x8xf32, #tpu.memory_space<vmem>>, vector<18x32x8xf32>
    %46 = vector.extract_strided_slice %45 {offsets = [0, 7, 0], sizes = [16, 16, 8], strides = [1, 1, 1]} : vector<18x32x8xf32> to vector<16x16x8xf32>
    %47 = vector.shape_cast %46 : vector<16x16x8xf32> to vector<256x8xf32>
    %48 = vector.extract_strided_slice %45 {offsets = [0, 8, 0], sizes = [16, 16, 8], strides = [1, 1, 1]} : vector<18x32x8xf32> to vector<16x16x8xf32>
    %49 = vector.shape_cast %48 : vector<16x16x8xf32> to vector<256x8xf32>
    %50 = vector.extract_strided_slice %45 {offsets = [0, 9, 0], sizes = [16, 16, 8], strides = [1, 1, 1]} : vector<18x32x8xf32> to vector<16x16x8xf32>
    %51 = vector.shape_cast %50 : vector<16x16x8xf32> to vector<256x8xf32>
    %52 = vector.extract_strided_slice %45 {offsets = [1, 7, 0], sizes = [16, 16, 8], strides = [1, 1, 1]} : vector<18x32x8xf32> to vector<16x16x8xf32>
    %53 = vector.shape_cast %52 : vector<16x16x8xf32> to vector<256x8xf32>
    %54 = vector.extract_strided_slice %45 {offsets = [1, 8, 0], sizes = [16, 16, 8], strides = [1, 1, 1]} : vector<18x32x8xf32> to vector<16x16x8xf32>
    %55 = vector.shape_cast %54 : vector<16x16x8xf32> to vector<256x8xf32>
    %56 = vector.extract_strided_slice %45 {offsets = [1, 9, 0], sizes = [16, 16, 8], strides = [1, 1, 1]} : vector<18x32x8xf32> to vector<16x16x8xf32>
    %57 = vector.shape_cast %56 : vector<16x16x8xf32> to vector<256x8xf32>
    %58 = vector.extract_strided_slice %45 {offsets = [2, 7, 0], sizes = [16, 16, 8], strides = [1, 1, 1]} : vector<18x32x8xf32> to vector<16x16x8xf32>
    %59 = vector.shape_cast %58 : vector<16x16x8xf32> to vector<256x8xf32>
    %60 = vector.extract_strided_slice %45 {offsets = [2, 8, 0], sizes = [16, 16, 8], strides = [1, 1, 1]} : vector<18x32x8xf32> to vector<16x16x8xf32>
    %61 = vector.shape_cast %60 : vector<16x16x8xf32> to vector<256x8xf32>
    %62 = vector.extract_strided_slice %45 {offsets = [2, 9, 0], sizes = [16, 16, 8], strides = [1, 1, 1]} : vector<18x32x8xf32> to vector<16x16x8xf32>
    %63 = vector.shape_cast %62 : vector<16x16x8xf32> to vector<256x8xf32>
    %64 = tpu.concatenate %47, %49, %51, %53, %55, %57, %59, %61, %63 in 1 : vector<256x8xf32>, vector<256x8xf32>, vector<256x8xf32>, vector<256x8xf32>, vector<256x8xf32>, vector<256x8xf32>, vector<256x8xf32>, vector<256x8xf32>, vector<256x8xf32> -> vector<256x72xf32>
    %65 = arith.truncf %64 : vector<256x72xf32> to vector<256x72xbf16>
    %c0_28 = arith.constant 0 : index
    %c0_29 = arith.constant 0 : index
    %66 = vector.load %arg5[%c0_28, %c0_29] : memref<8x72xbf16, #tpu.memory_space<vmem>>, vector<8x72xbf16>
    %cst_30 = arith.constant dense<0.000000e+00> : vector<8x256xf32>
    %67 = tpu.matmul %66, %65, %cst_30 {dimension_numbers = #tpu.dot_dimension_numbers<[1], [1], [0], [0], [0, 0, 1, 0], [], []>} : vector<8x72xbf16>, vector<256x72xbf16>, vector<8x256xf32> -> vector<8x256xf32>
    %c0_31 = arith.constant 0 : index
    %c0_32 = arith.constant 0 : index
    %68 = vector.load %arg6[%c0_31, %c0_32] : memref<8x1xf32, #tpu.memory_space<vmem>>, vector<8x1xf32>
    %69 = vector.broadcast %68 : vector<8x1xf32> to vector<8x256xf32>
    %70 = arith.mulf %67, %69 : vector<8x256xf32>
    %c0_33 = arith.constant 0 : index
    %c0_34 = arith.constant 0 : index
    %71 = vector.load %arg7[%c0_33, %c0_34] : memref<8x1xf32, #tpu.memory_space<vmem>>, vector<8x1xf32>
    %72 = vector.broadcast %71 : vector<8x1xf32> to vector<8x256xf32>
    %73 = arith.addf %70, %72 : vector<8x256xf32>
    %cst_35 = arith.constant 0.000000e+00 : f32
    %74 = vector.broadcast %cst_35 : f32 to vector<8x256xf32>
    %75 = arith.maximumf %73, %74 : vector<8x256xf32>
    %c0_36 = arith.constant 0 : index
    %c0_37 = arith.constant 0 : index
    %c0_38 = arith.constant 0 : index
    %76 = vector.load %arg8[%c0_36, %c0_37, %c0_38] : memref<1x8x256xf32, #tpu.memory_space<vmem>>, vector<1x8x256xf32>
    %77 = vector.shape_cast %76 : vector<1x8x256xf32> to vector<8x256xf32>
    %78 = vector.shape_cast %75 : vector<8x256xf32> to vector<1x8x256xf32>
    tpu.vector_store %arg8[%c0_36, %c0_37, %c0_38], %78 {strides = array<i32>} : memref<1x8x256xf32, #tpu.memory_space<vmem>>, vector<1x8x256xf32>,
    return
  }
  func.func @transform_0(%arg0: i32) -> (i32, i32, i32, i32) {
    %c0_i32 = arith.constant 0 : i32
    %c0_i32_0 = arith.constant 0 : i32
    %c0_i32_1 = arith.constant 0 : i32
    %c0_i32_2 = arith.constant 0 : i32
    return %arg0, %c0_i32, %c0_i32_0, %c0_i32_1 : i32, i32, i32, i32
  }
  func.func @transform_1(%arg0: i32) -> (i32, i32) {
    %c0_i32 = arith.constant 0 : i32
    %c0_i32_0 = arith.constant 0 : i32
    %c0_i32_1 = arith.constant 0 : i32
    return %c0_i32, %c0_i32_0 : i32, i32
  }
  func.func @transform_2(%arg0: i32) -> (i32, i32) {
    %c0_i32 = arith.constant 0 : i32
    %c0_i32_0 = arith.constant 0 : i32
    %c0_i32_1 = arith.constant 0 : i32
    return %c0_i32, %c0_i32_0 : i32, i32
  }
  func.func @transform_3(%arg0: i32) -> (i32, i32) {
    %c0_i32 = arith.constant 0 : i32
    %c0_i32_0 = arith.constant 0 : i32
    %c0_i32_1 = arith.constant 0 : i32
    return %c0_i32, %c0_i32_0 : i32, i32
  }
  func.func @transform_4(%arg0: i32) -> (i32, i32) {
    %c0_i32 = arith.constant 0 : i32
    %c0_i32_0 = arith.constant 0 : i32
    %c0_i32_1 = arith.constant 0 : i32
    return %c0_i32, %c0_i32_0 : i32, i32
  }
  func.func @transform_5(%arg0: i32) -> (i32, i32) {
    %c0_i32 = arith.constant 0 : i32
    %c0_i32_0 = arith.constant 0 : i32
    %c0_i32_1 = arith.constant 0 : i32
    return %c0_i32, %c0_i32_0 : i32, i32
  }
  func.func @transform_6(%arg0: i32) -> (i32, i32) {
    %c0_i32 = arith.constant 0 : i32
    %c0_i32_0 = arith.constant 0 : i32
    %c0_i32_1 = arith.constant 0 : i32
    return %c0_i32, %c0_i32_0 : i32, i32
  }
  func.func @transform_7(%arg0: i32) -> (i32, i32, i32) {
    %c0_i32 = arith.constant 0 : i32
    %c0_i32_0 = arith.constant 0 : i32
    %c0_i32_1 = arith.constant 0 : i32
    return %arg0, %c0_i32, %c0_i32_0 : i32, i32, i32
  }
}

</mosaic_0001>

<bundles_post_ra>
// kernel: unblocks_forward.1
= control target key start
LH: loop header
LB: loop body
LE: loop exit
PB: predicated region body
PF: predicated region fallthrough
CT: control target
= control target key end

     0   :  { %s5300_s24 = smov 0   ;;  %s8739_s0 = inlined_call_operand.vmem [shape: bf16[2,16,16,4], index: 0, kind: input, shape index: {}]   ;;  %s8740_s1 = inlined_call_operand.vmem [shape: bf16[36,8], index: 1, kind: input, shape index: {}]   ;;  %s8741_s2 = inlined_call_operand.vmem [shape: f32[1,8], index: 2, kind: input, shape index: {}]   ;;  %s8742_s3 = inlined_call_operand.vmem [shape: f32[1,8], index: 3, kind: input, shape index: {}]   ;;  %s8743_s4 = inlined_call_operand.vmem [shape: bf16[8,72], index: 4, kind: input, shape index: {}]   ;;  %s8744_s5 = inlined_call_operand.vmem [shape: f32[8,1], index: 5, kind: input, shape index: {}]   ;;  %s8745_s6 = inlined_call_operand.vmem [shape: f32[8,1], index: 6, kind: input, shape index: {}]   ;;  %s8746_s7 = inlined_call_operand.vmem [shape: f32[2,8,256], index: 7, kind: output, shape index: {}]  }
   0x1 LB: > { %s3780_s25 = sadd.s32 4294967295, %s5244_s24   ;;  %p3784_p0 = scmp.ge.s32.totalorder %s5244_s24, 1  ;;  %s5244_s24 = sphi %s5300_s24, %s17_s24  }
   0x2   : > { %p237_p1 = scmp.lt.s32.totalorder %s5244_s24, 3 }
   0x4   : > { %p238_p2 = pnand %p3784_p0, %p237_p1 }
   0x6   : > { %241 = sbr.rel (%p238_p2) target bundleno = 1319 (0x527), region = 48 }
   0xb   : > { %vm280_vm0 = vcmask 31744   ;;  %v8747_v0 = vmov 0.0   ;;  %s5247_s26 = smov 4   ;;  %p269_p3 = scmp.lt.s32.totalorder %s3780_s25, 1  ;;  %vm699_vm1 = vcmask 1046528   ;;  %vm570_vm2 = vcmask 1040384  }
   0xc   : > { %282 = vst.msk [vmem:[#allocation2 + $0x8] sm:$0xff] %vm280_vm0, %v8747_v0  ;;  %s5248_s8 = smov 8   ;;  %s5249_s9 = smov 12   ;;  %vm1608_vm3 = vcmask 64512   ;;  %vm1924_vm4 = vcmask 1041408   ;;  %vm1641_vm5 = vcmask 97280  }
   0xd   : > { %283 = vst.msk [vmem:[#allocation2 + $0x10] sm:$0xff] %vm280_vm0, %v8747_v0  ;;  %s9275_s25 = smov (!%p269_p3, %s3780_s25), 1  ;;  %s5250_s10 = smov 16   ;;  %vm1674_vm6 = vcmask 130048   ;;  %vm1707_vm7 = vcmask 162816   ;;  %vm1740_vm8 = vcmask 195584  }
   0xe   : > { %281 = vst.msk [vmem:[#allocation2] sm:$0xff] %vm280_vm0, %v8747_v0  ;;  %s3817_s27 = sshll.u32 %s9275_s25, 7  ;;  %s5251_s11 = smov 20   ;;  %vm1773_vm9 = vcmask 228352   ;;  %vm1806_vm10 = vcmask 261120   ;;  %vm1875_vm11 = vcmask 293888  }
   0xf   : > { %284 = vst.msk [vmem:[#allocation2 + $0x18] sm:$0xff] %vm280_vm0, %v8747_v0  ;;  %s5451_s30 = scalar_lea.vmem %s8739_s0, %s3817_s27  ;;  %s5252_s12 = smov 24   ;;  %vm3478_vm12 = vcmask 326656   ;;  %vm3511_vm13 = vcmask 392192   ;;  %vm3544_vm14 = vcmask 457728   ;;  %vm3577_vm15 = vcmask 523264  }
  0x10   : > { %285 = vst.msk [vmem:[#allocation2 + $0x20] sm:$0xff] %vm280_vm0, %v8747_v0  ;;  %v3887_v4 = vld [vmem:[%s5451_s30 + $0x18] sm:$0xff]   ;;  %v3885_v5 = vld [vmem:[%s5451_s30 + $0x8] sm:$0xff]   ;;  %v3822_v8 = vld [vmem:[%s5451_s30] sm:$0xff]   ;;  %s5253_s13 = smov 28   ;;  %s5254_s14 = smov 32  }
  0x11   : > { %286 = vst.msk [vmem:[#allocation2 + $0x28] sm:$0xff] %vm280_vm0, %v8747_v0  ;;  %v3835_v6 = vunpack.c.l.bf16 %v3887_v4  ;;  %v3836_v7 = vunpack.c.h.bf16 %v3887_v4  ;;  %v3827_v9 = vunpack.c.l.bf16 %v3885_v5  ;;  %v3828_v10 = vunpack.c.h.bf16 %v3885_v5  ;;  %v3888_v11 = vld [vmem:[%s5451_s30 + $0x20] sm:$0xff]   ;;  %v3886_v14 = vld [vmem:[%s5451_s30 + $0x10] sm:$0xff]   ;;  %v3889_v17 = vld [vmem:[%s5451_s30 + $0x28] sm:$0xff]   ;;  %s5255_s27 = smov 40   ;;  %s5256_s28 = smov 48  }
  0x12   : > { %287 = vst.msk [vmem:[#allocation2 + $0x30] sm:$0xff] %vm280_vm0, %v8747_v0  ;;  %v3823_v12 = vunpack.c.l.bf16 %v3822_v8  ;;  %v3824_v13 = vunpack.c.h.bf16 %v3822_v8  ;;  %v3839_v15 = vunpack.c.l.bf16 %v3888_v11  ;;  %v3840_v16 = vunpack.c.h.bf16 %v3888_v11  ;;  %v3891_v20 = vld [vmem:[%s5451_s30 + $0x38] sm:$0xff]   ;;  %v3890_v24 = vld [vmem:[%s5451_s30 + $0x30] sm:$0xff]   ;;  %v3892_v30 = vld [vmem:[%s5451_s30 + $0x40] sm:$0xff]   ;;  %s5257_s29 = smov 56  }
  0x13   : > { %v5322_v1 = vld [vmem:[#allocation2 + $0x8] sm:$0xff]  ;;  %288 = vst.msk [vmem:[#allocation2 + $0x38] sm:$0xff] %vm280_vm0, %v8747_v0  ;;  %v3831_v18 = vunpack.c.l.bf16 %v3886_v14  ;;  %v3832_v19 = vunpack.c.h.bf16 %v3886_v14  ;;  %v3843_v21 = vunpack.c.l.bf16 %v3889_v17  ;;  %v3844_v23 = vunpack.c.h.bf16 %v3889_v17  ;;  %v3894_v36 = vld [vmem:[%s5451_s30 + $0x50] sm:$0xff]   ;;  %v3895_v50 = vld [vmem:[%s5451_s30 + $0x58] sm:$0xff]  }
  0x14   : > { %v5326_v2 = vld [vmem:[#allocation2 + $0x10] sm:$0xff]  ;;  %289 = vst.msk [vmem:[#allocation2 + $0x40] sm:$0xff] %vm280_vm0, %v8747_v0  ;;  %v3851_v26 = vunpack.c.l.bf16 %v3891_v20  ;;  %v3852_v29 = vunpack.c.h.bf16 %v3891_v20  ;;  %v3847_v32 = vunpack.c.l.bf16 %v3890_v24  ;;  %v3848_v35 = vunpack.c.h.bf16 %v3890_v24  ;;  %v3893_v44 = vld [vmem:[%s5451_s30 + $0x48] sm:$0xff]   ;;  %v3896_v4 = vld [vmem:[%s5451_s30 + $0x60] sm:$0xff]  }
  0x15   : > { %v3925_v3 = vpack.i.bf16 %v5326_v2, %v5322_v1  ;;  %290 = vst.msk [vmem:[#allocation2 + $0x48] sm:$0xff] %vm280_vm0, %v8747_v0  ;;  %v701_v37 = vrot.slane %v5326_v2, 1  ;;  %v700_v38 = vrot.slane %v5322_v1, 1  ;;  %v3855_v40 = vunpack.c.l.bf16 %v3892_v30  ;;  %v3897_v59 = vld [vmem:[%s5451_s30 + $0x68] sm:$0xff]  }
  0x16   : > { %291 = vst.msk [vmem:[#allocation2 + $0x50] sm:$0xff] %vm280_vm0, %v8747_v0  ;;  %v3856_v43 = vunpack.c.h.bf16 %v3892_v30  ;;  %v3863_v46 = vunpack.c.l.bf16 %v3894_v36  ;;  %v3864_v49 = vunpack.c.h.bf16 %v3894_v36  ;;  %v453_v51 = vld [vmem:[#allocation2 + $0x18] sm:$0xff]  ;;  %v3859_v53 = vunpack.c.l.bf16 %v3893_v44 }
  0x17   : > { %3926 = vrot.lane.b32.xlu0 %v3925_v3, %s5247_s26  ;;  %292 = vst.msk [vmem:[#allocation2 + $0x58] sm:$0xff] %vm280_vm0, %v8747_v0  ;;  %v5545_v54 = vsel %vm699_vm1, %v700_v38, %v701_v37  ;;  %v703_v55 = vrot.slane %v453_v51, 1  ;;  %v3860_v58 = vunpack.c.h.bf16 %v3893_v44  ;;  %v3867_v61 = vunpack.c.l.bf16 %v3895_v50 }
  0x18   : > { %293 = vst.msk [vmem:[#allocation2 + $0x60] sm:$0xff] %vm280_vm0, %v8747_v0  ;;  %v3868_v3 = vunpack.c.h.bf16 %v3895_v50  ;;  %v3875_v8 = vunpack.c.l.bf16 %v3897_v59 }
  0x19   : > { %294 = vst.msk [vmem:[#allocation2 + $0x68] sm:$0xff] %vm280_vm0, %v8747_v0  ;;  %v5559_v62 = vsel %vm699_vm1, %v701_v37, %v703_v55 }
  0x1a   : > { %295 = vst.msk [vmem:[#allocation2 + $0x70] sm:$0xff] %vm280_vm0, %v8747_v0 }
  0x1b   : > { %296 = vst.msk [vmem:[#allocation2 + $0x78] sm:$0xff] %vm280_vm0, %v8747_v0 }
  0x1c   : > { %297 = vst.msk [vmem:[#allocation2 + $0x80] sm:$0xff] %vm280_vm0, %v8747_v0 }
  0x1d   : > { %298 = vst.msk [vmem:[#allocation2 + $0x88] sm:$0xff] %vm280_vm0, %v8747_v0 }
  0x1e   : > { %299 = vst.msk [vmem:[#allocation2 + $0x90] sm:$0xff] %vm280_vm0, %v8747_v0 }
  0x1f   : > { %300 = vst.msk [vmem:[#allocation2 + $0x98] sm:$0xff] %vm280_vm0, %v8747_v0 }
  0x20   : > { %301 = vst.msk [vmem:[#allocation2 + $0xa0] sm:$0xff] %vm280_vm0, %v8747_v0 }
  0x21   : > { %302 = vst.msk [vmem:[#allocation2 + $0xa8] sm:$0xff] %vm280_vm0, %v8747_v0 }
  0x22   : > { %303 = vst.msk [vmem:[#allocation2 + $0xb0] sm:$0xff] %vm280_vm0, %v8747_v0 }
  0x23   : > { %304 = vst.msk [vmem:[#allocation2 + $0xb8] sm:$0xff] %vm280_vm0, %v8747_v0 }
  0x24   : > { %305 = vst.msk [vmem:[#allocation2 + $0xc0] sm:$0xff] %vm280_vm0, %v8747_v0 }
  0x25   : > { %306 = vst.msk [vmem:[#allocation2 + $0xc8] sm:$0xff] %vm280_vm0, %v8747_v0 }
  0x26   : > { %307 = vst.msk [vmem:[#allocation2 + $0xd0] sm:$0xff] %vm280_vm0, %v8747_v0 }
  0x27   : > { %308 = vst.msk [vmem:[#allocation2 + $0xd8] sm:$0xff] %vm280_vm0, %v8747_v0 }
  0x28   : > { %309 = vst.msk [vmem:[#allocation2 + $0xe0] sm:$0xff] %vm280_vm0, %v8747_v0 }
  0x29   : > { %310 = vst.msk [vmem:[#allocation2 + $0xe8] sm:$0xff] %vm280_vm0, %v8747_v0 }
  0x2a   : > { %311 = vst.msk [vmem:[#allocation2 + $0xf0] sm:$0xff] %vm280_vm0, %v8747_v0 }
  0x2b   : > { %312 = vst.msk [vmem:[#allocation2 + $0xf8] sm:$0xff] %vm280_vm0, %v8747_v0 }
  0x2c   : > { %313 = vst.msk [vmem:[#allocation2 + $0x100] sm:$0xff] %vm280_vm0, %v8747_v0 }
  0x2d   : > { %314 = vst.msk [vmem:[#allocation2 + $0x108] sm:$0xff] %vm280_vm0, %v8747_v0 }
  0x2e   : > { %315 = vst.msk [vmem:[#allocation2 + $0x110] sm:$0xff] %vm280_vm0, %v8747_v0 }
  0x2f   : > { %316 = vst.msk [vmem:[#allocation2 + $0x118] sm:$0xff] %vm280_vm0, %v8747_v0 }
  0x30   : > { %317 = vst.msk [vmem:[#allocation2 + $0x120] sm:$0xff] %vm280_vm0, %v8747_v0 }
  0x31   : > { %318 = vst.msk [vmem:[#allocation2 + $0x128] sm:$0xff] %vm280_vm0, %v8747_v0 }
  0x32   : > { %319 = vst.msk [vmem:[#allocation2 + $0x130] sm:$0xff] %vm280_vm0, %v8747_v0 }
  0x33   : > { %320 = vst.msk [vmem:[#allocation2 + $0x138] sm:$0xff] %vm280_vm0, %v8747_v0 }
  0x34   : > { %321 = vst.msk [vmem:[#allocation2 + $0x140] sm:$0xff] %vm280_vm0, %v8747_v0 }
  0x35   : > { %322 = vst.msk [vmem:[#allocation2 + $0x148] sm:$0xff] %vm280_vm0, %v8747_v0 }
  0x36   : > { %323 = vst.msk [vmem:[#allocation2 + $0x150] sm:$0xff] %vm280_vm0, %v8747_v0 }
  0x37   : > { %324 = vst.msk [vmem:[#allocation2 + $0x158] sm:$0xff] %vm280_vm0, %v8747_v0 }
  0x38   : > { %325 = vst.msk [vmem:[#allocation2 + $0x160] sm:$0xff] %vm280_vm0, %v8747_v0 }
  0x39   : > { %326 = vst.msk [vmem:[#allocation2 + $0x168] sm:$0xff] %vm280_vm0, %v8747_v0 }
  0x3a   : > { %327 = vst.msk [vmem:[#allocation2 + $0x170] sm:$0xff] %vm280_vm0, %v8747_v0 }
  0x3b   : > { %328 = vst.msk [vmem:[#allocation2 + $0x178] sm:$0xff] %vm280_vm0, %v8747_v0 }
  0x3c   : > { %329 = vst.msk [vmem:[#allocation2 + $0x180] sm:$0xff] %vm280_vm0, %v8747_v0 }
  0x3d   : > { %330 = vst.msk [vmem:[#allocation2 + $0x188] sm:$0xff] %vm280_vm0, %v8747_v0 }
  0x3e   : > { %331 = vst.msk [vmem:[#allocation2 + $0x190] sm:$0xff] %vm280_vm0, %v8747_v0 }
  0x3f   : > { %332 = vst.msk [vmem:[#allocation2 + $0x198] sm:$0xff] %vm280_vm0, %v8747_v0 }
  0x40   : > { %333 = vst.msk [vmem:[#allocation2 + $0x1a0] sm:$0xff] %vm280_vm0, %v8747_v0 }
  0x41   : > { %334 = vst.msk [vmem:[#allocation2 + $0x1a8] sm:$0xff] %vm280_vm0, %v8747_v0 }
  0x42   : > { %335 = vst.msk [vmem:[#allocation2 + $0x1b0] sm:$0xff] %vm280_vm0, %v8747_v0 }
  0x43   : > { %336 = vst.msk [vmem:[#allocation2 + $0x1b8] sm:$0xff] %vm280_vm0, %v8747_v0 }
  0x44   : > { %337 = vst.msk [vmem:[#allocation2 + $0x1c0] sm:$0xff] %vm280_vm0, %v8747_v0 }
  0x45   : > { %338 = vst.msk [vmem:[#allocation2 + $0x1c8] sm:$0xff] %vm280_vm0, %v8747_v0 }
  0x46   : > { %339 = vst.msk [vmem:[#allocation2 + $0x1d0] sm:$0xff] %vm280_vm0, %v8747_v0 }
  0x47   : > { %340 = vst.msk [vmem:[#allocation2 + $0x1d8] sm:$0xff] %vm280_vm0, %v8747_v0 }
  0x48   : > { %341 = vst.msk [vmem:[#allocation2 + $0x1e0] sm:$0xff] %vm280_vm0, %v8747_v0 }
  0x49   : > { %342 = vst.msk [vmem:[#allocation2 + $0x1e8] sm:$0xff] %vm280_vm0, %v8747_v0 }
  0x4a   : > { %343 = vst.msk [vmem:[#allocation2 + $0x1f0] sm:$0xff] %vm280_vm0, %v8747_v0 }
  0x4b   : > { %344 = vst.msk [vmem:[#allocation2 + $0x1f8] sm:$0xff] %vm280_vm0, %v8747_v0 }
  0x4c   : > { %345 = vst.msk [vmem:[#allocation2 + $0x200] sm:$0xff] %vm280_vm0, %v8747_v0 }
  0x4d   : > { %346 = vst.msk [vmem:[#allocation2 + $0x208] sm:$0xff] %vm280_vm0, %v8747_v0 }
  0x4e   : > { %347 = vst.msk [vmem:[#allocation2 + $0x210] sm:$0xff] %vm280_vm0, %v8747_v0 }
  0x4f   : > { %348 = vst.msk [vmem:[#allocation2 + $0x218] sm:$0xff] %vm280_vm0, %v8747_v0 }
  0x50   : > { %349 = vst.msk [vmem:[#allocation2 + $0x220] sm:$0xff] %vm280_vm0, %v8747_v0 }
  0x51   : > { %350 = vst.msk [vmem:[#allocation2 + $0x228] sm:$0xff] %vm280_vm0, %v8747_v0 }
  0x52   : > { %351 = vst.msk [vmem:[#allocation2 + $0x230] sm:$0xff] %vm280_vm0, %v8747_v0 }
  0x53   : > { %352 = vst.msk [vmem:[#allocation2 + $0x238] sm:$0xff] %vm280_vm0, %v8747_v0 }
  0x54   : > { %424 = vst.msk [vmem:[#allocation2 + $0x88] sm:$0xff] %vm280_vm0, %v3835_v6 }
  0x55   : > { %425 = vst.msk [vmem:[#allocation2 + $0x90] sm:$0xff] %vm280_vm0, %v3836_v7 }
  0x56   : > { %420 = vst.msk [vmem:[#allocation2 + $0x48] sm:$0xff] %vm280_vm0, %v3827_v9  ;;  %v3876_v9 = vunpack.c.h.bf16 %v3897_v59 }
  0x57   : > { %421 = vst.msk [vmem:[#allocation2 + $0x50] sm:$0xff] %vm280_vm0, %v3828_v10  ;;  %v3898_v10 = vld [vmem:[%s5451_s30 + $0x70] sm:$0xff]  }
  0x58   : > { %418 = vst.msk [vmem:[#allocation2 + $0x28] sm:$0xff] %vm280_vm0, %v3823_v12  ;;  %v3880_v20 = vunpack.c.h.bf16 %v3898_v10 }
  0x59   : > { %419 = vst.msk [vmem:[#allocation2 + $0x30] sm:$0xff] %vm280_vm0, %v3824_v13  ;;  %v3871_v13 = vunpack.c.l.bf16 %v3896_v4 }
  0x5a   : > { %426 = vst.msk [vmem:[#allocation2 + $0xa8] sm:$0xff] %vm280_vm0, %v3839_v15  ;;  %v3872_v15 = vunpack.c.h.bf16 %v3896_v4 }
  0x5b   : > { %v5485_v22 = vld [vmem:[#allocation2 + $0x88] sm:$0xff]  ;;  %427 = vst.msk [vmem:[#allocation2 + $0xb0] sm:$0xff] %vm280_vm0, %v3840_v16 }
  0x5c   : > { %v5489_v25 = vld [vmem:[#allocation2 + $0x90] sm:$0xff]  ;;  %422 = vst.msk [vmem:[#allocation2 + $0x68] sm:$0xff] %vm280_vm0, %v3831_v18  ;;  %v3879_v18 = vunpack.c.l.bf16 %v3898_v10 }
  0x5d   : > { %v5494_v27 = vpack.i.bf16 %v5489_v25, %v5485_v22  ;;  %v5496_v28 = vld [vmem:[#allocation2 + $0x48] sm:$0xff]  ;;  %423 = vst.msk [vmem:[#allocation2 + $0x70] sm:$0xff] %vm280_vm0, %v3832_v19 }
  0x5e   : > { %v5500_v31 = vld [vmem:[#allocation2 + $0x50] sm:$0xff]  ;;  %428 = vst.msk [vmem:[#allocation2 + $0xc8] sm:$0xff] %vm280_vm0, %v3843_v21  ;;  %v710_v4 = vrot.slane %v5496_v28, 1 }
  0x5f   : > { %3946 = vrot.lane.b32.xlu2 %v5494_v27, %s5247_s26  ;;  %v5507_v33 = vpack.i.bf16 %v5500_v31, %v5496_v28  ;;  %v5509_v34 = vld [vmem:[#allocation2 + $0x28] sm:$0xff]  ;;  %429 = vst.msk [vmem:[#allocation2 + $0xd0] sm:$0xff] %vm280_vm0, %v3844_v23 }
  0x60   : > { %v5515_v39 = vld [vmem:[#allocation2 + $0x30] sm:$0xff]  ;;  %432 = vst.msk [vmem:[#allocation2 + $0x108] sm:$0xff] %vm280_vm0, %v3851_v26 }
  0x61   : > { %3936 = vrot.lane.b32.xlu1 %v5507_v33, %s5247_s26  ;;  %v5522_v41 = vpack.i.bf16 %v5515_v39, %v5509_v34  ;;  %v5524_v42 = vld [vmem:[#allocation2 + $0xa8] sm:$0xff]  ;;  %433 = vst.msk [vmem:[#allocation2 + $0x110] sm:$0xff] %vm280_vm0, %v3852_v29  ;;  %v706_v55 = vrot.slane %v5515_v39, 1 }
  0x62   : > { %v5528_v45 = vld [vmem:[#allocation2 + $0xb0] sm:$0xff]  ;;  %430 = vst.msk [vmem:[#allocation2 + $0xe8] sm:$0xff] %vm280_vm0, %v3847_v32 }
  0x63   : > { %3931 = vrot.lane.b32.xlu0 %v5522_v41, %s5247_s26  ;;  %v5535_v47 = vpack.i.bf16 %v5528_v45, %v5524_v42  ;;  %v5537_v48 = vld [vmem:[#allocation2 + $0x68] sm:$0xff]  ;;  %431 = vst.msk [vmem:[#allocation2 + $0xf0] sm:$0xff] %vm280_vm0, %v3848_v35 }
  0x64   : > { %v5541_v52 = vld [vmem:[#allocation2 + $0x70] sm:$0xff]  ;;  %434 = vst.msk [vmem:[#allocation2 + $0x128] sm:$0xff] %vm280_vm0, %v3855_v40 }
  0x65   : > { %v5549_v56 = vpack.i.bf16 %v5541_v52, %v5537_v48  ;;  %v5551_v57 = vld [vmem:[#allocation2 + $0xc8] sm:$0xff]  ;;  %435 = vst.msk [vmem:[#allocation2 + $0x130] sm:$0xff] %vm280_vm0, %v3856_v43  ;;  %v457_v43 = vld [vmem:[#allocation2 + $0x38] sm:$0xff] }
  0x66   : > { %v5555_v60 = vld [vmem:[#allocation2 + $0xd0] sm:$0xff]  ;;  %438 = vst.msk [vmem:[#allocation2 + $0x168] sm:$0xff] %vm280_vm0, %v3863_v46 }
  0x67   : > { %3951 = vrot.lane.b32.xlu2 %v5535_v47, %s5247_s26  ;;  %v5565_v63 = vpack.i.bf16 %v5555_v60, %v5551_v57  ;;  %439 = vst.msk [vmem:[#allocation2 + $0x170] sm:$0xff] %vm280_vm0, %v3864_v49  ;;  %v5571_v6 = vld [vmem:[#allocation2 + $0x108] sm:$0xff] }
  0x68   : > { %v5573_v7 = vld [vmem:[#allocation2 + $0x110] sm:$0xff]  ;;  %436 = vst.msk [vmem:[#allocation2 + $0x148] sm:$0xff] %vm280_vm0, %v3859_v53  ;;  %v705_v53 = vrot.slane %v5509_v34, 1 }
  0x69   : > { %3941 = vrot.lane.b32.xlu1 %v5549_v56, %s5247_s26  ;;  %437 = vst.msk [vmem:[#allocation2 + $0x150] sm:$0xff] %vm280_vm0, %v3860_v58  ;;  %v5580_v11 = vld [vmem:[#allocation2 + $0xe8] sm:$0xff]  ;;  %v5589_v14 = vpack.i.bf16 %v5573_v7, %v5571_v6  ;;  %v708_v58 = vrot.slane %v457_v43, 1  ;;  %v465_v43 = vld [vmem:[#allocation2 + $0x78] sm:$0xff] }
  0x6a   : > { %v5582_v12 = vld [vmem:[#allocation2 + $0xf0] sm:$0xff]  ;;  %440 = vst.msk [vmem:[#allocation2 + $0x188] sm:$0xff] %vm280_vm0, %v3867_v61  ;;  %v461_v61 = vld [vmem:[#allocation2 + $0x58] sm:$0xff]  ;;  %v707_v10 = vsel %vm699_vm1, %v705_v53, %v706_v55  ;;  %v721_v53 = vrot.slane %v5489_v25, 1 }
  0x6b   : > { %3956 = vrot.lane.b32.xlu0 %v5565_v63, %s5247_s26  ;;  %441 = vst.msk [vmem:[#allocation2 + $0x190] sm:$0xff] %vm280_vm0, %v3868_v3  ;;  %v5592_v16 = vld [vmem:[#allocation2 + $0x128] sm:$0xff]  ;;  %v5599_v19 = vpack.i.bf16 %v5582_v12, %v5580_v11 }
  0x6c   : > { %v5594_v17 = vld [vmem:[#allocation2 + $0x130] sm:$0xff]  ;;  %444 = vst.msk [vmem:[#allocation2 + $0x1c8] sm:$0xff] %vm280_vm0, %v3875_v8  ;;  %v711_v8 = vrot.slane %v5500_v31, 1 }
  0x6d   : > { %445 = vst.msk [vmem:[#allocation2 + $0x1d0] sm:$0xff] %vm280_vm0, %v3876_v9  ;;  %v5607_v21 = vpack.i.bf16 %v5594_v17, %v5592_v16  ;;  %v5610_v23 = vld [vmem:[#allocation2 + $0x168] sm:$0xff]  ;;  %v713_v9 = vrot.slane %v461_v61, 1  ;;  %v720_v61 = vrot.slane %v5485_v22, 1 }
  0x6e   : > { %442 = vst.msk [vmem:[#allocation2 + $0x1a8] sm:$0xff] %vm280_vm0, %v3871_v13  ;;  %v5612_v24 = vld [vmem:[#allocation2 + $0x170] sm:$0xff]  ;;  %v709_v13 = vsel %vm699_vm1, %v706_v55, %v708_v58  ;;  %v473_v55 = vld [vmem:[#allocation2 + $0xb8] sm:$0xff]  ;;  %v715_v58 = vrot.slane %v5537_v48, 1 }
  0x6f   : > { %3966 = vrot.lane.b32.xlu2 %v5589_v14, %s5247_s26  ;;  %443 = vst.msk [vmem:[#allocation2 + $0x1b0] sm:$0xff] %vm280_vm0, %v3872_v15  ;;  %v5618_v26 = vld [vmem:[#allocation2 + $0x148] sm:$0xff]  ;;  %v5626_v30 = vpack.i.bf16 %v5612_v24, %v5610_v23  ;;  %v469_v15 = vld [vmem:[#allocation2 + $0x98] sm:$0xff]  ;;  %v714_v0 = vsel %vm699_vm1, %v711_v8, %v713_v9  ;;  %v728_v9 = vrot.slane %v473_v55, 1 }
  0x70   : > { %446 = vst.msk [vmem:[#allocation2 + $0x1e8] sm:$0xff] %vm280_vm0, %v3879_v18  ;;  %v5620_v29 = vld [vmem:[#allocation2 + $0x150] sm:$0xff]  ;;  %v712_v18 = vsel %vm699_vm1, %v710_v4, %v711_v8  ;;  %v723_v5 = vrot.slane %v469_v15, 1  ;;  %v725_v4 = vrot.slane %v5524_v42, 1  ;;  %v726_v8 = vrot.slane %v5528_v45, 1 }
  0x71   : > { %3961 = vrot.lane.b32.xlu1 %v5599_v19, %s5247_s26  ;;  %447 = vst.msk [vmem:[#allocation2 + $0x1f0] sm:$0xff] %vm280_vm0, %v3880_v20  ;;  %v5628_v32 = vld [vmem:[#allocation2 + $0x188] sm:$0xff]  ;;  %v5634_v36 = vpack.i.bf16 %v5620_v29, %v5618_v26  ;;  %v5683_v20 = vpack.i.bf16 %v709_v13, %v707_v10  ;;  %v722_v10 = vsel %vm699_vm1, %v720_v61, %v721_v53  ;;  %v477_v61 = vld [vmem:[#allocation2 + $0xd8] sm:$0xff] }
  0x72   : > { %8934 = vst [vmem:[#allocation4_spill] sm:$0xff] %v5626_v30  ;;  %v5630_v35 = vld [vmem:[#allocation2 + $0x190] sm:$0xff]  ;;  %v724_v13 = vsel %vm699_vm1, %v721_v53, %v723_v5  ;;  %v8940_v15 = vpack.i.bf16 %v5559_v62, %v5545_v54  ;;  %v729_v5 = vsel %vm699_vm1, %v726_v8, %v728_v9  ;;  %v735_v53 = vrot.slane %v5580_v11, 1 }
  0x73   : > { %3971 = vrot.lane.b32.xlu0 %v5607_v21, %s5247_s26  ;;  %v5640_v37 = vpack.i.bf16 %v5630_v35, %v5628_v32  ;;  %v5642_v38 = vld [vmem:[#allocation2 + $0x1c8] sm:$0xff]  ;;  %8938 = vst [vmem:[#allocation8_spill] sm:$0xff] %v5683_v20  ;;  %v5707_v55 = vpack.i.bf16 %v724_v13, %v722_v10  ;;  %v736_v54 = vrot.slane %v5582_v12, 1 }
  0x74   : > { %v5644_v40 = vld [vmem:[#allocation2 + $0x1d0] sm:$0xff] }
  0x75   : > { %v5648_v44 = vld [vmem:[#allocation2 + $0x1a8] sm:$0xff]  ;;  %v5656_v49 = vpack.i.bf16 %v5644_v40, %v5642_v38  ;;  %8941 = vst [vmem:[#allocation10_spill] sm:$0xff] %v5707_v55  ;;  %v737_v10 = vsel %vm699_vm1, %v735_v53, %v736_v54 }
  0x76   : > { %v5650_v46 = vld [vmem:[#allocation2 + $0x1b0] sm:$0xff] }
  0x77   : > { %3981 = vrot.lane.b32.xlu2 %v5626_v30, %s5247_s26  ;;  %8935 = vst [vmem:[#allocation5_spill] sm:$0xff] %v5656_v49  ;;  %v5658_v50 = vld [vmem:[#allocation2 + $0x1e8] sm:$0xff]  ;;  %v5666_v59 = vpack.i.bf16 %v5650_v46, %v5648_v44  ;;  %v5690_v30 = vpack.i.bf16 %v714_v0, %v712_v18  ;;  %v481_v0 = vld [vmem:[#allocation2 + $0xf8] sm:$0xff] }
  0x78   : > { %v5660_v51 = vld [vmem:[#allocation2 + $0x1f0] sm:$0xff]  ;;  %v738_v62 = vrot.slane %v481_v0, 1  ;;  %v493_v0 = vld [vmem:[#allocation2 + $0x158] sm:$0xff] }
  0x79   : > { %3976 = vrot.lane.b32.xlu1 %v5634_v36, %s5247_s26  ;;  %8936 = vst [vmem:[#allocation6_spill] sm:$0xff] %v5666_v59  ;;  %v5672_v3 = vpack.i.bf16 %v5660_v51, %v5658_v50 }
  0x7a   : > { %8939 = vst [vmem:[#allocation9_spill] sm:$0xff] %v5690_v30  ;;  %v739_v13 = vsel %vm699_vm1, %v736_v54, %v738_v62  ;;  %v750_v54 = vrot.slane %v5618_v26, 1  ;;  %v751_v62 = vrot.slane %v5620_v29, 1 }
  0x7b   : > { %3986 = vrot.lane.b32.xlu0 %v5640_v37, %s5247_s26  ;;  %8937 = vst [vmem:[#allocation7_spill] sm:$0xff] %v5672_v3 }
  0x7f   : > { %3996 = vrot.lane.b32.xlu2 %v5656_v49, %s5247_s26  ;;  %v716_v49 = vrot.slane %v5541_v52, 1 }
  0x81   : > { %3991 = vrot.lane.b32.xlu1 %v5666_v59, %s5247_s26  ;;  %v718_v59 = vrot.slane %v465_v43, 1  ;;  %v717_v18 = vsel %vm699_vm1, %v715_v58, %v716_v49  ;;  %v485_v58 = vld [vmem:[#allocation2 + $0x118] sm:$0xff] }
  0x82   : > { %v743_v9 = vrot.slane %v485_v58, 1  ;;  %v753_v58 = vrot.slane %v493_v0, 1  ;;  %v505_v0 = vld [vmem:[#allocation2 + $0x1b8] sm:$0xff] }
  0x83   : > { %4001 = vrot.lane.b32.xlu0 %v5672_v3, %s5247_s26  ;;  %v719_v43 = vsel %vm699_vm1, %v716_v49, %v718_v59  ;;  %v730_v49 = vrot.slane %v5551_v57, 1  ;;  %v731_v59 = vrot.slane %v5555_v60, 1 }
  0x87   : > { %4011 = vrot.lane.b32.xlu2 %v5683_v20, %s5248_s8  ;;  %v727_v20 = vsel %vm699_vm1, %v725_v4, %v726_v8  ;;  %v740_v4 = vrot.slane %v5571_v6, 1  ;;  %v741_v8 = vrot.slane %v5573_v7, 1 }
  0x88   : > { %v5716_v3 = vpack.i.bf16 %v729_v5, %v727_v20  ;;  %v489_v5 = vld [vmem:[#allocation2 + $0x138] sm:$0xff] }
  0x89   : > { %4006 = vrot.lane.b32.xlu1 %v8940_v15, %s5248_s8  ;;  %v5712_v15 = vpack.i.bf16 %v719_v43, %v717_v18  ;;  %v732_v18 = vsel %vm699_vm1, %v730_v49, %v731_v59  ;;  %v742_v43 = vsel %vm699_vm1, %v740_v4, %v741_v8  ;;  %v744_v53 = vsel %vm699_vm1, %v741_v8, %v743_v9  ;;  %v497_v49 = vld [vmem:[#allocation2 + $0x178] sm:$0xff] }
  0x8a   : > { %8943 = vst [vmem:[#allocation12_spill] sm:$0xff] %v5716_v3  ;;  %v755_v4 = vrot.slane %v5610_v23, 1  ;;  %v756_v8 = vrot.slane %v5612_v24, 1  ;;  %v758_v9 = vrot.slane %v497_v49, 1  ;;  %v768_v49 = vrot.slane %v505_v0, 1  ;;  %v454_v0 = vld [vmem:[#allocation2 + $0x20] sm:$0xff] }
  0x8b   : > { %4016 = vrot.lane.b32.xlu0 %v5690_v30, %s5248_s8  ;;  %8942 = vst [vmem:[#allocation11_spill] sm:$0xff] %v5712_v15  ;;  %v733_v30 = vrot.slane %v477_v61, 1  ;;  %v5731_v61 = vpack.i.bf16 %v739_v13, %v737_v10  ;;  %v752_v10 = vsel %vm699_vm1, %v750_v54, %v751_v62  ;;  %v754_v13 = vsel %vm699_vm1, %v751_v62, %v753_v58 }
  0x8c   : > { %v759_v54 = vsel %vm699_vm1, %v756_v8, %v758_v9  ;;  %v765_v62 = vrot.slane %v5648_v44, 1  ;;  %v766_v58 = vrot.slane %v5650_v46, 1 }
  0x8d   : > { %v734_v20 = vsel %vm699_vm1, %v731_v59, %v733_v30  ;;  %8944 = vst [vmem:[#allocation13_spill] sm:$0xff] %v5731_v61  ;;  %v745_v30 = vrot.slane %v5592_v16, 1  ;;  %v746_v59 = vrot.slane %v5594_v17, 1 }
  0x8f   : > { %4026 = vrot.lane.b32.xlu2 %v5707_v55, %s5248_s8  ;;  %v5736_v55 = vpack.i.bf16 %v734_v20, %v732_v18  ;;  %v747_v18 = vsel %vm699_vm1, %v745_v30, %v746_v59  ;;  %v509_v30 = vld [vmem:[#allocation2 + $0x1d8] sm:$0xff] }
  0x90   : > { %v773_v9 = vrot.slane %v509_v30, 1  ;;  %v458_v30 = vld [vmem:[#allocation2 + $0x40] sm:$0xff] }
  0x91   : > { %4021 = vrot.lane.b32.xlu1 %v5712_v15, %s5248_s8  ;;  %8945 = vst [vmem:[#allocation14_spill] sm:$0xff] %v5736_v55  ;;  %v5740_v15 = vpack.i.bf16 %v744_v53, %v742_v43  ;;  %v757_v43 = vsel %vm699_vm1, %v755_v4, %v756_v8  ;;  %v501_v53 = vld [vmem:[#allocation2 + $0x198] sm:$0xff]  ;;  %v770_v4 = vrot.slane %v5642_v38, 1  ;;  %v771_v8 = vrot.slane %v5644_v40, 1 }
  0x93   : > { %4031 = vrot.lane.b32.xlu0 %v5716_v3, %s5248_s8  ;;  %v748_v3 = vrot.slane %v489_v5, 1  ;;  %8946 = vst [vmem:[#allocation15_spill] sm:$0xff] %v5740_v15  ;;  %v5755_v5 = vpack.i.bf16 %v754_v13, %v752_v10  ;;  %v767_v10 = vsel %vm699_vm1, %v765_v62, %v766_v58  ;;  %v769_v13 = vsel %vm699_vm1, %v766_v58, %v768_v49 }
  0x94   : > { %v774_v62 = vsel %vm699_vm1, %v771_v8, %v773_v9  ;;  %v576_v58 = vrot.slane %v454_v0, 7  ;;  %v577_v49 = vrot.slane %v5509_v34, 7  ;;  %v581_v34 = vrot.slane %v458_v30, 7  ;;  %v470_v30 = vld [vmem:[#allocation2 + $0xa0] sm:$0xff] }
  0x95   : > { %v749_v20 = vsel %vm699_vm1, %v746_v59, %v748_v3  ;;  %8947 = vst [vmem:[#allocation16_spill] sm:$0xff] %v5755_v5  ;;  %v760_v3 = vrot.slane %v5628_v32, 1  ;;  %v761_v59 = vrot.slane %v5630_v35, 1 }
  0x96   : > { %v5797_v9 = vsel %vm570_vm2, %v576_v58, %v577_v49 }
  0x97   : > { %4041 = vrot.lane.b32.xlu2 %v5731_v61, %s5248_s8  ;;  %v5760_v61 = vpack.i.bf16 %v749_v20, %v747_v18  ;;  %v762_v18 = vsel %vm699_vm1, %v760_v3, %v761_v59  ;;  %v775_v3 = vrot.slane %v5658_v50, 1  ;;  %8949 = vst [vmem:[#allocation18_spill] sm:$0xff] %v5797_v9 }
  0x99   : > { %4036 = vrot.lane.b32.xlu1 %v5736_v55, %s5248_s8  ;;  %8948 = vst [vmem:[#allocation17_spill] sm:$0xff] %v5760_v61  ;;  %v5764_v55 = vpack.i.bf16 %v759_v54, %v757_v43  ;;  %v772_v43 = vsel %vm699_vm1, %v770_v4, %v771_v8  ;;  %v513_v54 = vld [vmem:[#allocation2 + $0x1f8] sm:$0xff]  ;;  %v584_v8 = vrot.slane %v5500_v31, 7 }
  0x9a   : > { %v778_v4 = vrot.slane %v513_v54, 1  ;;  %v3899_v54 = vld [vmem:[%s5451_s30 + $0x78] sm:$0xff]   ;;  %s5258_s30 = smov 64  }
  0x9b   : > { %4046 = vrot.lane.b32.xlu0 %v5740_v15, %s5248_s8  ;;  %v763_v15 = vrot.slane %v501_v53, 1  ;;  %v5779_v53 = vpack.i.bf16 %v769_v13, %v767_v10  ;;  %v574_v10 = vrot.slane %v5326_v2, 7  ;;  %v5790_v13 = vpack.i.bf16 %v774_v62, %v772_v43  ;;  %v466_v2 = vld [vmem:[#allocation2 + $0x80] sm:$0xff] }
  0x9c   : > { %v462_v43 = vld [vmem:[#allocation2 + $0x60] sm:$0xff]  ;;  %v591_v58 = vrot.slane %v466_v2, 7 }
  0x9d   : > { %v764_v20 = vsel %vm699_vm1, %v761_v59, %v763_v15  ;;  %v8774_v15 = vrot.slane %v5322_v1, 7  ;;  %v776_v59 = vrot.slane %v5660_v51, 1 }
  0x9f   : > { %4056 = vrot.lane.b32.xlu2 %v5755_v5, %s5248_s8  ;;  %v579_v5 = vrot.slane %v5515_v39, 7  ;;  %v582_v39 = vrot.slane %v5496_v28, 7 }
  0xa1   : > { %4051 = vrot.lane.b32.xlu1 %v5760_v61, %s5248_s8  ;;  %v5784_v61 = vpack.i.bf16 %v764_v20, %v762_v18  ;;  %v5800_v0 = vsel %vm570_vm2, %v577_v49, %v579_v5  ;;  %v777_v18 = vsel %vm699_vm1, %v775_v3, %v776_v59  ;;  %v779_v20 = vsel %vm699_vm1, %v776_v59, %v778_v4 }
  0xa2   : > { %8950 = vst [vmem:[#allocation19_spill] sm:$0xff] %v5800_v0  ;;  %v5809_v28 = vsel %vm570_vm2, %v581_v34, %v582_v39  ;;  %v4085_v31 = vpack.i.bf16 %v5800_v0, %v5797_v9  ;;  %v5816_v5 = vsel %vm570_vm2, %v8774_v15, %v574_v10  ;;  %v5820_v62 = vsel %vm570_vm2, %v582_v39, %v584_v8 }
  0xa3   : > { %4061 = vrot.lane.b32.xlu0 %v5764_v55, %s5248_s8  ;;  %v592_v49 = vrot.slane %v5485_v22, 7  ;;  %v594_v3 = vrot.slane %v5489_v25, 7  ;;  %v5824_v59 = vpack.i.bf16 %v779_v20, %v777_v18  ;;  %v3883_v4 = vunpack.c.l.bf16 %v3899_v54  ;;  %v474_v20 = vld [vmem:[#allocation2 + $0xc0] sm:$0xff] }
  0xa4   : > { %v3884_v34 = vunpack.c.h.bf16 %v3899_v54  ;;  %v586_v0 = vrot.slane %v462_v43, 7  ;;  %v587_v9 = vrot.slane %v5537_v48, 7  ;;  %v589_v10 = vrot.slane %v5541_v52, 7  ;;  %v478_v52 = vld [vmem:[#allocation2 + $0xe0] sm:$0xff] }
  0xa5   : > { %v5830_v15 = vpack.i.bf16 %v5820_v62, %v5809_v28  ;;  %v596_v39 = vrot.slane %v470_v30, 7  ;;  %v597_v22 = vrot.slane %v5524_v42, 7  ;;  %448 = vst.msk [vmem:[#allocation2 + $0x208] sm:$0xff] %vm280_vm0, %v3883_v4  ;;  %v599_v25 = vrot.slane %v5528_v45, 7  ;;  %v482_v43 = vld [vmem:[#allocation2 + $0x100] sm:$0xff] }
  0xa6   : > { %v5837_v8 = vsel %vm570_vm2, %v591_v58, %v592_v49  ;;  %v5840_v48 = vsel %vm570_vm2, %v592_v49, %v594_v3  ;;  %449 = vst.msk [vmem:[#allocation2 + $0x210] sm:$0xff] %vm280_vm0, %v3884_v34  ;;  %v5846_v2 = vsel %vm570_vm2, %v586_v0, %v587_v9  ;;  %v5849_v42 = vsel %vm570_vm2, %v587_v9, %v589_v10 }
  0xa7   : > { %4071 = vrot.lane.b32.xlu2 %v5779_v53, %s5248_s8  ;;  %8951 = vst [vmem:[#allocation20_spill] sm:$0xff] %v5846_v2  ;;  %v5854_v45 = vsel %vm570_vm2, %v596_v39, %v597_v22  ;;  %v5858_v18 = vpack.i.bf16 %v5840_v48, %v5837_v8  ;;  %v606_v0 = vrot.slane %v478_v52, 7  ;;  %v607_v54 = vrot.slane %v5580_v11, 7  ;;  %v486_v52 = vld [vmem:[#allocation2 + $0x120] sm:$0xff] }
  0xa8   : > { %v609_v9 = vrot.slane %v5582_v12, 7  ;;  %v5867_v30 = vpack.i.bf16 %v5849_v42, %v5846_v2  ;;  %v601_v58 = vrot.slane %v474_v20, 7  ;;  %v602_v49 = vrot.slane %v5551_v57, 7 }
  0xa9   : > { %4066 = vrot.lane.b32.xlu1 %v5784_v61, %s5248_s8  ;;  %v604_v3 = vrot.slane %v5555_v60, 7  ;;  %v611_v34 = vrot.slane %v482_v43, 7  ;;  %v612_v11 = vrot.slane %v5571_v6, 7  ;;  %v614_v12 = vrot.slane %v5573_v7, 7  ;;  %v490_v60 = vld [vmem:[#allocation2 + $0x140] sm:$0xff] }
  0xaa   : > { %v5880_v10 = vsel %vm570_vm2, %v606_v0, %v607_v54  ;;  %v5883_v39 = vsel %vm570_vm2, %v607_v54, %v609_v9  ;;  %v494_v43 = vld [vmem:[#allocation2 + $0x160] sm:$0xff]  ;;  %v621_v0 = vrot.slane %v490_v60, 7  ;;  %v622_v54 = vrot.slane %v5618_v26, 7 }
  0xab   : > { %4076 = vrot.lane.b32.xlu0 %v5790_v13, %s5248_s8  ;;  %8952 = vst [vmem:[#allocation21_spill] sm:$0xff] %v5880_v10  ;;  %v5898_v6 = vsel %vm570_vm2, %v611_v34, %v612_v11  ;;  %v5902_v7 = vpack.i.bf16 %v5883_v39, %v5880_v10  ;;  %v5905_v20 = vsel %vm570_vm2, %v612_v11, %v614_v12  ;;  %v624_v9 = vrot.slane %v5620_v29, 7 }
  0xac   : > { %8953 = vst [vmem:[#allocation22_spill] sm:$0xff] %v5883_v39  ;;  %v619_v34 = vrot.slane %v5594_v17, 7  ;;  %v5917_v2 = vpack.i.bf16 %v5905_v20, %v5898_v6  ;;  %v626_v11 = vrot.slane %v494_v43, 7  ;;  %v627_v26 = vrot.slane %v5610_v23, 7  ;;  %v502_v17 = vld [vmem:[#allocation2 + $0x1a0] sm:$0xff] }
  0xad   : > { %v629_v29 = vrot.slane %v5612_v24, 7  ;;  %v5924_v12 = vsel %vm570_vm2, %v621_v0, %v622_v54  ;;  %v5927_v60 = vsel %vm570_vm2, %v622_v54, %v624_v9  ;;  %v498_v0 = vld [vmem:[#allocation2 + $0x180] sm:$0xff]  ;;  %v637_v10 = vrot.slane %v5648_v44, 7 }
  0xae   : > { %8955 = vst [vmem:[#allocation24_spill] sm:$0xff] %v5924_v12  ;;  %v5942_v23 = vsel %vm570_vm2, %v626_v11, %v627_v26  ;;  %v5946_v24 = vpack.i.bf16 %v5927_v60, %v5924_v12  ;;  %v506_v9 = vld [vmem:[#allocation2 + $0x1c0] sm:$0xff]  ;;  %v631_v11 = vrot.slane %v498_v0, 7  ;;  %v632_v39 = vrot.slane %v5628_v32, 7 }
  0xaf   : > { %4086 = vrot.lane.b32.xlu2 %v4085_v31, %s5249_s9  ;;  %v5861_v31 = vsel %vm570_vm2, %v597_v22, %v599_v25  ;;  %v5890_v22 = vsel %vm570_vm2, %v601_v58, %v602_v49  ;;  %v5893_v25 = vsel %vm570_vm2, %v602_v49, %v604_v3  ;;  %v616_v49 = vrot.slane %v486_v52, 7  ;;  %8956 = vst [vmem:[#allocation25_spill] sm:$0xff] %v5927_v60  ;;  %v514_v0 = vld [vmem:[#allocation2 + $0x200] sm:$0xff] }
  0xb0   : > { %v5873_v4 = vpack.i.bf16 %v5861_v31, %v5854_v45  ;;  %8954 = vst [vmem:[#allocation23_spill] sm:$0xff] %v5890_v22  ;;  %v5911_v58 = vpack.i.bf16 %v5893_v25, %v5890_v22  ;;  %v617_v3 = vrot.slane %v5592_v16, 7  ;;  %v5949_v54 = vsel %vm570_vm2, %v627_v26, %v629_v29 }
  0xb1   : > { %4081 = vrot.lane.b32.xlu1 %v5824_v59, %s5248_s8  ;;  %8959 = vst [vmem:[#allocation28_spill] sm:$0xff] %v5942_v23  ;;  %v634_v12 = vrot.slane %v5630_v35, 7  ;;  %v5961_v60 = vpack.i.bf16 %v5949_v54, %v5942_v23  ;;  %v641_v26 = vrot.slane %v506_v9, 7  ;;  %v642_v44 = vrot.slane %v5642_v38, 7  ;;  %v5979_v9 = vld [vmem:[#allocation2 + $0x208] sm:$0xff]  ;;  %v5981_v38 = vld [vmem:[#allocation2 + $0x210] sm:$0xff] }
  0xb2   : > { %v5934_v52 = vsel %vm570_vm2, %v616_v49, %v617_v3  ;;  %v5937_v43 = vsel %vm570_vm2, %v617_v3, %v619_v34  ;;  %8960 = vst [vmem:[#allocation29_spill] sm:$0xff] %v5949_v54  ;;  %v636_v49 = vrot.slane %v502_v17, 7  ;;  %v639_v3 = vrot.slane %v5650_v46, 7 }
  0xb3   : > { %4091 = vrot.lane.b32.xlu0 %v5830_v15, %s5249_s9  ;;  %8957 = vst [vmem:[#allocation26_spill] sm:$0xff] %v5934_v52  ;;  %v5955_v34 = vpack.i.bf16 %v5937_v43, %v5934_v52  ;;  %v644_v46 = vrot.slane %v5644_v40, 7  ;;  %v8963_v35 = vmov 0.0   ;;  %v5986_v40 = vsel %vm570_vm2, %v631_v11, %v632_v39  ;;  %v510_v11 = vld [vmem:[#allocation2 + $0x1e0] sm:$0xff] }
  0xb4   : > { %8958 = vst [vmem:[#allocation27_spill] sm:$0xff] %v5937_v43  ;;  %v5968_v29 = vsel %vm570_vm2, %v636_v49, %v637_v10  ;;  %v5971_v32 = vsel %vm570_vm2, %v637_v10, %v639_v3  ;;  %v5989_v10 = vsel %vm570_vm2, %v632_v39, %v634_v12  ;;  %v5995_v49 = vpop.permute.xlu0 %3926  ;;  %v5998_v3 = vsel %vm570_vm2, %v641_v26, %v642_v44 }
  0xb5   : > { %8961 = vst [vmem:[#allocation30_spill] sm:$0xff] %v5968_v29  ;;  %v6002_v23 = vpack.i.bf16 %v5971_v32, %v5968_v29  ;;  %v6007_v39 = vsel %vm570_vm2, %v642_v44, %v644_v46  ;;  %v783_v12 = vrot.slane %v514_v0, 7  ;;  %v784_v54 = vrot.slane %v5979_v9, 7 }
  0xb6   : > { %8962 = vst [vmem:[#allocation31_spill] sm:$0xff] %v5971_v32  ;;  %v786_v52 = vrot.slane %v5981_v38, 7  ;;  %v6015_v26 = vpack.i.bf16 %v5989_v10, %v5986_v40  ;;  %v646_v29 = vrot.slane %v510_v11, 7  ;;  %v647_v32 = vrot.slane %v5658_v50, 7 }
  0xb7   : > { %4101 = vrot.lane.b32.xlu2 %v5858_v18, %s5249_s9  ;;  %2121 = vst.msk [vmem:[#allocation3] sm:$0xff] %vm1608_vm3, %v8963_v35  ;;  %v649_v44 = vrot.slane %v5660_v51, 7  ;;  %v6025_v46 = vpack.i.bf16 %v6007_v39, %v5998_v3  ;;  %v785_v0 = vsel %vm570_vm2, %v783_v12, %v784_v54 }
  0xb8   : > { %2122 = vst.msk [vmem:[#allocation3 + $0x8] sm:$0xff] %vm1608_vm3, %v8963_v35  ;;  %v787_v11 = vsel %vm570_vm2, %v784_v54, %v786_v52  ;;  %v6042_v51 = vsel %vm570_vm2, %v646_v29, %v647_v32 }
  0xb9   : > { %4096 = vrot.lane.b32.xlu1 %v5867_v30, %s5249_s9  ;;  %v5887_v57 = vpop.permute.xlu2 %3946  ;;  %8964 = vst [vmem:[#allocation32_spill] sm:$0xff] %v5986_v40  ;;  %v6053_v54 = vpack.i.bf16 %v787_v11, %v785_v0 }
  0xba   : > { %8965 = vst [vmem:[#allocation33_spill] sm:$0xff] %v5989_v10  ;;  %v8989_v10 = vld [vmem:[#allocation8_spill] sm:$0xff] }
  0xbb   : > { %4106 = vrot.lane.b32.xlu0 %v5873_v4, %s5249_s9  ;;  %2123 = vst.msk [vmem:[#allocation3 + $0x10] sm:$0xff] %vm1608_vm3, %v8963_v35 }
  0xbc   : > { %8966 = vst [vmem:[#allocation34_spill] sm:$0xff] %v5998_v3  ;;  %v6045_v3 = vsel %vm570_vm2, %v647_v32, %v649_v44 }
  0xbd   : > { %2124 = vst.msk [vmem:[#allocation3 + $0x18] sm:$0xff] %vm1608_vm3, %v8963_v35  ;;  %v6063_v32 = vpack.i.bf16 %v6045_v3, %v6042_v51 }
  0xbe   : > { %8967 = vst [vmem:[#allocation35_spill] sm:$0xff] %v6007_v39  ;;  %v8980_v39 = vld [vmem:[#allocation6_spill] sm:$0xff] }
  0xbf   : > { %4116 = vrot.lane.b32.xlu2 %v5902_v7, %s5249_s9  ;;  %2125 = vst.msk [vmem:[#allocation3 + $0x20] sm:$0xff] %vm1608_vm3, %v8963_v35 }
  0xc0   : > { %2126 = vst.msk [vmem:[#allocation3 + $0x28] sm:$0xff] %vm1608_vm3, %v8963_v35 }
  0xc1   : > { %4111 = vrot.lane.b32.xlu1 %v5911_v58, %s5249_s9  ;;  %v5931_v16 = vpop.permute.xlu2 %3951  ;;  %2127 = vst.msk [vmem:[#allocation3 + $0x30] sm:$0xff] %vm1608_vm3, %v8963_v35 }
  0xc2   : > { %2128 = vst.msk [vmem:[#allocation3 + $0x38] sm:$0xff] %vm1608_vm3, %v8963_v35 }
  0xc3   : > { %4121 = vrot.lane.b32.xlu0 %v5917_v2, %s5249_s9  ;;  %2129 = vst.msk [vmem:[#allocation3 + $0x40] sm:$0xff] %vm1608_vm3, %v8963_v35 }
  0xc4   : > { %2130 = vst.msk [vmem:[#allocation3 + $0x48] sm:$0xff] %vm1608_vm3, %v8963_v35 }
  0xc5   : > { %8969 = vst [vmem:[#allocation37_spill] sm:$0xff] %v6042_v51 }
  0xc6   : > { %8970 = vst [vmem:[#allocation38_spill] sm:$0xff] %v6045_v3  ;;  %v8997_v3 = vld [vmem:[#allocation14_spill] sm:$0xff] }
  0xc7   : > { %4131 = vrot.lane.b32.xlu2 %v5946_v24, %s5249_s9  ;;  %2131 = vst.msk [vmem:[#allocation3 + $0x50] sm:$0xff] %vm1608_vm3, %v8963_v35 }
  0xc8   : > { %2132 = vst.msk [vmem:[#allocation3 + $0x58] sm:$0xff] %vm1608_vm3, %v8963_v35 }
  0xc9   : > { %4126 = vrot.lane.b32.xlu1 %v5955_v34, %s5249_s9  ;;  %v5977_v17 = vpop.permute.xlu2 %3966  ;;  %2133 = vst.msk [vmem:[#allocation3 + $0x60] sm:$0xff] %vm1608_vm3, %v8963_v35 }
  0xca   : > { %2134 = vst.msk [vmem:[#allocation3 + $0x68] sm:$0xff] %vm1608_vm3, %v8963_v35 }
  0xcb   : > { %4136 = vrot.lane.b32.xlu0 %v5961_v60, %s5249_s9  ;;  %2135 = vst.msk [vmem:[#allocation3 + $0x70] sm:$0xff] %vm1608_vm3, %v8963_v35 }
  0xcc   : > { %2136 = vst.msk [vmem:[#allocation3 + $0x78] sm:$0xff] %vm1608_vm3, %v8963_v35 }
  0xcd   : > { %2137 = vst.msk [vmem:[#allocation3 + $0x80] sm:$0xff] %vm1608_vm3, %v8963_v35 }
  0xce   : > { %2138 = vst.msk [vmem:[#allocation3 + $0x88] sm:$0xff] %vm1608_vm3, %v8963_v35 }
  0xcf   : > { %4146 = vrot.lane.b32.xlu2 %v6002_v23, %s5249_s9  ;;  %2139 = vst.msk [vmem:[#allocation3 + $0x90] sm:$0xff] %vm1608_vm3, %v8963_v35 }
  0xd0   : > { %2140 = vst.msk [vmem:[#allocation3 + $0x98] sm:$0xff] %vm1608_vm3, %v8963_v35 }
  0xd1   : > { %4141 = vrot.lane.b32.xlu1 %v6015_v26, %s5249_s9  ;;  %v6037_v50 = vpop.permute.xlu2 %3981  ;;  %2141 = vst.msk [vmem:[#allocation3 + $0xa0] sm:$0xff] %vm1608_vm3, %v8963_v35 }
  0xd2   : > { %8968 = vst [vmem:[#allocation36_spill] sm:$0xff] %v6037_v50  ;;  %v8991_v50 = vld [vmem:[#allocation11_spill] sm:$0xff] }
  0xd3   : > { %4151 = vrot.lane.b32.xlu0 %v6025_v46, %s5249_s9  ;;  %v6051_v52 = vpop.permute.xlu1 %3936  ;;  %2142 = vst.msk [vmem:[#allocation3 + $0xa8] sm:$0xff] %vm1608_vm3, %v8963_v35 }
  0xd4   : > { %2143 = vst.msk [vmem:[#allocation3 + $0xb0] sm:$0xff] %vm1608_vm3, %v8963_v35 }
  0xd5   : > { %v6059_v29 = vpop.permute.xlu0 %3931  ;;  %2144 = vst.msk [vmem:[#allocation3 + $0xb8] sm:$0xff] %vm1608_vm3, %v8963_v35 }
  0xd6   : > { %2145 = vst.msk [vmem:[#allocation3 + $0xc0] sm:$0xff] %vm1608_vm3, %v8963_v35 }
  0xd7   : > { %4161 = vrot.lane.b32.xlu2 %v6053_v54, %s5249_s9  ;;  %2146 = vst.msk [vmem:[#allocation3 + $0xc8] sm:$0xff] %vm1608_vm3, %v8963_v35 }
  0xd8   : > { %2147 = vst.msk [vmem:[#allocation3 + $0xd0] sm:$0xff] %vm1608_vm3, %v8963_v35 }
  0xd9   : > { %4156 = vrot.lane.b32.xlu1 %v6063_v32, %s5249_s9  ;;  %v6077_v12 = vpop.permute.xlu2 %3996  ;;  %2148 = vst.msk [vmem:[#allocation3 + $0xd8] sm:$0xff] %vm1608_vm3, %v8963_v35 }
  0xda   : > { %8971 = vst [vmem:[#allocation39_spill] sm:$0xff] %v6077_v12  ;;  %v6213_v12 = vpack.i.bf16 %v5981_v38, %v5979_v9 }
  0xdb   : > { %4166 = vrot.lane.b32.xlu0 %v5522_v41, %s5250_s10  ;;  %v6085_v44 = vpop.permute.xlu1 %3941  ;;  %2149 = vst.msk [vmem:[#allocation3 + $0xe0] sm:$0xff] %vm1608_vm3, %v8963_v35 }
  0xdc   : > { %8972 = vst [vmem:[#allocation40_spill] sm:$0xff] %v6085_v44 }
  0xdd   : > { %v6091_v0 = vpop.permute.xlu0 %3956  ;;  %2150 = vst.msk [vmem:[#allocation3 + $0xe8] sm:$0xff] %vm1608_vm3, %v8963_v35 }
  0xde   : > { %2151 = vst.msk [vmem:[#allocation3 + $0xf0] sm:$0xff] %vm1608_vm3, %v8963_v35 }
  0xdf   : > { %4176 = vrot.lane.b32.xlu2 %v5549_v56, %s5250_s10  ;;  %2152 = vst.msk [vmem:[#allocation3 + $0xf8] sm:$0xff] %vm1608_vm3, %v8963_v35 }
  0xe0   : > { %2153 = vst.msk [vmem:[#allocation3 + $0x100] sm:$0xff] %vm1608_vm3, %v8963_v35 }
  0xe1   : > { %4171 = vrot.lane.b32.xlu1 %v5507_v33, %s5250_s10  ;;  %v6105_v41 = vpop.permute.xlu2 %4011  ;;  %2154 = vst.msk [vmem:[#allocation3 + $0x108] sm:$0xff] %vm1608_vm3, %v8963_v35 }
  0xe2   : > { %2155 = vst.msk [vmem:[#allocation3 + $0x110] sm:$0xff] %vm1608_vm3, %v8963_v35 }
  0xe3   : > { %4181 = vrot.lane.b32.xlu0 %v5494_v27, %s5250_s10  ;;  %v6113_v56 = vpop.permute.xlu1 %3961  ;;  %2156 = vst.msk [vmem:[#allocation3 + $0x118] sm:$0xff] %vm1608_vm3, %v8963_v35 }
  0xe4   : > { %2157 = vst.msk [vmem:[#allocation3 + $0x120] sm:$0xff] %vm1608_vm3, %v8963_v35 }
  0xe5   : > { %v6119_v33 = vpop.permute.xlu0 %3971  ;;  %2158 = vst.msk [vmem:[#allocation3 + $0x128] sm:$0xff] %vm1608_vm3, %v8963_v35 }
  0xe6   : > { %2159 = vst.msk [vmem:[#allocation3 + $0x130] sm:$0xff] %vm1608_vm3, %v8963_v35 }
  0xe7   : > { %4191 = vrot.lane.b32.xlu2 %v5565_v63, %s5250_s10  ;;  %2160 = vst.msk [vmem:[#allocation3 + $0x138] sm:$0xff] %vm1608_vm3, %v8963_v35 }
  0xe8   : > { %2161 = vst.msk [vmem:[#allocation3 + $0x140] sm:$0xff] %vm1608_vm3, %v8963_v35 }
  0xe9   : > { %4186 = vrot.lane.b32.xlu1 %v5535_v47, %s5250_s10  ;;  %v6135_v27 = vpop.permute.xlu2 %4026  ;;  %2162 = vst.msk [vmem:[#allocation3 + $0x148] sm:$0xff] %vm1608_vm3, %v8963_v35 }
  0xea   : > { %2163 = vst.msk [vmem:[#allocation3 + $0x150] sm:$0xff] %vm1608_vm3, %v8963_v35 }
  0xeb   : > { %4196 = vrot.lane.b32.xlu0 %v5599_v19, %s5250_s10  ;;  %v6143_v63 = vpop.permute.xlu1 %3976  ;;  %2164 = vst.msk [vmem:[#allocation3 + $0x158] sm:$0xff] %vm1608_vm3, %v8963_v35 }
  0xec   : > { %8973 = vst [vmem:[#allocation41_spill] sm:$0xff] %v6143_v63 }
  0xed   : > { %v6149_v47 = vpop.permute.xlu0 %3986  ;;  %2165 = vst.msk [vmem:[#allocation3 + $0x160] sm:$0xff] %vm1608_vm3, %v8963_v35 }
  0xee   : > { %8974 = vst [vmem:[#allocation42_spill] sm:$0xff] %v6149_v47 }
  0xef   : > { %4206 = vrot.lane.b32.xlu2 %v5607_v21, %s5250_s10  ;;  %2166 = vst.msk [vmem:[#allocation3 + $0x168] sm:$0xff] %vm1608_vm3, %v8963_v35 }
  0xf0   : > { %2167 = vst.msk [vmem:[#allocation3 + $0x170] sm:$0xff] %vm1608_vm3, %v8963_v35 }
  0xf1   : > { %4201 = vrot.lane.b32.xlu1 %v5589_v14, %s5250_s10  ;;  %v6163_v19 = vpop.permute.xlu2 %4041  ;;  %2168 = vst.msk [vmem:[#allocation3 + $0x178] sm:$0xff] %vm1608_vm3, %v8963_v35 }
  0xf2   : > { %8975 = vst [vmem:[#allocation43_spill] sm:$0xff] %v6163_v19 }
  0xf3   : > { %4211 = vrot.lane.b32.xlu0 %v5634_v36, %s5250_s10  ;;  %v6171_v21 = vpop.permute.xlu1 %3991  ;;  %2169 = vst.msk [vmem:[#allocation3 + $0x180] sm:$0xff] %vm1608_vm3, %v8963_v35  ;;  %v8978_v36 = vld [vmem:[#allocation4_spill] sm:$0xff] }
  0xf4   : > { %8976 = vst [vmem:[#allocation44_spill] sm:$0xff] %v6171_v21  ;;  %v8984_v21 = vld [vmem:[#allocation5_spill] sm:$0xff] }
  0xf5   : > { %v6177_v14 = vpop.permute.xlu0 %4001  ;;  %2170 = vst.msk [vmem:[#allocation3 + $0x188] sm:$0xff] %vm1608_vm3, %v8963_v35 }
  0xf6   : > { %8977 = vst [vmem:[#allocation45_spill] sm:$0xff] %v6177_v14 }
  0xf7   : > { %4221 = vrot.lane.b32.xlu2 %v5640_v37, %s5250_s10  ;;  %2171 = vst.msk [vmem:[#allocation3 + $0x190] sm:$0xff] %vm1608_vm3, %v8963_v35 }
  0xf8   : > { %2172 = vst.msk [vmem:[#allocation3 + $0x198] sm:$0xff] %vm1608_vm3, %v8963_v35 }
  0xf9   : > { %4216 = vrot.lane.b32.xlu1 %v8978_v36, %s5250_s10  ;;  %v6191_v11 = vpop.permute.xlu2 %4056  ;;  %2173 = vst.msk [vmem:[#allocation3 + $0x1a0] sm:$0xff] %vm1608_vm3, %v8963_v35 }
  0xfa   : > { %8979 = vst [vmem:[#allocation4_spill] sm:$0xff] %v6191_v11  ;;  %v8994_v11 = vld [vmem:[#allocation12_spill] sm:$0xff] }
  0xfb   : > { %4226 = vrot.lane.b32.xlu0 %v8980_v39, %s5250_s10  ;;  %v6199_v37 = vpop.permute.xlu1 %4006  ;;  %2174 = vst.msk [vmem:[#allocation3 + $0x1a8] sm:$0xff] %vm1608_vm3, %v8963_v35  ;;  %v8983_v39 = vld [vmem:[#allocation7_spill] sm:$0xff] }
  0xfc   : > { %8981 = vst [vmem:[#allocation6_spill] sm:$0xff] %v6199_v37  ;;  %v9003_v37 = vld [vmem:[#allocation17_spill] sm:$0xff] }
  0xfd   : > { %v6205_v36 = vpop.permute.xlu0 %4016  ;;  %2175 = vst.msk [vmem:[#allocation3 + $0x1b0] sm:$0xff] %vm1608_vm3, %v8963_v35 }
  0xfe   : > { %8982 = vst [vmem:[#allocation46_spill] sm:$0xff] %v6205_v36  ;;  %v8995_v36 = vld [vmem:[#allocation10_spill] sm:$0xff] }
  0xff   : > { %2176 = vst.msk [vmem:[#allocation3 + $0x1b8] sm:$0xff] %vm1608_vm3, %v8963_v35  ;;  %4236 = vrot.lane.b32.xlu2 %v8983_v39, %s5250_s10 }
 0x100   : > { %2177 = vst.msk [vmem:[#allocation3 + $0x1c0] sm:$0xff] %vm1608_vm3, %v8963_v35 }
 0x101   : > { %2178 = vst.msk [vmem:[#allocation3 + $0x1c8] sm:$0xff] %vm1608_vm3, %v8963_v35  ;;  %4231 = vrot.lane.b32.xlu1 %v8984_v21, %s5250_s10  ;;  %v6223_v40 = vpop.permute.xlu2 %4071 }
 0x102   : > { %8985 = vst [vmem:[#allocation7_spill] sm:$0xff] %v6223_v40  ;;  %v8988_v40 = vld [vmem:[#allocation9_spill] sm:$0xff] }
 0x103   : > { %2179 = vst.msk [vmem:[#allocation3 + $0x1d0] sm:$0xff] %vm1608_vm3, %v8963_v35  ;;  %4241 = vrot.lane.b32.xlu0 %v6213_v12, %s5250_s10  ;;  %v6231_v39 = vpop.permute.xlu1 %4021 }
 0x104   : > { %2180 = vst.msk [vmem:[#allocation3 + $0x1d8] sm:$0xff] %vm1608_vm3, %v8963_v35 }
 0x105   : > { %8986 = vst [vmem:[#allocation5_spill] sm:$0xff] %v6231_v39  ;;  %v6237_v21 = vpop.permute.xlu0 %4031 }
 0x106   : > { %2181 = vst.msk [vmem:[#allocation3 + $0x1e0] sm:$0xff] %vm1608_vm3, %v8963_v35 }
 0x107   : > { %2182 = vst.msk [vmem:[#allocation3 + $0x1e8] sm:$0xff] %vm1608_vm3, %v8963_v35  ;;  %4251 = vrot.lane.b32.xlu2 %v8988_v40, %s5251_s11 }
 0x108   : > { %8987 = vst [vmem:[#allocation47_spill] sm:$0xff] %v6237_v21 }
 0x109   : > { %2183 = vst.msk [vmem:[#allocation3 + $0x1f0] sm:$0xff] %vm1608_vm3, %v8963_v35  ;;  %4246 = vrot.lane.b32.xlu1 %v8989_v10, %s5251_s11  ;;  %v6251_v47 = vpop.permute.xlu2 %4086 }
 0x10a   : > { %2184 = vst.msk [vmem:[#allocation3 + $0x1f8] sm:$0xff] %vm1608_vm3, %v8963_v35 }
 0x10b   : > { %2185 = vst.msk [vmem:[#allocation3 + $0x200] sm:$0xff] %vm1608_vm3, %v8963_v35  ;;  %4256 = vrot.lane.b32.xlu0 %v8991_v50, %s5251_s11  ;;  %v6259_v39 = vpop.permute.xlu1 %4036 }
 0x10c   : > { %2186 = vst.msk [vmem:[#allocation3 + $0x208] sm:$0xff] %vm1608_vm3, %v8963_v35 }
 0x10d   : > { %8990 = vst [vmem:[#allocation9_spill] sm:$0xff] %v6251_v47  ;;  %v6265_v10 = vpop.permute.xlu0 %4046 }
 0x10e   : > { %2187 = vst.msk [vmem:[#allocation3 + $0x210] sm:$0xff] %vm1608_vm3, %v8963_v35 }
 0x10f   : > { %2188 = vst.msk [vmem:[#allocation3 + $0x218] sm:$0xff] %vm1608_vm3, %v8963_v35  ;;  %4266 = vrot.lane.b32.xlu2 %v8994_v11, %s5251_s11 }
 0x110   : > { %8992 = vst [vmem:[#allocation8_spill] sm:$0xff] %v6259_v39  ;;  %v9000_v39 = vld [vmem:[#allocation15_spill] sm:$0xff] }
 0x111   : > { %2189 = vst.msk [vmem:[#allocation3 + $0x220] sm:$0xff] %vm1608_vm3, %v8963_v35  ;;  %4261 = vrot.lane.b32.xlu1 %v8995_v36, %s5251_s11  ;;  %v6275_v51 = vpop.permute.xlu2 %4101 }
 0x112   : > { %2190 = vst.msk [vmem:[#allocation3 + $0x228] sm:$0xff] %vm1608_vm3, %v8963_v35 }
 0x113   : > { %8993 = vst [vmem:[#allocation11_spill] sm:$0xff] %v6265_v10  ;;  %4271 = vrot.lane.b32.xlu0 %v8997_v3, %s5251_s11  ;;  %v6279_v47 = vpop.permute.xlu1 %4051 }
 0x114   : > { %2191 = vst.msk [vmem:[#allocation3 + $0x230] sm:$0xff] %vm1608_vm3, %v8963_v35 }
 0x115   : > { %2192 = vst.msk [vmem:[#allocation3 + $0x238] sm:$0xff] %vm1608_vm3, %v8963_v35  ;;  %v6281_v10 = vpop.permute.xlu0 %4061  ;;  %v9001_v35 = vld [vmem:[#allocation13_spill] sm:$0xff] }
 0x116   : > { %8996 = vst [vmem:[#allocation12_spill] sm:$0xff] %v6275_v51 }
 0x117   : > { %8998 = vst [vmem:[#allocation10_spill] sm:$0xff] %v6279_v47  ;;  %4281 = vrot.lane.b32.xlu2 %v9000_v39, %s5251_s11 }
 0x118   : > { %8999 = vst [vmem:[#allocation14_spill] sm:$0xff] %v6281_v10  ;;  %v9006_v10 = vld [vmem:[#allocation16_spill] sm:$0xff] }
 0x119   : > { %4276 = vrot.lane.b32.xlu1 %v9001_v35, %s5251_s11  ;;  %v6287_v21 = vpop.permute.xlu2 %4116 }
 0x11a   : > { %9002 = vst [vmem:[#allocation15_spill] sm:$0xff] %v6287_v21  ;;  %v517_v21 = vld [vmem:[#allocation2 + $0x218] sm:$0xff] }
 0x11b   : > { %4286 = vrot.lane.b32.xlu0 %v9003_v37, %s5251_s11  ;;  %v6291_v14 = vpop.permute.xlu1 %4066  ;;  %v792_v43 = vrot.slane %v517_v21, 1 }
 0x11c   : > { %9004 = vst [vmem:[#allocation13_spill] sm:$0xff] %v6291_v14  ;;  %v789_v14 = vrot.slane %v5979_v9, 1 }
 0x11d   : > { %v6293_v51 = vpop.permute.xlu0 %4076 }
 0x11e   : > { %9005 = vst [vmem:[#allocation17_spill] sm:$0xff] %v6293_v51  ;;  %v790_v51 = vrot.slane %v5981_v38, 1 }
 0x11f   : > { %4296 = vrot.lane.b32.xlu2 %v5764_v55, %s5251_s11 }
 0x120   : > { %v791_v22 = vsel %vm699_vm1, %v789_v14, %v790_v51  ;;  %v6367_v14 = vld [vmem:[#allocation2 + $0x228] sm:$0xff] }
 0x121   : > { %4291 = vrot.lane.b32.xlu1 %v9006_v10, %s5251_s11  ;;  %v6299_v47 = vpop.permute.xlu2 %4131 }
 0x122   : > { %9007 = vst [vmem:[#allocation16_spill] sm:$0xff] %v6299_v47 }
 0x123   : > { %4301 = vrot.lane.b32.xlu0 %v5784_v61, %s5251_s11  ;;  %v6303_v63 = vpop.permute.xlu1 %4081 }
 0x124   : > { %9008 = vst [vmem:[#allocation48_spill] sm:$0xff] %v6303_v63  ;;  %v793_v63 = vsel %vm699_vm1, %v790_v51, %v792_v43 }
 0x125   : > { %v6305_v19 = vpop.permute.xlu0 %4091  ;;  %v6323_v38 = vpack.i.bf16 %v793_v63, %v791_v22 }
 0x126   : > { %9009 = vst [vmem:[#allocation49_spill] sm:$0xff] %v6305_v19 }
 0x127   : > { %4311 = vrot.lane.b32.xlu2 %v5790_v13, %s5251_s11 }
 0x129   : > { %4306 = vrot.lane.b32.xlu1 %v5779_v53, %s5251_s11  ;;  %v6313_v47 = vpop.permute.xlu2 %4146 }
 0x12a   : > { %9010 = vst [vmem:[#allocation50_spill] sm:$0xff] %v6313_v47 }
 0x12b   : > { %4316 = vrot.lane.b32.xlu0 %v5824_v59, %s5251_s11  ;;  %v6319_v19 = vpop.permute.xlu1 %4096 }
 0x12c   : > { %9011 = vst [vmem:[#allocation51_spill] sm:$0xff] %v6319_v19  ;;  %v5210_v19 = vld [vmem:[#allocation2 + $0x48] sm:$0xff] }
 0x12d   : > { %v6321_v9 = vpop.permute.xlu0 %4106 }
 0x12f   : > { %4326 = vrot.lane.b32.xlu2 %v5830_v15, %s5252_s12 }
 0x131   : > { %4321 = vrot.lane.b32.xlu1 %v6323_v38, %s5251_s11  ;;  %v6329_v21 = vpop.permute.xlu2 %4161 }
 0x133   : > { %4331 = vrot.lane.b32.xlu0 %v5867_v30, %s5252_s12  ;;  %v6333_v43 = vpop.permute.xlu1 %4111 }
 0x135   : > { %v6335_v51 = vpop.permute.xlu0 %4121 }
 0x137   : > { %4341 = vrot.lane.b32.xlu2 %v5873_v4, %s5252_s12 }
 0x139   : > { %4336 = vrot.lane.b32.xlu1 %v5858_v18, %s5252_s12  ;;  %v6341_v22 = vpop.permute.xlu2 %4176 }
 0x13a   : > { %9012 = vst [vmem:[#allocation52_spill] sm:$0xff] %v6341_v22 }
 0x13b   : > { %4346 = vrot.lane.b32.xlu0 %v5911_v58, %s5252_s12  ;;  %v6345_v15 = vpop.permute.xlu1 %4126 }
 0x13d   : > { %v6347_v63 = vpop.permute.xlu0 %4136 }
 0x13e   : > { %9013 = vst [vmem:[#allocation53_spill] sm:$0xff] %v6347_v63 }
 0x13f   : > { %4356 = vrot.lane.b32.xlu2 %v5917_v2, %s5252_s12  ;;  %v518_v2 = vld [vmem:[#allocation2 + $0x220] sm:$0xff] }
 0x140   : > { %v797_v47 = vrot.slane %v518_v2, 7 }
 0x141   : > { %4351 = vrot.lane.b32.xlu1 %v5902_v7, %s5252_s12  ;;  %v6353_v30 = vpop.permute.xlu2 %4191  ;;  %v6369_v7 = vld [vmem:[#allocation2 + $0x230] sm:$0xff] }
 0x142   : > { %9014 = vst [vmem:[#allocation54_spill] sm:$0xff] %v6353_v30  ;;  %v5234_v30 = vld [vmem:[#allocation2 + $0x1c8] sm:$0xff] }
 0x143   : > { %4361 = vrot.lane.b32.xlu0 %v5955_v34, %s5252_s12  ;;  %v6357_v18 = vpop.permute.xlu1 %4141 }
 0x144   : > { %9015 = vst [vmem:[#allocation55_spill] sm:$0xff] %v6357_v18 }
 0x145   : > { %v6359_v4 = vpop.permute.xlu0 %4151 }
 0x146   : > { %9016 = vst [vmem:[#allocation56_spill] sm:$0xff] %v6359_v4  ;;  %v798_v4 = vrot.slane %v6367_v14, 7 }
 0x147   : > { %4371 = vrot.lane.b32.xlu2 %v5961_v60, %s5252_s12  ;;  %v800_v60 = vrot.slane %v6369_v7, 7 }
 0x149   : > { %4366 = vrot.lane.b32.xlu1 %v5946_v24, %s5252_s12  ;;  %v6365_v58 = vpop.permute.xlu2 %4206  ;;  %v799_v24 = vsel %vm570_vm2, %v797_v47, %v798_v4  ;;  %v801_v63 = vsel %vm570_vm2, %v798_v4, %v800_v60  ;;  %v5213_v4 = vld [vmem:[#allocation2 + $0x90] sm:$0xff] }
 0x14a   : > { %9017 = vst [vmem:[#allocation57_spill] sm:$0xff] %v6365_v58  ;;  %v5222_v58 = vld [vmem:[#allocation2 + $0x108] sm:$0xff] }
 0x14b   : > { %4376 = vrot.lane.b32.xlu0 %v6015_v26, %s5252_s12  ;;  %v6373_v34 = vpop.permute.xlu1 %4156 }
 0x14c   : > { %9018 = vst [vmem:[#allocation58_spill] sm:$0xff] %v6373_v34  ;;  %v4400_v34 = vpack.i.bf16 %v801_v63, %v799_v24  ;;  %v5214_v24 = vld [vmem:[#allocation2 + $0x68] sm:$0xff] }
 0x14d   : > { %v6377_v18 = vpop.permute.xlu0 %4166 }
 0x14e   : > { %9019 = vst [vmem:[#allocation59_spill] sm:$0xff] %v6377_v18  ;;  %v5211_v18 = vld [vmem:[#allocation2 + $0x50] sm:$0xff] }
 0x14f   : > { %4386 = vrot.lane.b32.xlu2 %v6025_v46, %s5252_s12  ;;  %v4405_v46 = vpack.i.bf16 %v5211_v18, %v5210_v19  ;;  %v5216_v18 = vld [vmem:[#allocation2 + $0xa8] sm:$0xff] }
 0x151   : > { %4381 = vrot.lane.b32.xlu1 %v6002_v23, %s5252_s12  ;;  %v6385_v26 = vpop.permute.xlu2 %4221 }
 0x152   : > { %9020 = vst [vmem:[#allocation60_spill] sm:$0xff] %v6385_v26  ;;  %v5215_v26 = vld [vmem:[#allocation2 + $0x70] sm:$0xff] }
 0x153   : > { %4391 = vrot.lane.b32.xlu0 %v6063_v32, %s5252_s12  ;;  %v6389_v2 = vpop.permute.xlu1 %4171  ;;  %v5212_v32 = vld [vmem:[#allocation2 + $0x88] sm:$0xff]  ;;  %v4410_v19 = vpack.i.bf16 %v5215_v26, %v5214_v24  ;;  %v5221_v26 = vld [vmem:[#allocation2 + $0xd0] sm:$0xff] }
 0x154   : > { %9021 = vst [vmem:[#allocation61_spill] sm:$0xff] %v6389_v2  ;;  %v4415_v63 = vpack.i.bf16 %v5213_v4, %v5212_v32  ;;  %v5219_v32 = vld [vmem:[#allocation2 + $0xf0] sm:$0xff]  ;;  %v5220_v2 = vld [vmem:[#allocation2 + $0xc8] sm:$0xff] }
 0x155   : > { %v6391_v22 = vpop.permute.xlu0 %4181  ;;  %v4425_v24 = vpack.i.bf16 %v5221_v26, %v5220_v2  ;;  %v5227_v2 = vld [vmem:[#allocation2 + $0x130] sm:$0xff] }
 0x156   : > { %9022 = vst [vmem:[#allocation62_spill] sm:$0xff] %v6391_v22 }
 0x157   : > { %4401 = vrot.lane.b32.xlu2 %v4400_v34, %s5252_s12  ;;  %v5217_v34 = vld [vmem:[#allocation2 + $0xb0] sm:$0xff] }
 0x158   : > { %v4420_v22 = vpack.i.bf16 %v5217_v34, %v5216_v18  ;;  %v5223_v18 = vld [vmem:[#allocation2 + $0x110] sm:$0xff] }
 0x159   : > { %4396 = vrot.lane.b32.xlu1 %v6053_v54, %s5252_s12  ;;  %v6396_v47 = vpop.permute.xlu2 %4236  ;;  %v4435_v34 = vpack.i.bf16 %v5223_v18, %v5222_v58  ;;  %v5229_v58 = vld [vmem:[#allocation2 + $0x170] sm:$0xff] }
 0x15a   : > { %9023 = vst [vmem:[#allocation63_spill] sm:$0xff] %v6396_v47  ;;  %v5218_v47 = vld [vmem:[#allocation2 + $0xe8] sm:$0xff] }
 0x15b   : > { %4406 = vrot.lane.b32.xlu0 %v4405_v46, %s5253_s13  ;;  %v6399_v23 = vpop.permute.xlu1 %4186  ;;  %v4430_v4 = vpack.i.bf16 %v5219_v32, %v5218_v47  ;;  %v5225_v47 = vld [vmem:[#allocation2 + $0x150] sm:$0xff] }
 0x15d   : > { %v6401_v60 = vpop.permute.xlu0 %4196 }
 0x15e   : > { %9024 = vst [vmem:[#allocation64_spill] sm:$0xff] %v6401_v60 }
 0x15f   : > { %4416 = vrot.lane.b32.xlu2 %v4415_v63, %s5253_s13 }
 0x161   : > { %4411 = vrot.lane.b32.xlu1 %v4410_v19, %s5253_s13  ;;  %v6405_v54 = vpop.permute.xlu2 %4251  ;;  %v5224_v19 = vld [vmem:[#allocation2 + $0x148] sm:$0xff] }
 0x162   : > { %9025 = vst [vmem:[#allocation65_spill] sm:$0xff] %v6405_v54  ;;  %v4445_v32 = vpack.i.bf16 %v5225_v47, %v5224_v19  ;;  %v5226_v54 = vld [vmem:[#allocation2 + $0x128] sm:$0xff]  ;;  %v5231_v19 = vld [vmem:[#allocation2 + $0x1b0] sm:$0xff] }
 0x163   : > { %4421 = vrot.lane.b32.xlu0 %v4420_v22, %s5253_s13  ;;  %v6408_v46 = vpop.permute.xlu1 %4201  ;;  %v4440_v26 = vpack.i.bf16 %v5227_v2, %v5226_v54  ;;  %v5233_v54 = vld [vmem:[#allocation2 + $0x190] sm:$0xff] }
 0x164   : > { %9026 = vst [vmem:[#allocation66_spill] sm:$0xff] %v6408_v46  ;;  %v5228_v46 = vld [vmem:[#allocation2 + $0x168] sm:$0xff] }
 0x165   : > { %v6410_v60 = vpop.permute.xlu0 %4211  ;;  %v4450_v18 = vpack.i.bf16 %v5229_v58, %v5228_v46  ;;  %v5235_v46 = vld [vmem:[#allocation2 + $0x1d0] sm:$0xff] }
 0x166   : > { %9027 = vst [vmem:[#allocation67_spill] sm:$0xff] %v6410_v60  ;;  %v4465_v58 = vpack.i.bf16 %v5235_v46, %v5234_v30 }
 0x167   : > { %4431 = vrot.lane.b32.xlu2 %v4430_v4, %s5253_s13 }
 0x169   : > { %4426 = vrot.lane.b32.xlu1 %v4425_v24, %s5253_s13  ;;  %v6414_v63 = vpop.permute.xlu2 %4266 }
 0x16b   : > { %4436 = vrot.lane.b32.xlu0 %v4435_v34, %s5253_s13  ;;  %v6417_v22 = vpop.permute.xlu1 %4216  ;;  %v5230_v34 = vld [vmem:[#allocation2 + $0x1a8] sm:$0xff] }
 0x16c   : > { %9028 = vst [vmem:[#allocation68_spill] sm:$0xff] %v6417_v22  ;;  %v4460_v47 = vpack.i.bf16 %v5231_v19, %v5230_v34  ;;  %v5232_v22 = vld [vmem:[#allocation2 + $0x188] sm:$0xff]  ;;  %v5237_v19 = vld [vmem:[#allocation2 + $0x1f0] sm:$0xff] }
 0x16d   : > { %v6419_v60 = vpop.permute.xlu0 %4226  ;;  %v4455_v2 = vpack.i.bf16 %v5233_v54, %v5232_v22  ;;  %v5236_v34 = vld [vmem:[#allocation2 + $0x1e8] sm:$0xff]  ;;  %v4480_v22 = vpack.i.bf16 %v6369_v7, %v6367_v14 }
 0x16e   : > { %9029 = vst [vmem:[#allocation69_spill] sm:$0xff] %v6419_v60 }
 0x16f   : > { %4446 = vrot.lane.b32.xlu2 %v4445_v32, %s5253_s13 }
 0x171   : > { %4441 = vrot.lane.b32.xlu1 %v4440_v26, %s5253_s13  ;;  %v6423_v4 = vpop.permute.xlu2 %4281 }
 0x173   : > { %4451 = vrot.lane.b32.xlu0 %v4450_v18, %s5253_s13  ;;  %v6426_v24 = vpop.permute.xlu1 %4231 }
 0x174   : > { %9030 = vst [vmem:[#allocation70_spill] sm:$0xff] %v6426_v24  ;;  %v4470_v24 = vpack.i.bf16 %v5237_v19, %v5236_v34  ;;  %v804_v34 = vrot.slane %v6369_v7, 1 }
 0x175   : > { %v6428_v60 = vpop.permute.xlu0 %4241 }
 0x177   : > { %4461 = vrot.lane.b32.xlu2 %v4460_v47, %s5253_s13 }
 0x179   : > { %4456 = vrot.lane.b32.xlu1 %v4455_v2, %s5253_s13  ;;  %v6432_v32 = vpop.permute.xlu2 %4296 }
 0x17a   : > { %9031 = vst [vmem:[#allocation71_spill] sm:$0xff] %v6432_v32 }
 0x17b   : > { %4466 = vrot.lane.b32.xlu0 %v4465_v58, %s5253_s13  ;;  %v6435_v26 = vpop.permute.xlu1 %4246 }
 0x17d   : > { %v6437_v18 = vpop.permute.xlu0 %4256 }
 0x17e   : > { %9032 = vst [vmem:[#allocation72_spill] sm:$0xff] %v6437_v18 }
 0x17f   : > { %4476 = vrot.lane.b32.xlu2 %v6213_v12, %s5253_s13 }
 0x181   : > { %4471 = vrot.lane.b32.xlu1 %v4470_v24, %s5253_s13  ;;  %v6444_v30 = vpop.permute.xlu2 %4311 }
 0x182   : > { %9033 = vst [vmem:[#allocation73_spill] sm:$0xff] %v6444_v30 }
 0x183   : > { %4481 = vrot.lane.b32.xlu0 %v4480_v22, %s5253_s13  ;;  %v6447_v47 = vpop.permute.xlu1 %4261 }
 0x184   : > { %9034 = vst [vmem:[#allocation74_spill] sm:$0xff] %v6447_v47  ;;  %v3954_v47 = vunpack.i.h.bf16 %v5931_v16 }
 0x185   : > { %v6449_v54 = vpop.permute.xlu0 %4271 }
 0x187   : > { %4491 = vrot.lane.b32.xlu2 %v8991_v50, %s5254_s14 }
 0x189   : > { %4486 = vrot.lane.b32.xlu1 %v8988_v40, %s5254_s14  ;;  %v6455_v2 = vpop.permute.xlu2 %4326 }
 0x18b   : > { %4496 = vrot.lane.b32.xlu0 %v8995_v36, %s5254_s14  ;;  %v6459_v12 = vpop.permute.xlu1 %4276 }
 0x18d   : > { %v6461_v24 = vpop.permute.xlu0 %4286 }
 0x18f   : > { %4506 = vrot.lane.b32.xlu2 %v8997_v3, %s5254_s14 }
 0x191   : > { %4501 = vrot.lane.b32.xlu1 %v8994_v11, %s5254_s14  ;;  %v6467_v46 = vpop.permute.xlu2 %4341 }
 0x192   : > { %9035 = vst [vmem:[#allocation75_spill] sm:$0xff] %v6467_v46 }
 0x193   : > { %4511 = vrot.lane.b32.xlu0 %v9001_v35, %s5254_s14  ;;  %v6471_v40 = vpop.permute.xlu1 %4291 }
 0x194   : > { %9036 = vst [vmem:[#allocation76_spill] sm:$0xff] %v6471_v40  ;;  %v9069_v40 = vld [vmem:[#allocation9_spill] sm:$0xff] }
 0x195   : > { %v6473_v50 = vpop.permute.xlu0 %4301 }
 0x196   : > { %9037 = vst [vmem:[#allocation77_spill] sm:$0xff] %v6473_v50  ;;  %v9047_v50 = vrot.slane %v5322_v1, 7  ;;  %v1859_v1 = vld [vmem:[%s8740_s1 + $0x10] sm:$0x3] }
 0x197   : > { %4521 = vrot.lane.b32.xlu2 %v9003_v37, %s5254_s14 }
 0x199   : > { %4516 = vrot.lane.b32.xlu1 %v9000_v39, %s5254_s14  ;;  %v6479_v36 = vpop.permute.xlu2 %4356  ;;  %v521_v39 = vld [vmem:[#allocation2 + $0x238] sm:$0xff] }
 0x19a   : > { %v806_v19 = vrot.slane %v521_v39, 1 }
 0x19b   : > { %4526 = vrot.lane.b32.xlu0 %v9006_v10, %s5254_s14  ;;  %v6483_v3 = vpop.permute.xlu1 %4306  ;;  %v803_v10 = vrot.slane %v6367_v14, 1 }
 0x19c   : > { %9038 = vst [vmem:[#allocation78_spill] sm:$0xff] %v6483_v3  ;;  %v3928_v3 = vunpack.i.l.bf16 %v5995_v49 }
 0x19d   : > { %v6485_v11 = vpop.permute.xlu0 %4316 }
 0x19e   : > { %9039 = vst [vmem:[#allocation79_spill] sm:$0xff] %v6485_v11 }
 0x19f   : > { %4536 = vrot.lane.b32.xlu2 %v5784_v61, %s5254_s14  ;;  %v805_v61 = vsel %vm699_vm1, %v803_v10, %v804_v34 }
 0x1a1   : > { %4531 = vrot.lane.b32.xlu1 %v5764_v55, %s5254_s14  ;;  %v6491_v35 = vpop.permute.xlu2 %4371 }
 0x1a2   : > { %9040 = vst [vmem:[#allocation80_spill] sm:$0xff] %v6491_v35  ;;  %v3938_v35 = vunpack.i.l.bf16 %v6051_v52 }
 0x1a3   : > { %4541 = vrot.lane.b32.xlu0 %v5779_v53, %s5254_s14  ;;  %v6495_v37 = vpop.permute.xlu1 %4321  ;;  %v807_v53 = vsel %vm699_vm1, %v804_v34, %v806_v19 }
 0x1a4   : > { %v4560_v7 = vpack.i.bf16 %v807_v53, %v805_v61  ;;  %v3948_v53 = vunpack.i.l.bf16 %v5887_v57 }
 0x1a5   : > { %v6497_v58 = vpop.permute.xlu0 %4331 }
 0x1a7   : > { %4551 = vrot.lane.b32.xlu2 %v5824_v59, %s5254_s14 }
 0x1a9   : > { %4546 = vrot.lane.b32.xlu1 %v5790_v13, %s5254_s14  ;;  %v6505_v55 = vpop.permute.xlu2 %4386 }
 0x1aa   : > { %9041 = vst [vmem:[#allocation81_spill] sm:$0xff] %v6505_v55 }
 0x1ab   : > { %4556 = vrot.lane.b32.xlu0 %v6323_v38, %s5254_s14  ;;  %v6511_v22 = vpop.permute.xlu1 %4336  ;;  %v450_v38 = vld [vmem:[#allocation2] sm:$0xff] }
 0x1ac   : > { %9042 = vst [vmem:[#allocation82_spill] sm:$0xff] %v6511_v22  ;;  %v571_v30 = vrot.slane %v450_v38, 7  ;;  %v3953_v38 = vunpack.i.l.bf16 %v5931_v16  ;;  %v4089_v22 = vunpack.i.h.bf16 %v9069_v40 }
 0x1ad   : > { %v6513_v14 = vpop.permute.xlu0 %4346 }
 0x1ae   : > { %v573_v46 = vsel %vm570_vm2, %v571_v30, %v9047_v50 }
 0x1b1   : > { %4561 = vrot.lane.b32.xlu1 %v4560_v7, %s5254_s14  ;;  %v6516_v59 = vpop.permute.xlu2 %4401  ;;  %v3929_v7 = vunpack.i.h.bf16 %v5995_v49  ;;  %v1584_v49 = vsel %vm280_vm0, %v5837_v8, %v3948_v53  ;;  %v6570_v8 = vsel %vm280_vm0, %v5854_v45, %v3953_v38  ;;  %v3934_v45 = vunpack.i.h.bf16 %v6059_v29  ;;  %v9051_v38 = vld [vmem:[#allocation18_spill] sm:$0xff] }
 0x1b2   : > { %v3964_v53 = vunpack.i.h.bf16 %v6113_v56 }
 0x1b3   : > { %v6518_v39 = vpop.permute.xlu1 %4351  ;;  %v6558_v16 = vsel %vm280_vm0, %v5816_v5, %v3929_v7  ;;  %v3963_v7 = vunpack.i.l.bf16 %v6113_v56  ;;  %v3820_v56 = vld [vmem:[%s8740_s1 + $0x8] sm:$0xff] }
 0x1b5   : > { %v6520_v13 = vpop.permute.xlu0 %4361 }
 0x1b9   : > { %v6522_v11 = vpop.permute.xlu2 %4416 }
 0x1ba   : > { %9043 = vst [vmem:[#allocation83_spill] sm:$0xff] %v6522_v11  ;;  %v6566_v11 = vsel %vm280_vm0, %v5861_v31, %v3954_v47  ;;  %v6586_v47 = vsel %vm280_vm0, %v5809_v28, %v3938_v35  ;;  %v3974_v28 = vunpack.i.h.bf16 %v6119_v33 }
 0x1bb   : > { %v6524_v10 = vpop.permute.xlu1 %4366  ;;  %9049 = vst [vmem:[#allocation88_spill] sm:$0xff] %v6586_v47  ;;  %v9073_v47 = vld [vmem:[#allocation37_spill] sm:$0xff] }
 0x1bd   : > { %v6526_v34 = vpop.permute.xlu0 %4376 }
 0x1be   : > { %9044 = vst [vmem:[#allocation84_spill] sm:$0xff] %v6526_v34  ;;  %v3949_v34 = vunpack.i.h.bf16 %v5887_v57  ;;  %v6554_v57 = vsel %vm280_vm0, %v573_v46, %v3928_v3  ;;  %v3939_v3 = vunpack.i.h.bf16 %v6051_v52  ;;  %v4013_v52 = vunpack.i.l.bf16 %v6105_v41 }
 0x1c0   : > { %v1585_v50 = vsel %vm280_vm0, %v5840_v48, %v3949_v34  ;;  %v3933_v48 = vunpack.i.l.bf16 %v6059_v29  ;;  %v6599_v29 = vsel %vm280_vm0, %v5820_v62, %v3939_v3  ;;  %v9057_v3 = vld [vmem:[#allocation21_spill] sm:$0xff] }
 0x1c1   : > { %v6528_v19 = vpop.permute.xlu2 %4431  ;;  %9050 = vst [vmem:[#allocation89_spill] sm:$0xff] %v6599_v29 }
 0x1c3   : > { %v6530_v55 = vpop.permute.xlu1 %4381 }
 0x1c4   : > { %9045 = vst [vmem:[#allocation85_spill] sm:$0xff] %v6530_v55  ;;  %v3969_v55 = vunpack.i.h.bf16 %v5977_v17 }
 0x1c5   : > { %v6532_v61 = vpop.permute.xlu0 %4391 }
 0x1c6   : > { %9046 = vst [vmem:[#allocation86_spill] sm:$0xff] %v6532_v61  ;;  %v3968_v61 = vunpack.i.l.bf16 %v5977_v17  ;;  %v1869_v17 = vunpack.c.l.b16 %v1859_v1  ;;  %v6574_v46 = vsel %vm280_vm0, %v5905_v20, %v3969_v55  ;;  %v3944_v20 = vunpack.i.h.bf16 %v6085_v44 }
 0x1c7   : > { %v3959_v55 = vunpack.i.h.bf16 %v6091_v0  ;;  %v1578_v1 = vsel %vm280_vm0, %v9051_v38, %v3933_v48  ;;  %v9055_v48 = vld [vmem:[#allocation23_spill] sm:$0xff] }
 0x1c8   : > { %v6578_v5 = vsel %vm280_vm0, %v5898_v6, %v3968_v61  ;;  %v1872_v31 = vpack.c.b16 %v1869_v17, %v1869_v17  ;;  %v3958_v6 = vunpack.i.l.bf16 %v6091_v0  ;;  %v4014_v61 = vunpack.i.h.bf16 %v6105_v41 }
 0x1c9   : > { %v6545_v32 = vpop.permute.xlu2 %4446  ;;  %v3973_v0 = vunpack.i.l.bf16 %v6119_v33  ;;  %v4029_v17 = vunpack.i.h.bf16 %v6135_v27  ;;  %v6614_v62 = vsel %vm280_vm0, %v5849_v42, %v3944_v20  ;;  %v1589_v33 = vsel %vm280_vm0, %v5893_v25, %v3959_v55  ;;  %v9056_v42 = vld [vmem:[#allocation22_spill] sm:$0xff]  ;;  %v9058_v25 = vld [vmem:[#allocation27_spill] sm:$0xff] }
 0x1ca   : > { %v1926_v35 = vsel %vm1924_vm4, %v1872_v31, 0  ;;  %v9053_v31 = vld [vmem:[#allocation19_spill] sm:$0xff]  ;;  %v1588_v38 = vsel %vm280_vm0, %v9055_v48, %v3958_v6  ;;  %v1591_v20 = vsel %vm280_vm0, %v9056_v42, %v3964_v53  ;;  %v6636_v55 = vsel %vm280_vm0, %v9058_v25, %v3974_v28  ;;  %v9066_v25 = vld [vmem:[#allocation6_spill] sm:$0xff] }
 0x1cb   : > { %v6560_v30 = vpop.permute.xlu1 %4396  ;;  %3900 = vmatpush.bf16.msra.mxu3 %v1926_v35  ;;  %1933 = vmatpush.bf16.msra.mxu0 %v1926_v35  ;;  %9054 = vst [vmem:[#allocation19_spill] sm:$0xff] %v6614_v62  ;;  %v1590_v62 = vsel %vm280_vm0, %v9057_v3, %v3963_v7  ;;  %v9060_v6 = vld [vmem:[#allocation43_spill] sm:$0xff]  ;;  %v6645_v48 = vsel %vm1608_vm3, %v1585_v50, %v4029_v17  ;;  %v9065_v7 = vld [vmem:[#allocation45_spill] sm:$0xff]  ;;  %v4009_v44 = vunpack.i.h.bf16 %v9066_v25 }
 0x1cc   : > { %9048 = vst [vmem:[#allocation87_spill] sm:$0xff] %v6560_v30  ;;  %v1579_v30 = vsel %vm280_vm0, %v9053_v31, %v3934_v45  ;;  %v4028_v45 = vunpack.i.l.bf16 %v6135_v27  ;;  %v4043_v53 = vunpack.i.l.bf16 %v9060_v6  ;;  %v4004_v28 = vunpack.i.h.bf16 %v9065_v7  ;;  %v9067_v17 = vld [vmem:[#allocation47_spill] sm:$0xff] }
 0x1cd   : > { %v6582_v34 = vpop.permute.xlu0 %4406  ;;  %v6625_v35 = vsel %vm1608_vm3, %v1579_v30, %v4014_v61  ;;  %9059 = vst [vmem:[#allocation23_spill] sm:$0xff] %v6636_v55  ;;  %v9063_v61 = vld [vmem:[#allocation41_spill] sm:$0xff]  ;;  %v4003_v3 = vunpack.i.l.bf16 %v9065_v7  ;;  %v4033_v27 = vunpack.i.l.bf16 %v9067_v17 }
 0x1ce   : > { %v1617_v50 = vsel %vm1608_vm3, %v1584_v49, %v4028_v45  ;;  %v6667_v18 = vsel %vm1608_vm3, %v1590_v62, %v4043_v53  ;;  %v9070_v49 = vld [vmem:[#allocation11_spill] sm:$0xff] }
 0x1cf   : > { %3901 = vmatpush.bf16.msra.mxu3 %v3820_v56  ;;  %1934 = vmatpush.bf16.msra.mxu0 %v3820_v56  ;;  %v4049_v45 = vunpack.i.h.bf16 %v9070_v49  ;;  %v1606_v29 = vsel %vm280_vm0, %v9073_v47, %v4003_v3 }
 0x1d1   : > { %v6605_v41 = vpop.permute.xlu2 %4461 }
 0x1d2   : > { %9052 = vst [vmem:[#allocation18_spill] sm:$0xff] %v6605_v41  ;;  %v6622_v41 = vsel %vm1608_vm3, %v1578_v1, %v4013_v52  ;;  %v4044_v52 = vunpack.i.h.bf16 %v9060_v6  ;;  %v9061_v1 = vld [vmem:[#allocation26_spill] sm:$0xff]  ;;  %v4034_v6 = vunpack.i.h.bf16 %v9067_v17 }
 0x1d3   : > { %v6628_v31 = vpop.permute.xlu1 %4411  ;;  %v6641_v30 = vsel %vm280_vm0, %v9061_v1, %v3973_v0  ;;  %v4008_v0 = vunpack.i.l.bf16 %v9066_v25  ;;  %v3819_v1 = vld [vmem:[%s8740_s1] sm:$0xff]  ;;  %v4088_v25 = vunpack.i.l.bf16 %v9069_v40  ;;  %v1610_v40 = vsel %vm1608_vm3, %v6558_v16, %v4009_v44 }
 0x1d4   : > { %9062 = vst [vmem:[#allocation22_spill] sm:$0xff] %v6641_v30  ;;  %v6661_v56 = vsel %vm1608_vm3, %v1591_v20, %v4044_v52  ;;  %v4048_v30 = vunpack.i.l.bf16 %v9070_v49  ;;  %3902 = vmatpush.bf16.msra.mxu3 %v3819_v1  ;;  %1935 = vmatpush.bf16.msra.mxu0 %v3819_v1  ;;  %v9072_v20 = vld [vmem:[#allocation38_spill] sm:$0xff]  ;;  %v1619_v1 = vsel %vm1608_vm3, %v6570_v8, %v4033_v27 }
 0x1d5   : > { %v6648_v42 = vpop.permute.xlu0 %4421  ;;  %v1607_v52 = vsel %vm280_vm0, %v9072_v20, %v4004_v28  ;;  %v1609_v62 = vsel %vm1608_vm3, %v6554_v57, %v4008_v0  ;;  %v6692_v3 = vsel %vm1641_vm5, %v1610_v40, %v4089_v22  ;;  %v9075_v57 = vld [vmem:[#allocation15_spill] sm:$0xff]  ;;  %v9076_v22 = vld [vmem:[#allocation10_spill] sm:$0xff]  ;;  %v9078_v40 = vld [vmem:[#allocation49_spill] sm:$0xff] }
 0x1d6   : > { %9064 = vst [vmem:[#allocation21_spill] sm:$0xff] %v6648_v42  ;;  %v9068_v42 = vld [vmem:[#allocation8_spill] sm:$0xff]  ;;  %v6695_v44 = vsel %vm1641_vm5, %v1609_v62, %v4088_v25  ;;  %v4119_v16 = vunpack.i.h.bf16 %v9075_v57  ;;  %v6705_v8 = vsel %vm1608_vm3, %v6578_v5, %v4048_v30  ;;  %v4164_v5 = vunpack.i.h.bf16 %v6329_v21 }
 0x1d7   : > { %v4038_v7 = vunpack.i.l.bf16 %v9068_v42  ;;  %v4039_v55 = vunpack.i.h.bf16 %v9068_v42  ;;  %v4114_v42 = vunpack.i.h.bf16 %v6333_v43 }
 0x1d9   : > { %v6672_v17 = vpop.permute.xlu2 %4476  ;;  %v1621_v47 = vsel %vm1608_vm3, %v1588_v38, %v4038_v7  ;;  %v1622_v0 = vsel %vm1608_vm3, %v1589_v33, %v4039_v55  ;;  %v4118_v38 = vunpack.i.l.bf16 %v9075_v57  ;;  %v9077_v7 = vld [vmem:[#allocation48_spill] sm:$0xff]  ;;  %v4093_v33 = vunpack.i.l.bf16 %v9078_v40 }
 0x1da   : > { %9071 = vst [vmem:[#allocation27_spill] sm:$0xff] %v6672_v17  ;;  %v1620_v17 = vsel %vm1608_vm3, %v6566_v11, %v4034_v6  ;;  %v6701_v11 = vsel %vm1608_vm3, %v6574_v46, %v4049_v45  ;;  %v4084_v25 = vunpack.i.h.bf16 %v9077_v7  ;;  %v4083_v20 = vunpack.i.l.bf16 %v9077_v7 }
 0x1db   : > { %v6688_v28 = vpop.permute.xlu1 %4426  ;;  %v4094_v55 = vunpack.i.h.bf16 %v9078_v40  ;;  %v4109_v46 = vunpack.i.h.bf16 %v6321_v9  ;;  %v4108_v45 = vunpack.i.l.bf16 %v6321_v9  ;;  %v6720_v62 = vsel %vm1641_vm5, %v1622_v0, %v4119_v16 }
 0x1dc   : > { %v4113_v57 = vunpack.i.l.bf16 %v6333_v43  ;;  %v4163_v6 = vunpack.i.l.bf16 %v6329_v21  ;;  %v6725_v7 = vsel %vm1641_vm5, %v1621_v47, %v4118_v38  ;;  %v1639_v53 = vsel %vm1608_vm3, %v1606_v29, %v4083_v20 }
 0x1dd   : > { %v6708_v27 = vpop.permute.xlu0 %4436  ;;  %v1640_v30 = vsel %vm1608_vm3, %v1607_v52, %v4084_v25  ;;  %v6735_v16 = vsel %vm1641_vm5, %v6622_v41, %v4093_v33  ;;  %v6740_v47 = vsel %vm1641_vm5, %v6625_v35, %v4094_v55  ;;  %v1650_v0 = vsel %vm1641_vm5, %v1617_v50, %v4108_v45  ;;  %v9081_v45 = vld [vmem:[#allocation54_spill] sm:$0xff] }
 0x1de   : > { %v1651_v43 = vsel %vm1641_vm5, %v6645_v48, %v4109_v46  ;;  %v6746_v38 = vsel %vm1641_vm5, %v1640_v30, %v4164_v5  ;;  %v6751_v52 = vsel %vm1641_vm5, %v1619_v1, %v4113_v57  ;;  %v6754_v41 = vsel %vm1641_vm5, %v1639_v53, %v4163_v6  ;;  %v9082_v57 = vld [vmem:[#allocation66_spill] sm:$0xff] }
 0x1df   : > { %v4189_v25 = vunpack.i.h.bf16 %v6399_v23  ;;  %v4188_v35 = vunpack.i.l.bf16 %v6399_v23  ;;  %v1653_v50 = vsel %vm1641_vm5, %v1620_v17, %v4114_v42  ;;  %v4124_v20 = vunpack.i.h.bf16 %v6335_v51 }
 0x1e0   : > { %v4269_v48 = vunpack.i.h.bf16 %v6414_v63  ;;  %v4268_v33 = vunpack.i.l.bf16 %v6414_v63  ;;  %v4123_v1 = vunpack.i.l.bf16 %v6335_v51  ;;  %v4129_v46 = vunpack.i.h.bf16 %v6345_v15 }
 0x1e1   : > { %v6729_v9 = vpop.permute.xlu2 %4491  ;;  %v4349_v53 = vunpack.i.h.bf16 %v6513_v14  ;;  %v4348_v6 = vunpack.i.l.bf16 %v6513_v14  ;;  %v4128_v23 = vunpack.i.l.bf16 %v6345_v15  ;;  %v4194_v17 = vunpack.i.h.bf16 %v9081_v45 }
 0x1e2   : > { %v4429_v42 = vunpack.i.h.bf16 %v6688_v28  ;;  %v4428_v5 = vunpack.i.l.bf16 %v6688_v28  ;;  %v1683_v63 = vsel %vm1674_vm6, %v1650_v0, %v4188_v35  ;;  %v1684_v30 = vsel %vm1674_vm6, %v1651_v43, %v4189_v25 }
 0x1e3   : > { %v6748_v29 = vpop.permute.xlu1 %4441  ;;  %v4204_v51 = vunpack.i.h.bf16 %v9082_v57  ;;  %v1717_v21 = vsel %vm1707_vm7, %v1684_v30, %v4269_v48  ;;  %v1716_v40 = vsel %vm1707_vm7, %v1683_v63, %v4268_v33  ;;  %v4203_v0 = vunpack.i.l.bf16 %v9082_v57  ;;  %v9083_v30 = vld [vmem:[#allocation57_spill] sm:$0xff] }
 0x1e4   : > { %v1749_v15 = vsel %vm1740_vm8, %v1716_v40, %v4348_v6  ;;  %v4284_v48 = vunpack.i.h.bf16 %v6423_v4  ;;  %v4283_v33 = vunpack.i.l.bf16 %v6423_v4  ;;  %v6798_v6 = vsel %vm1641_vm5, %v6705_v8, %v4128_v23 }
 0x1e5   : > { %v6762_v55 = vpop.permute.xlu0 %4451  ;;  %v1782_v43 = vsel %vm1773_vm9, %v1749_v15, %v4428_v5  ;;  %v4364_v5 = vunpack.i.h.bf16 %v6520_v13  ;;  %v4444_v8 = vunpack.i.h.bf16 %v6748_v29  ;;  %v6814_v23 = vsel %vm1674_vm6, %v1653_v50, %v4194_v17 }
 0x1e6   : > { %9080 = vst [vmem:[#allocation43_spill] sm:$0xff] %v6762_v55  ;;  %v1750_v55 = vsel %vm1740_vm8, %v1717_v21, %v4349_v53  ;;  %v1656_v21 = vsel %vm1641_vm5, %v6667_v18, %v4123_v1  ;;  %v1657_v53 = vsel %vm1641_vm5, %v6661_v56, %v4124_v20  ;;  %v4363_v18 = vunpack.i.l.bf16 %v6520_v13 }
 0x1e7   : > { %v1783_v25 = vsel %vm1773_vm9, %v1750_v55, %v4429_v42  ;;  %v1659_v42 = vsel %vm1641_vm5, %v6701_v11, %v4129_v46  ;;  %v1689_v56 = vsel %vm1674_vm6, %v1656_v21, %v4203_v0  ;;  %v1690_v20 = vsel %vm1674_vm6, %v1657_v53, %v4204_v51 }
 0x1e8   : > { %v4443_v1 = vunpack.i.l.bf16 %v6748_v29  ;;  %v4209_v57 = vunpack.i.h.bf16 %v9083_v30  ;;  %v1723_v11 = vsel %vm1707_vm7, %v1690_v20, %v4284_v48  ;;  %v1722_v46 = vsel %vm1707_vm7, %v1689_v56, %v4283_v33  ;;  %v9084_v33 = vld [vmem:[#allocation59_spill] sm:$0xff] }
 0x1e9   : > { %v4507_v14 = vpop.permute.xlu2 %4506  ;;  %v4243_v13 = vunpack.i.l.bf16 %v6428_v60  ;;  %v4323_v51 = vunpack.i.l.bf16 %v6495_v37  ;;  %v1755_v29 = vsel %vm1740_vm8, %v1722_v46, %v4363_v18  ;;  %v1756_v50 = vsel %vm1740_vm8, %v1723_v11, %v4364_v5 }
 0x1ea   : > { %v4509_v49 = vunpack.i.h.bf16 %v4507_v14  ;;  %v4508_v28 = vunpack.i.l.bf16 %v4507_v14  ;;  %v4324_v14 = vunpack.i.h.bf16 %v6495_v37  ;;  %v4404_v0 = vunpack.i.h.bf16 %v6516_v59 }
 0x1eb   : > { %v6780_v35 = vpop.permute.xlu1 %4456  ;;  %v1788_v48 = vsel %vm1773_vm9, %v1755_v29, %v4443_v1  ;;  %v4169_v21 = vunpack.i.h.bf16 %v9084_v33  ;;  %v4168_v5 = vunpack.i.l.bf16 %v9084_v33  ;;  %v1705_v18 = vsel %vm1674_vm6, %v6754_v41, %v4243_v13 }
 0x1ec   : > { %v6787_v63 = vsel %vm1806_vm10, %v1782_v43, %v4508_v28  ;;  %v6790_v40 = vsel %vm1806_vm10, %v1783_v25, %v4509_v49  ;;  %v4193_v49 = vunpack.i.l.bf16 %v9081_v45  ;;  %v4244_v45 = vunpack.i.h.bf16 %v6428_v60 }
 0x1ed   : > { %v6800_v55 = vpop.permute.xlu0 %4466  ;;  %v1843_v4 = vpack.c.bf16 %v6790_v40, %v6787_v63  ;;  %v4403_v43 = vunpack.i.l.bf16 %v6516_v59  ;;  %v1789_v60 = vsel %vm1773_vm9, %v1756_v50, %v4444_v8  ;;  %v1738_v1 = vsel %vm1707_vm7, %v1705_v18, %v4323_v51  ;;  %v9140_v40 = vld [vmem:[#allocation33_spill] sm:$0xff] }
 0x1ee   : > { %v1706_v59 = vsel %vm1674_vm6, %v6746_v38, %v4244_v45  ;;  %v4248_v29 = vunpack.i.l.bf16 %v6435_v26  ;;  %v4329_v38 = vunpack.i.h.bf16 %v6455_v2  ;;  %v4328_v41 = vunpack.i.l.bf16 %v6455_v2 }
 0x1ef   : > { %v1739_v8 = vsel %vm1707_vm7, %v1706_v59, %v4324_v14  ;;  %v1771_v50 = vsel %vm1740_vm8, %v1738_v1, %v4403_v43  ;;  %v1685_v14 = vsel %vm1674_vm6, %v6751_v52, %v4193_v49  ;;  %v4409_v51 = vunpack.i.h.bf16 %v6582_v34 }
 0x1f0   : > { %v1676_v2 = vsel %vm1674_vm6, %v6692_v3, %v4169_v21  ;;  %v1692_v43 = vsel %vm1674_vm6, %v1659_v42, %v4209_v57  ;;  %v9087_v42 = vld [vmem:[#allocation65_spill] sm:$0xff]  ;;  %v4273_v1 = vunpack.i.l.bf16 %v6449_v54 }
 0x1f1   : > { %v4522_v15 = vpop.permute.xlu2 %4521  ;;  %v4254_v57 = vunpack.i.h.bf16 %v9087_v42 }
 0x1f2   : > { %v4524_v17 = vunpack.i.h.bf16 %v4522_v15  ;;  %v4523_v28 = vunpack.i.l.bf16 %v4522_v15  ;;  %v4249_v15 = vunpack.i.h.bf16 %v6435_v26  ;;  %v4208_v26 = vunpack.i.l.bf16 %v9083_v30 }
 0x1f3   : > { %v6827_v25 = vpop.permute.xlu1 %4471 }
 0x1f4   : > { %v1821_v37 = vsel %vm1806_vm10, %v1788_v48, %v4523_v28  ;;  %v1822_v53 = vsel %vm1806_vm10, %v1789_v60, %v4524_v17  ;;  %v1772_v17 = vsel %vm1740_vm8, %v1739_v8, %v4404_v0  ;;  %v4408_v28 = vunpack.i.l.bf16 %v6582_v34  ;;  %v9085_v48 = vld [vmem:[#allocation61_spill] sm:$0xff] }
 0x1f5   : > { %v4482_v56 = vpop.permute.xlu0 %4481  ;;  %v1846_v20 = vpack.c.bf16 %v1822_v53, %v1821_v37  ;;  %v1675_v0 = vsel %vm1674_vm6, %v6695_v44, %v4168_v5  ;;  %v4174_v60 = vunpack.i.h.bf16 %v9085_v48  ;;  %v4173_v33 = vunpack.i.l.bf16 %v9085_v48  ;;  %v9086_v37 = vld [vmem:[#allocation64_spill] sm:$0xff] }
 0x1f6   : > { %v4484_v11 = vunpack.i.h.bf16 %v4482_v56  ;;  %v4483_v46 = vunpack.i.l.bf16 %v4482_v56  ;;  %v4199_v52 = vunpack.i.h.bf16 %v9086_v37  ;;  %v1708_v49 = vsel %vm1707_vm7, %v1675_v0, %v4248_v29 }
 0x1f7   : > { %3804 = vmatmul.msk.bf16.vlgmr.msra.gmra.mxu3 %vm1875_vm11, %v1846_v20  ;;  %v1709_v30 = vsel %vm1707_vm7, %v1676_v2, %v4249_v15  ;;  %v1741_v34 = vsel %vm1740_vm8, %v1708_v49, %v4328_v41  ;;  %v4198_v3 = vunpack.i.l.bf16 %v9086_v37  ;;  %v4253_v20 = vunpack.i.l.bf16 %v9087_v42 }
 0x1f8   : > { %v6849_v45 = vsel %vm1773_vm9, %v1771_v50, %v4483_v46  ;;  %v6852_v13 = vsel %vm1773_vm9, %v1772_v17, %v4484_v11  ;;  %v1742_v44 = vsel %vm1740_vm8, %v1709_v30, %v4329_v38  ;;  %v1774_v59 = vsel %vm1773_vm9, %v1741_v34, %v4408_v28 }
 0x1f9   : > { %v1775_v56 = vsel %vm1773_vm9, %v1742_v44, %v4409_v51  ;;  %v1691_v46 = vsel %vm1674_vm6, %v6798_v6, %v4208_v26  ;;  %v4274_v15 = vunpack.i.h.bf16 %v6449_v54  ;;  %v4278_v29 = vunpack.i.l.bf16 %v6459_v12 }
 0x1fa   : > { %v1677_v17 = vsel %vm1674_vm6, %v6735_v16, %v4173_v33  ;;  %v4289_v38 = vunpack.i.h.bf16 %v6461_v24  ;;  %v4288_v41 = vunpack.i.l.bf16 %v6461_v24  ;;  %v4279_v51 = vunpack.i.h.bf16 %v6459_v12 }
 0x1fb   : > { %v4487_v53 = vpop.permute.xlu1 %4486  ;;  %v1678_v28 = vsel %vm1674_vm6, %v6740_v47, %v4174_v60  ;;  %v1687_v6 = vsel %vm1674_vm6, %v6725_v7, %v4198_v3  ;;  %v1688_v54 = vsel %vm1674_vm6, %v6720_v62, %v4199_v52  ;;  %v4353_v26 = vunpack.i.l.bf16 %v6518_v39 }
 0x1fc   : > { %v4489_v5 = vunpack.i.h.bf16 %v4487_v53  ;;  %v4488_v18 = vunpack.i.l.bf16 %v4487_v53  ;;  %v1711_v16 = vsel %vm1707_vm7, %v1678_v28, %v4254_v57  ;;  %v1710_v0 = vsel %vm1707_vm7, %v1677_v17, %v4253_v20 }
 0x1fd   : > { %v6873_v21 = vpop.permute.xlu0 %4496  ;;  %v1718_v24 = vsel %vm1707_vm7, %v1685_v14, %v4273_v1  ;;  %v4354_v12 = vunpack.i.h.bf16 %v6518_v39  ;;  %v1719_v47 = vsel %vm1707_vm7, %v6814_v23, %v4274_v15  ;;  %v1720_v7 = vsel %vm1707_vm7, %v1687_v6, %v4278_v29 }
 0x1fe   : > { %v1807_v8 = vsel %vm1806_vm10, %v1774_v59, %v4488_v18  ;;  %v1808_v11 = vsel %vm1806_vm10, %v1775_v56, %v4489_v5  ;;  %v4434_v2 = vunpack.i.h.bf16 %v6528_v19  ;;  %v4433_v62 = vunpack.i.l.bf16 %v6528_v19 }
 0x1ff   : > { %v1839_v50 = vpack.c.bf16 %v1808_v11, %v1807_v8  ;;  %v1724_v60 = vsel %vm1707_vm7, %v1691_v46, %v4288_v41  ;;  %v1725_v33 = vsel %vm1707_vm7, %v1692_v43, %v4289_v38  ;;  %v1721_v37 = vsel %vm1707_vm7, %v1688_v54, %v4279_v51 }
 0x200   : > { %v4359_v14 = vunpack.i.h.bf16 %v6479_v36  ;;  %v4358_v39 = vunpack.i.l.bf16 %v6479_v36  ;;  %v4334_v23 = vunpack.i.h.bf16 %v6497_v58  ;;  %v4333_v52 = vunpack.i.l.bf16 %v6497_v58 }
 0x201   : > { %3797 = vmatmul.msk.bf16.vlgmr.msra.gmra.mxu0 %vm1875_vm11, %v1839_v50  ;;  %v1751_v49 = vsel %vm1740_vm8, %v1718_v24, %v4353_v26  ;;  %v1752_v19 = vsel %vm1740_vm8, %v1719_v47, %v4354_v12  ;;  %v4369_v53 = vunpack.i.h.bf16 %v6524_v10  ;;  %v4414_v43 = vunpack.i.h.bf16 %v6628_v31 }
 0x202   : > { %v4413_v5 = vunpack.i.l.bf16 %v6628_v31  ;;  %v1784_v18 = vsel %vm1773_vm9, %v1751_v49, %v4433_v62  ;;  %v1785_v36 = vsel %vm1773_vm9, %v1752_v19, %v4434_v2  ;;  %v4494_v3 = vunpack.i.h.bf16 %v6729_v9  ;;  %v9088_v62 = vld [vmem:[#allocation51_spill] sm:$0xff]  ;;  %v9090_v19 = vld [vmem:[#allocation4_spill] sm:$0xff] }
 0x203   : > { %v6907_v48 = vpop.permute.xlu1 %4501  ;;  %v4493_v58 = vunpack.i.l.bf16 %v6729_v9  ;;  %v4368_v59 = vunpack.i.l.bf16 %v6524_v10  ;;  %v4439_v56 = vunpack.i.h.bf16 %v6708_v27  ;;  %v4438_v31 = vunpack.i.l.bf16 %v6708_v27 }
 0x204   : > { %v1753_v1 = vsel %vm1740_vm8, %v1720_v7, %v4358_v39  ;;  %v1754_v8 = vsel %vm1740_vm8, %v1721_v37, %v4359_v14  ;;  %v1743_v9 = vsel %vm1740_vm8, %v1710_v0, %v4333_v52  ;;  %v1744_v11 = vsel %vm1740_vm8, %v1711_v16, %v4334_v23  ;;  %v9089_v23 = vld [vmem:[#allocation52_spill] sm:$0xff] }
 0x205   : > { %v4512_v30 = vpop.permute.xlu0 %4511  ;;  %v4449_v46 = vunpack.i.h.bf16 %v6545_v32  ;;  %v4448_v15 = vunpack.i.l.bf16 %v6545_v32  ;;  %v1776_v29 = vsel %vm1773_vm9, %v1743_v9, %v4413_v5  ;;  %v1777_v27 = vsel %vm1773_vm9, %v1744_v11, %v4414_v43 }
 0x206   : > { %v4514_v34 = vunpack.i.h.bf16 %v4512_v30  ;;  %v4513_v44 = vunpack.i.l.bf16 %v4512_v30  ;;  %v1809_v38 = vsel %vm1806_vm10, %v1776_v29, %v4493_v58  ;;  %v1810_v41 = vsel %vm1806_vm10, %v1777_v27, %v4494_v3  ;;  %v9094_v3 = vld [vmem:[#allocation89_spill] sm:$0xff]  ;;  %v9101_v29 = vld [vmem:[#allocation16_spill] sm:$0xff] }
 0x207   : > { %v1757_v51 = vsel %vm1740_vm8, %v1724_v60, %v4368_v59  ;;  %v1758_v28 = vsel %vm1740_vm8, %v1725_v33, %v4369_v53  ;;  %v1786_v54 = vsel %vm1773_vm9, %v1753_v1, %v4438_v31  ;;  %v1787_v32 = vsel %vm1773_vm9, %v1754_v8, %v4439_v56  ;;  %v9096_v56 = vld [vmem:[#allocation88_spill] sm:$0xff]  ;;  %v9098_v8 = vld [vmem:[#allocation22_spill] sm:$0xff] }
 0x208   : > { %v6926_v42 = vsel %vm1806_vm10, %v1784_v18, %v4513_v44  ;;  %v6929_v57 = vsel %vm1806_vm10, %v1785_v36, %v4514_v34  ;;  %v1840_v12 = vpack.c.bf16 %v1810_v41, %v1809_v38  ;;  %v1790_v47 = vsel %vm1773_vm9, %v1757_v51, %v4448_v15  ;;  %v9091_v44 = vld [vmem:[#allocation67_spill] sm:$0xff]  ;;  %v9092_v18 = vld [vmem:[#allocation46_spill] sm:$0xff] }
 0x209   : > { %v1844_v20 = vpack.c.bf16 %v6929_v57, %v6926_v42  ;;  %v1791_v7 = vsel %vm1773_vm9, %v1758_v28, %v4449_v46  ;;  %v4099_v60 = vunpack.i.h.bf16 %v9088_v62  ;;  %v4098_v33 = vunpack.i.l.bf16 %v9088_v62  ;;  %v9100_v46 = vld [vmem:[#allocation23_spill] sm:$0xff]  ;;  %v9106_v62 = vld [vmem:[#allocation76_spill] sm:$0xff] }
 0x20a   : > { %v3978_v39 = vunpack.i.l.bf16 %v9063_v61  ;;  %v4179_v52 = vunpack.i.h.bf16 %v9089_v23  ;;  %v4178_v49 = vunpack.i.l.bf16 %v9089_v23  ;;  %v4059_v53 = vunpack.i.h.bf16 %v9090_v19  ;;  %v9148_v57 = vld [vmem:[#allocation31_spill] sm:$0xff] }
 0x20b   : > { %v4517_v10 = vpop.permute.xlu1 %4516  ;;  %v4058_v34 = vunpack.i.l.bf16 %v9090_v19  ;;  %v4214_v43 = vunpack.i.h.bf16 %v9091_v44  ;;  %v4213_v5 = vunpack.i.l.bf16 %v9091_v44  ;;  %v9093_v36 = vunpack.i.h.bf16 %v9092_v18 }
 0x20c   : > { %v4519_v50 = vunpack.i.h.bf16 %v4517_v10  ;;  %v4518_v17 = vunpack.i.l.bf16 %v4517_v10  ;;  %v9095_v59 = vunpack.i.l.bf16 %v9092_v18  ;;  %v9097_v1 = vunpack.i.l.bf16 %v9076_v22 }
 0x20d   : > { %v4527_v6 = vpop.permute.xlu0 %4526  ;;  %v1614_v58 = vsel %vm1608_vm3, %v9094_v3, %v9093_v36  ;;  %v9099_v11 = vunpack.i.h.bf16 %v9076_v22  ;;  %v9102_v27 = vunpack.i.h.bf16 %v9101_v29  ;;  %v4499_v44 = vunpack.i.h.bf16 %v6873_v21  ;;  %v9109_v36 = vld [vmem:[#allocation43_spill] sm:$0xff] }
 0x20e   : > { %v4529_v26 = vunpack.i.h.bf16 %v4527_v6  ;;  %v4528_v16 = vunpack.i.l.bf16 %v4527_v6  ;;  %v6951_v0 = vsel %vm1806_vm10, %v1786_v54, %v4518_v17  ;;  %v6954_v24 = vsel %vm1806_vm10, %v1787_v32, %v4519_v50  ;;  %v9104_v6 = vld [vmem:[#allocation72_spill] sm:$0xff] }
 0x20f   : > { %v1845_v2 = vpack.c.bf16 %v6954_v24, %v6951_v0  ;;  %v1613_v31 = vsel %vm1608_vm3, %v9096_v56, %v9095_v59  ;;  %v1627_v9 = vsel %vm1608_vm3, %v9098_v8, %v9097_v1  ;;  %v1628_v15 = vsel %vm1608_vm3, %v9100_v46, %v9099_v11  ;;  %v9156_v24 = vld [vmem:[#allocation35_spill] sm:$0xff] }
 0x210   : > { %v1823_v37 = vsel %vm1806_vm10, %v1790_v47, %v4528_v16  ;;  %v1824_v14 = vsel %vm1806_vm10, %v1791_v7, %v4529_v26  ;;  %v1661_v50 = vsel %vm1641_vm5, %v1628_v15, %v9102_v27  ;;  %v9103_v17 = vunpack.i.l.bf16 %v9101_v29 }
 0x211   : > { %3798 = vmatmul.msk.bf16.gmra.mxu0 %vm1875_vm11, %v1840_v12  ;;  %v1847_v30 = vpack.c.bf16 %v1824_v14, %v1823_v37  ;;  %v1646_v41 = vsel %vm1641_vm5, %v1613_v31, %v4098_v33  ;;  %v1647_v51 = vsel %vm1641_vm5, %v1614_v58, %v4099_v60  ;;  %v4259_v54 = vunpack.i.h.bf16 %v9104_v6  ;;  %v9105_v12 = vld [vmem:[#allocation82_spill] sm:$0xff]  ;;  %v9107_v37 = vld [vmem:[#allocation83_spill] sm:$0xff] }
 0x212   : > { %v1660_v38 = vsel %vm1641_vm5, %v1627_v9, %v9103_v17  ;;  %v1680_v22 = vsel %vm1674_vm6, %v1647_v51, %v4179_v52  ;;  %v1679_v28 = vsel %vm1674_vm6, %v1646_v41, %v4178_v49  ;;  %v4258_v32 = vunpack.i.l.bf16 %v9104_v6  ;;  %v9108_v52 = vld [vmem:[#allocation80_spill] sm:$0xff]  ;;  %v9110_v17 = vld [vmem:[#allocation5_spill] sm:$0xff] }
 0x213   : > { %3805 = vmatmul.msk.bf16.gmra.mxu3 %vm1875_vm11, %v1847_v30  ;;  %v4532_v10 = vpop.permute.xlu1 %4531  ;;  %v1693_v26 = vsel %vm1674_vm6, %v1660_v38, %v4213_v5  ;;  %v1694_v16 = vsel %vm1674_vm6, %v1661_v50, %v4214_v43  ;;  %v4339_v47 = vunpack.i.h.bf16 %v9105_v12  ;;  %v4338_v7 = vunpack.i.l.bf16 %v9105_v12 }
 0x214   : > { %v4294_v33 = vunpack.i.h.bf16 %v9106_v62  ;;  %v4293_v60 = vunpack.i.l.bf16 %v9106_v62  ;;  %v4419_v14 = vunpack.i.h.bf16 %v9107_v37  ;;  %v4418_v23 = vunpack.i.l.bf16 %v9107_v37  ;;  %v9116_v37 = vld [vmem:[#allocation20_spill] sm:$0xff] }
 0x215   : > { %v4374_v49 = vunpack.i.h.bf16 %v9108_v52  ;;  %v4373_v30 = vunpack.i.l.bf16 %v9108_v52  ;;  %v4498_v43 = vunpack.i.l.bf16 %v6873_v21  ;;  %v1712_v5 = vsel %vm1707_vm7, %v1679_v28, %v4258_v32  ;;  %v9118_v52 = vld [vmem:[#allocation25_spill] sm:$0xff] }
 0x216   : > { %v1713_v18 = vsel %vm1707_vm7, %v1680_v22, %v4259_v54  ;;  %v4454_v3 = vunpack.i.h.bf16 %v9109_v36  ;;  %v4453_v58 = vunpack.i.l.bf16 %v9109_v36  ;;  %v1745_v59 = vsel %vm1740_vm8, %v1712_v5, %v4338_v7  ;;  %v9111_v22 = vld [vmem:[#allocation12_spill] sm:$0xff] }
 0x217   : > { %v1746_v56 = vsel %vm1740_vm8, %v1713_v18, %v4339_v47  ;;  %v4534_v31 = vunpack.i.h.bf16 %v4532_v10  ;;  %v4533_v1 = vunpack.i.l.bf16 %v4532_v10  ;;  %v1726_v8 = vsel %vm1707_vm7, %v1693_v26, %v4293_v60  ;;  %v9112_v26 = vld [vmem:[#allocation53_spill] sm:$0xff]  ;;  %v9113_v47 = vld [vmem:[#allocation62_spill] sm:$0xff]  ;;  %v9120_v5 = vld [vmem:[#allocation24_spill] sm:$0xff] }
 0x218   : > { %v1727_v9 = vsel %vm1707_vm7, %v1694_v16, %v4294_v33  ;;  %v1778_v21 = vsel %vm1773_vm9, %v1745_v59, %v4418_v23  ;;  %v1779_v46 = vsel %vm1773_vm9, %v1746_v56, %v4419_v14  ;;  %v1759_v15 = vsel %vm1740_vm8, %v1726_v8, %v4373_v30  ;;  %v9114_v33 = vld [vmem:[#allocation40_spill] sm:$0xff] }
 0x219   : > { %v1760_v29 = vsel %vm1740_vm8, %v1727_v9, %v4374_v49  ;;  %v1811_v27 = vsel %vm1806_vm10, %v1778_v21, %v4498_v43  ;;  %v1812_v50 = vsel %vm1806_vm10, %v1779_v46, %v4499_v44  ;;  %v4024_v10 = vunpack.i.h.bf16 %v9110_v17  ;;  %v9119_v44 = vld [vmem:[#allocation68_spill] sm:$0xff] }
 0x21a   : > { %v4023_v38 = vunpack.i.l.bf16 %v9110_v17  ;;  %v1792_v41 = vsel %vm1773_vm9, %v1759_v15, %v4453_v58  ;;  %v1793_v51 = vsel %vm1773_vm9, %v1760_v29, %v4454_v3  ;;  %v4104_v28 = vunpack.i.h.bf16 %v9111_v22  ;;  %v9123_v17 = vld [vmem:[#allocation74_spill] sm:$0xff] }
 0x21b   : > { %v7021_v11 = vpop.permute.xlu1 %4546  ;;  %v4103_v6 = vunpack.i.l.bf16 %v9111_v22  ;;  %v1825_v54 = vsel %vm1806_vm10, %v1792_v41, %v4533_v1  ;;  %v1826_v32 = vsel %vm1806_vm10, %v1793_v51, %v4534_v31  ;;  %v4139_v16 = vunpack.i.h.bf16 %v9112_v26  ;;  %v9121_v31 = vld [vmem:[#allocation19_spill] sm:$0xff] }
 0x21c   : > { %v4138_v12 = vunpack.i.l.bf16 %v9112_v26  ;;  %v4183_v7 = vunpack.i.l.bf16 %v9113_v47  ;;  %v1841_v62 = vpack.c.bf16 %v1812_v50, %v1811_v27  ;;  %v9115_v60 = vunpack.i.l.bf16 %v9114_v33  ;;  %v9122_v27 = vld [vmem:[#allocation71_spill] sm:$0xff] }
 0x21d   : > { %v9117_v23 = vunpack.i.h.bf16 %v9063_v61  ;;  %v4184_v30 = vunpack.i.h.bf16 %v9113_v47  ;;  %v4218_v43 = vunpack.i.l.bf16 %v9119_v44  ;;  %v1596_v18 = vsel %vm280_vm0, %v9120_v5, %v3978_v39  ;;  %v9124_v41 = vld [vmem:[#allocation75_spill] sm:$0xff] }
 0x21e   : > { %v1582_v14 = vsel %vm280_vm0, %v9116_v37, %v9115_v60  ;;  %v4219_v3 = vunpack.i.h.bf16 %v9119_v44  ;;  %v1848_v58 = vpack.c.bf16 %v1826_v32, %v1825_v54  ;;  %v1629_v56 = vsel %vm1608_vm3, %v1596_v18, %v4058_v34  ;;  %v9125_v32 = vld [vmem:[#allocation21_spill] sm:$0xff] }
 0x21f   : > { %v1597_v49 = vsel %vm280_vm0, %v9118_v52, %v9117_v23  ;;  %v1615_v36 = vsel %vm1608_vm3, %v1582_v14, %v4023_v38  ;;  %v1616_v61 = vsel %vm1608_vm3, %v9121_v31, %v4024_v10  ;;  %v1662_v8 = vsel %vm1641_vm5, %v1629_v56, %v4138_v12  ;;  %v4537_v12 = vpop.permute.xlu2 %4536 }
 0x220   : > { %v1630_v59 = vsel %vm1608_vm3, %v1597_v49, %v4059_v53  ;;  %v1648_v39 = vsel %vm1641_vm5, %v1615_v36, %v4103_v6  ;;  %v1649_v1 = vsel %vm1641_vm5, %v1616_v61, %v4104_v28  ;;  %v1695_v34 = vsel %vm1674_vm6, %v1662_v8, %v4218_v43  ;;  %v9127_v8 = vld [vmem:[#allocation36_spill] sm:$0xff] }
 0x221   : > { %3799 = vmatmul.msk.bf16.gmra.mxu0 %vm1875_vm11, %v1841_v62  ;;  %v1663_v9 = vsel %vm1641_vm5, %v1630_v59, %v4139_v16  ;;  %v1681_v21 = vsel %vm1674_vm6, %v1648_v39, %v4183_v7  ;;  %v1682_v19 = vsel %vm1674_vm6, %v1649_v1, %v4184_v30  ;;  %v4299_v50 = vunpack.i.h.bf16 %v9122_v27  ;;  %v9126_v7 = vld [vmem:[#allocation84_spill] sm:$0xff] }
 0x222   : > { %v1696_v29 = vsel %vm1674_vm6, %v1663_v9, %v4219_v3  ;;  %v4264_v10 = vunpack.i.h.bf16 %v9123_v17  ;;  %v4263_v38 = vunpack.i.l.bf16 %v9123_v17  ;;  %v4344_v51 = vunpack.i.h.bf16 %v9124_v41 }
 0x223   : > { %3806 = vmatmul.msk.bf16.gmra.mxu3 %vm1875_vm11, %v1848_v58  ;;  %v4562_v53 = vpop.permute.xlu1 %4561  ;;  %v4343_v22 = vunpack.i.l.bf16 %v9124_v41  ;;  %v4298_v54 = vunpack.i.l.bf16 %v9122_v27  ;;  %v4424_v26 = vunpack.i.h.bf16 %v9125_v32  ;;  %v4423_v16 = vunpack.i.l.bf16 %v9125_v32  ;;  %v9130_v27 = vld [vmem:[#allocation60_spill] sm:$0xff] }
 0x224   : > { %v4564_v46 = vunpack.i.h.bf16 %v4562_v53  ;;  %v4563_v15 = vunpack.i.l.bf16 %v4562_v53  ;;  %v4379_v62 = vunpack.i.h.bf16 %v9126_v7  ;;  %v4378_v33 = vunpack.i.l.bf16 %v9126_v7  ;;  %v9128_v53 = vld [vmem:[#allocation14_spill] sm:$0xff]  ;;  %v9132_v41 = vld [vmem:[#allocation28_spill] sm:$0xff]  ;;  %v9134_v7 = vld [vmem:[#allocation85_spill] sm:$0xff] }
 0x225   : > { %v4503_v60 = vunpack.i.l.bf16 %v6907_v48  ;;  %v1715_v37 = vsel %vm1707_vm7, %v1682_v19, %v4264_v10  ;;  %v4459_v14 = vunpack.i.h.bf16 %v6780_v35  ;;  %v4458_v23 = vunpack.i.l.bf16 %v6780_v35  ;;  %v9131_v10 = vld [vmem:[#allocation29_spill] sm:$0xff] }
 0x226   : > { %v7081_v28 = vsel %vm1806_vm10, %v6849_v45, %v4563_v15  ;;  %v7085_v6 = vsel %vm1806_vm10, %v6852_v13, %v4564_v46  ;;  %v4504_v45 = vunpack.i.h.bf16 %v6907_v48  ;;  %v1714_v13 = vsel %vm1707_vm7, %v1681_v21, %v4263_v38  ;;  %v9129_v46 = vld [vmem:[#allocation55_spill] sm:$0xff] }
 0x227   : > { %v1854_v47 = vpack.c.bf16 %v7085_v6, %v7081_v28  ;;  %v1747_v52 = vsel %vm1740_vm8, %v1714_v13, %v4343_v22  ;;  %v1748_v49 = vsel %vm1740_vm8, %v1715_v37, %v4344_v51  ;;  %v4539_v30 = vunpack.i.h.bf16 %v4537_v12  ;;  %v9133_v22 = vld [vmem:[#allocation77_spill] sm:$0xff]  ;;  %v9135_v13 = vld [vmem:[#allocation18_spill] sm:$0xff] }
 0x228   : > { %v4538_v44 = vunpack.i.l.bf16 %v4537_v12  ;;  %v1729_v43 = vsel %vm1707_vm7, %v1696_v29, %v4299_v50  ;;  %v1728_v5 = vsel %vm1707_vm7, %v1695_v34, %v4298_v54  ;;  %v1780_v48 = vsel %vm1773_vm9, %v1747_v52, %v4423_v16 }
 0x229   : > { %v1781_v18 = vsel %vm1773_vm9, %v1748_v49, %v4424_v26  ;;  %v1761_v36 = vsel %vm1740_vm8, %v1728_v5, %v4378_v33  ;;  %v1762_v3 = vsel %vm1740_vm8, %v1729_v43, %v4379_v62  ;;  %v1813_v35 = vsel %vm1806_vm10, %v1780_v48, %v4503_v60  ;;  %v4542_v26 = vpop.permute.xlu0 %4541 }
 0x22a   : > { %v1814_v58 = vsel %vm1806_vm10, %v1781_v18, %v4504_v45  ;;  %v1794_v59 = vsel %vm1773_vm9, %v1761_v36, %v4458_v23  ;;  %v1795_v56 = vsel %vm1773_vm9, %v1762_v3, %v4459_v14  ;;  %v3984_v9 = vunpack.i.h.bf16 %v9127_v8 }
 0x22b   : > { %v1827_v31 = vsel %vm1806_vm10, %v1794_v59, %v4538_v44  ;;  %v1828_v61 = vsel %vm1806_vm10, %v1795_v56, %v4539_v30  ;;  %v1842_v39 = vpack.c.bf16 %v1814_v58, %v1813_v35  ;;  %v3983_v21 = vunpack.i.l.bf16 %v9127_v8  ;;  %v9136_v59 = vld [vmem:[#allocation42_spill] sm:$0xff] }
 0x22c   : > { %v1849_v1 = vpack.c.bf16 %v1828_v61, %v1827_v31  ;;  %v4064_v19 = vunpack.i.h.bf16 %v9128_v53  ;;  %v4063_v34 = vunpack.i.l.bf16 %v9128_v53  ;;  %v4144_v15 = vunpack.i.h.bf16 %v9129_v46  ;;  %v9137_v61 = vld [vmem:[#allocation13_spill] sm:$0xff]  ;;  %v9138_v8 = vld [vmem:[#allocation50_spill] sm:$0xff] }
 0x22d   : > { %v4143_v29 = vunpack.i.l.bf16 %v9129_v46  ;;  %v4224_v50 = vunpack.i.h.bf16 %v9130_v27  ;;  %v4223_v17 = vunpack.i.l.bf16 %v9130_v27  ;;  %v1599_v38 = vsel %vm280_vm0, %v9131_v10, %v3984_v9  ;;  %v9139_v53 = vld [vmem:[#allocation69_spill] sm:$0xff] }
 0x22e   : > { %v1598_v51 = vsel %vm280_vm0, %v9132_v41, %v3983_v21  ;;  %v4304_v54 = vunpack.i.h.bf16 %v9133_v22  ;;  %v4303_v32 = vunpack.i.l.bf16 %v9133_v22  ;;  %v1632_v16 = vsel %vm1608_vm3, %v1599_v38, %v4064_v19  ;;  %v9143_v10 = vld [vmem:[#allocation81_spill] sm:$0xff] }
 0x22f   : > { %v1631_v12 = vsel %vm1608_vm3, %v1598_v51, %v4063_v34  ;;  %v4384_v62 = vunpack.i.h.bf16 %v9134_v7  ;;  %v4383_v33 = vunpack.i.l.bf16 %v9134_v7  ;;  %v1665_v60 = vsel %vm1641_vm5, %v1632_v16, %v4144_v15  ;;  %v9141_v34 = vld [vmem:[#allocation32_spill] sm:$0xff]  ;;  %v9142_v15 = vld [vmem:[#allocation78_spill] sm:$0xff] }
 0x230   : > { %v1664_v45 = vsel %vm1641_vm5, %v1631_v12, %v4143_v29  ;;  %v4464_v37 = vunpack.i.h.bf16 %v9135_v13  ;;  %v4463_v14 = vunpack.i.l.bf16 %v9135_v13  ;;  %v1698_v23 = vsel %vm1674_vm6, %v1665_v60, %v4224_v50 }
 0x231   : > { %3800 = vmatmul.msk.bf16.gmra.mxu0 %vm1875_vm11, %v1842_v39  ;;  %v1697_v52 = vsel %vm1674_vm6, %v1664_v45, %v4223_v17  ;;  %v4544_v49 = vunpack.i.h.bf16 %v4542_v26  ;;  %v4543_v30 = vunpack.i.l.bf16 %v4542_v26  ;;  %v1731_v43 = vsel %vm1707_vm7, %v1698_v23, %v4304_v54  ;;  %v9144_v23 = vld [vmem:[#allocation44_spill] sm:$0xff] }
 0x232   : > { %v1730_v44 = vsel %vm1707_vm7, %v1697_v52, %v4303_v32  ;;  %v1764_v48 = vsel %vm1740_vm8, %v1731_v43, %v4384_v62  ;;  %v3989_v56 = vunpack.i.h.bf16 %v9136_v59  ;;  %v3988_v31 = vunpack.i.l.bf16 %v9136_v59  ;;  %v9150_v59 = vld [vmem:[#allocation73_spill] sm:$0xff] }
 0x233   : > { %3807 = vmatmul.msk.bf16.gmra.mxu3 %vm1875_vm11, %v1849_v1  ;;  %v1763_v5 = vsel %vm1740_vm8, %v1730_v44, %v4383_v33  ;;  %v1797_v36 = vsel %vm1773_vm9, %v1764_v48, %v4464_v37  ;;  %v4069_v39 = vunpack.i.h.bf16 %v9137_v61  ;;  %v4068_v1 = vunpack.i.l.bf16 %v9137_v61  ;;  %v4552_v61 = vpop.permute.xlu2 %4551 }
 0x234   : > { %v1796_v18 = vsel %vm1773_vm9, %v1763_v5, %v4463_v14  ;;  %v1830_v35 = vsel %vm1806_vm10, %v1797_v36, %v4544_v49  ;;  %v4149_v9 = vunpack.i.h.bf16 %v9138_v8  ;;  %v4148_v21 = vunpack.i.l.bf16 %v9138_v8  ;;  %v9146_v5 = vld [vmem:[#allocation56_spill] sm:$0xff]  ;;  %v9147_v36 = vld [vmem:[#allocation70_spill] sm:$0xff] }
 0x235   : > { %v1829_v3 = vsel %vm1806_vm10, %v1796_v18, %v4543_v30  ;;  %v4229_v19 = vunpack.i.h.bf16 %v9139_v53  ;;  %v4228_v63 = vunpack.i.l.bf16 %v9139_v53  ;;  %v1600_v46 = vsel %vm280_vm0, %v9141_v34, %v3988_v31  ;;  %v9145_v30 = vld [vmem:[#allocation7_spill] sm:$0xff]  ;;  %v9151_v8 = vld [vmem:[#allocation86_spill] sm:$0xff] }
 0x236   : > { %v1850_v58 = vpack.c.bf16 %v1830_v35, %v1829_v3  ;;  %v4309_v29 = vunpack.i.h.bf16 %v9142_v15  ;;  %v4308_v27 = vunpack.i.l.bf16 %v9142_v15  ;;  %v1633_v50 = vsel %vm1608_vm3, %v1600_v46, %v4068_v1  ;;  %v9149_v35 = vld [vmem:[#allocation30_spill] sm:$0xff] }
 0x237   : > { %v4389_v38 = vunpack.i.h.bf16 %v9143_v10  ;;  %v4388_v41 = vunpack.i.l.bf16 %v9143_v10  ;;  %v1666_v22 = vsel %vm1641_vm5, %v1633_v50, %v4148_v21  ;;  %v4469_v54 = vunpack.i.h.bf16 %v6800_v55 }
 0x238   : > { %v4468_v32 = vunpack.i.l.bf16 %v6800_v55  ;;  %v1699_v26 = vsel %vm1674_vm6, %v1666_v22, %v4228_v63  ;;  %v4549_v12 = vunpack.i.h.bf16 %v7021_v11  ;;  %v4548_v7 = vunpack.i.l.bf16 %v7021_v11  ;;  %v9152_v22 = vld [vmem:[#allocation39_spill] sm:$0xff] }
 0x239   : > { %v1732_v62 = vsel %vm1707_vm7, %v1699_v26, %v4308_v27  ;;  %v3994_v52 = vunpack.i.h.bf16 %v9144_v23  ;;  %v3993_v49 = vunpack.i.l.bf16 %v9144_v23  ;;  %v4074_v44 = vunpack.i.h.bf16 %v9145_v30  ;;  %v9153_v26 = vld [vmem:[#allocation17_spill] sm:$0xff]  ;;  %v4557_v23 = vpop.permute.xlu0 %4556 }
 0x23a   : > { %v1765_v45 = vsel %vm1740_vm8, %v1732_v62, %v4388_v41  ;;  %v4073_v43 = vunpack.i.l.bf16 %v9145_v30  ;;  %v4154_v48 = vunpack.i.h.bf16 %v9146_v5  ;;  %v4153_v18 = vunpack.i.l.bf16 %v9146_v5  ;;  %v9159_v30 = vld [vmem:[#allocation87_spill] sm:$0xff] }
 0x23b   : > { %v1798_v13 = vsel %vm1773_vm9, %v1765_v45, %v4468_v32  ;;  %v4234_v3 = vunpack.i.h.bf16 %v9147_v36  ;;  %v4233_v42 = vunpack.i.l.bf16 %v9147_v36  ;;  %v4313_v31 = vunpack.i.l.bf16 %v9150_v59  ;;  %v9155_v45 = vld [vmem:[#allocation63_spill] sm:$0xff] }
 0x23c   : > { %v1831_v37 = vsel %vm1806_vm10, %v1798_v13, %v4548_v7  ;;  %v4393_v21 = vunpack.i.l.bf16 %v9151_v8  ;;  %v4474_v63 = vunpack.i.h.bf16 %v6827_v25  ;;  %v4554_v46 = vunpack.i.h.bf16 %v4552_v61  ;;  %v9154_v7 = vld [vmem:[#allocation58_spill] sm:$0xff] }
 0x23d   : > { %v4553_v15 = vunpack.i.l.bf16 %v4552_v61  ;;  %v3998_v32 = vunpack.i.l.bf16 %v9152_v22  ;;  %v4159_v62 = vunpack.i.h.bf16 %v9154_v7  ;;  %v4238_v0 = vunpack.i.l.bf16 %v9155_v45  ;;  %v9157_v13 = vld [vmem:[#allocation34_spill] sm:$0xff] }
 0x241   : > { %3801 = vmatmul.msk.bf16.gmra.mxu0 %vm1875_vm11, %v1843_v4  ;;  %v1601_v4 = vsel %vm280_vm0, %v9140_v40, %v3989_v56  ;;  %v4314_v56 = vunpack.i.h.bf16 %v9150_v59  ;;  %v4473_v40 = vunpack.i.l.bf16 %v6827_v25 }
 0x242   : > { %v1634_v17 = vsel %vm1608_vm3, %v1601_v4, %v4069_v39 }
 0x243   : > { %3808 = vmatmul.msk.bf16.gmra.mxu3 %vm1875_vm11, %v1850_v58  ;;  %v1667_v51 = vsel %vm1641_vm5, %v1634_v17, %v4149_v9  ;;  %v1602_v58 = vsel %vm280_vm0, %v9149_v35, %v3993_v49  ;;  %v4394_v9 = vunpack.i.h.bf16 %v9151_v8  ;;  %v4558_v35 = vunpack.i.l.bf16 %v4557_v23 }
 0x244   : > { %v1700_v16 = vsel %vm1674_vm6, %v1667_v51, %v4229_v19  ;;  %v1635_v1 = vsel %vm1608_vm3, %v1602_v58, %v4073_v43  ;;  %v4398_v43 = vunpack.i.l.bf16 %v9159_v30 }
 0x245   : > { %v1733_v33 = vsel %vm1707_vm7, %v1700_v16, %v4309_v29  ;;  %v1668_v53 = vsel %vm1641_vm5, %v1635_v1, %v4153_v18  ;;  %v4079_v16 = vunpack.i.h.bf16 %v9153_v26  ;;  %v9160_v18 = vld [vmem:[#allocation27_spill] sm:$0xff] }
 0x246   : > { %v1766_v60 = vsel %vm1740_vm8, %v1733_v33, %v4389_v38  ;;  %v1701_v4 = vsel %vm1674_vm6, %v1668_v53, %v4233_v42  ;;  %v4158_v33 = vunpack.i.l.bf16 %v9154_v7  ;;  %v4479_v36 = vunpack.i.h.bf16 %v9160_v18  ;;  %v7270_v53 = vld [vmem:[%s8742_s3] ss:$0 sm:$0xff] }
 0x247   : > { %v1799_v55 = vsel %vm1773_vm9, %v1766_v60, %v4469_v54  ;;  %v1734_v27 = vsel %vm1707_vm7, %v1701_v4, %v4313_v31  ;;  %v3999_v54 = vunpack.i.h.bf16 %v9152_v22  ;;  %v4239_v60 = vunpack.i.h.bf16 %v9155_v45  ;;  %v2261_v22 = vld [vmem:[#allocation3 + $0x118] sm:$0xff] }
 0x248   : > { %v1832_v14 = vsel %vm1806_vm10, %v1799_v55, %v4549_v12  ;;  %v1767_v50 = vsel %vm1740_vm8, %v1734_v27, %v4393_v21  ;;  %v4078_v12 = vunpack.i.l.bf16 %v9153_v26  ;;  %v1604_v55 = vsel %vm280_vm0, %v9157_v13, %v3998_v32  ;;  %v7265_v21 = vld [vmem:[%s8741_s2] ss:$0 sm:$0xff] }
 0x249   : > { %v1851_v11 = vpack.c.bf16 %v1832_v14, %v1831_v37  ;;  %v1800_v10 = vsel %vm1773_vm9, %v1767_v50, %v4473_v40  ;;  %v9158_v37 = vld [vmem:[#allocation79_spill] sm:$0xff] }
 0x24a   : > { %v1833_v25 = vsel %vm1806_vm10, %v1800_v10, %v4553_v15  ;;  %v4319_v14 = vunpack.i.h.bf16 %v9158_v37  ;;  %v1637_v49 = vsel %vm1608_vm3, %v1604_v55, %v4078_v12  ;;  %v2517_v12 = vrot.slane %v2261_v22, 1 }
 0x24b   : > { %v1670_v5 = vsel %vm1641_vm5, %v1637_v49, %v4158_v33 }
 0x251   : > { %3802 = vmatmul.msk.bf16.gmra.mxu0 %vm1875_vm11, %v1844_v20  ;;  %v1603_v20 = vsel %vm280_vm0, %v9148_v57, %v3994_v52  ;;  %v1703_v57 = vsel %vm1674_vm6, %v1670_v5, %v4238_v0 }
 0x252   : > { %v1636_v39 = vsel %vm1608_vm3, %v1603_v20, %v4074_v44  ;;  %v4399_v44 = vunpack.i.h.bf16 %v9159_v30  ;;  %v4559_v20 = vunpack.i.h.bf16 %v4557_v23 }
 0x253   : > { %3809 = vmatmul.msk.bf16.gmra.mxu3 %vm1875_vm11, %v1851_v11  ;;  %v1669_v19 = vsel %vm1641_vm5, %v1636_v39, %v4154_v48  ;;  %v4318_v11 = vunpack.i.l.bf16 %v9158_v37 }
 0x254   : > { %v1702_v34 = vsel %vm1674_vm6, %v1669_v19, %v4234_v3  ;;  %v4478_v3 = vunpack.i.l.bf16 %v9160_v18 }
 0x255   : > { %v1735_v29 = vsel %vm1707_vm7, %v1702_v34, %v4314_v56  ;;  %v1736_v58 = vsel %vm1707_vm7, %v1703_v57, %v4318_v11 }
 0x256   : > { %v1768_v17 = vsel %vm1740_vm8, %v1735_v29, %v4394_v9  ;;  %v1769_v56 = vsel %vm1740_vm8, %v1736_v58, %v4398_v43 }
 0x257   : > { %v1801_v38 = vsel %vm1773_vm9, %v1768_v17, %v4474_v63  ;;  %v1802_v61 = vsel %vm1773_vm9, %v1769_v56, %v4478_v3 }
 0x258   : > { %v1834_v41 = vsel %vm1806_vm10, %v1801_v38, %v4554_v46  ;;  %v1835_v1 = vsel %vm1806_vm10, %v1802_v61, %v4558_v35 }
 0x259   : > { %v1852_v51 = vpack.c.bf16 %v1834_v41, %v1833_v25 }
 0x261   : > { %3803 = vmatmul.msk.bf16.gmra.mxu0 %vm1875_vm11, %v1845_v2  ;;  %v1605_v2 = vsel %vm280_vm0, %v9156_v24, %v3999_v54  ;;  %v7292_v54 = vld [vmem:[#allocation3 + $0x10] sm:$0xff]  ;;  %vm3627_vm0 = vcmask 588800  }
 0x262   : > { %v1638_v52 = vsel %vm1608_vm3, %v1605_v2, %v4079_v16  ;;  %v2233_v16 = vld [vmem:[#allocation3 + $0x38] sm:$0xff] }
 0x263   : > { %3810 = vmatmul.msk.bf16.gmra.mxu3 %vm1875_vm11, %v1852_v51  ;;  %v1671_v48 = vsel %vm1641_vm5, %v1638_v52, %v4159_v62  ;;  %v2482_v2 = vrot.slane %v2233_v16, 1 }
 0x264   : > { %v1704_v42 = vsel %vm1674_vm6, %v1671_v48, %v4239_v60 }
 0x265   : > { %v1737_v59 = vsel %vm1707_vm7, %v1704_v42, %v4319_v14 }
 0x266   : > { %v1770_v31 = vsel %vm1740_vm8, %v1737_v59, %v4399_v44 }
 0x267   : > { %v1803_v39 = vsel %vm1773_vm9, %v1770_v31, %v4479_v36 }
 0x268   : > { %v1836_v8 = vsel %vm1806_vm10, %v1803_v39, %v4559_v20 }
 0x269   : > { %v1853_v9 = vpack.c.bf16 %v1836_v8, %v1835_v1 }
 0x273   : > { %3811 = vmatmul.msk.bf16.gmra.mxu3 %vm1875_vm11, %v1853_v9 }
 0x27a   : > { %v1972_v19 = vpop.f32.mrf.mxu3 }
 0x27b   : > { %v2035_v63 = vmul.f32 %v7265_v21, %v1972_v19 }
 0x27d   : > { %v2071_v40 = vadd.f32 %v7270_v53, %v2035_v63  ;;  %v2237_v63 = vld [vmem:[#allocation3 + $0x58] sm:$0xff] }
 0x27e   : > { %v1937_v4 = vpop.f32.mrf.mxu0 }
 0x27f   : > { %v2103_v34 = vmax.f32 %v2071_v40, 0.0  ;;  %v2021_v46 = vmul.f32 %v7265_v21, %v1937_v4 }
 0x281   : > { %2208 = vst.msk [vmem:[#allocation3 + $0x108] sm:$0xff] %vm1608_vm3, %v2103_v34  ;;  %v2057_v15 = vadd.f32 %v7270_v53, %v2021_v46  ;;  %v2487_v46 = vrot.slane %v2237_v63, 1 }
 0x282   : > { %v1974_v29 = vpop.f32.mrf.mxu3 }
 0x283   : > { %v2089_v27 = vmax.f32 %v2057_v15, 0.0  ;;  %3812 = vmatmul.msk.bf16.gmra.mxu3 %vm1875_vm11, %v1854_v47  ;;  %v2036_v50 = vmul.f32 %v7265_v21, %v1974_v29  ;;  %v7290_v47 = vld [vmem:[#allocation3 + $0x8] sm:$0xff] }
 0x284   : > { %v4565_v26 = vpack.i.bf16 %v7292_v54, %v7290_v47 }
 0x285   : > { %2194 = vst.msk [vmem:[#allocation3 + $0x28] sm:$0xff] %vm1608_vm3, %v2089_v27  ;;  %v2072_v17 = vadd.f32 %v7270_v53, %v2036_v50 }
 0x286   : > { %v1939_v10 = vpop.f32.mrf.mxu0  ;;  %4566 = vrot.lane.b32.xlu2 %v4565_v26, %s5248_s8 }
 0x287   : > { %v2104_v38 = vmax.f32 %v2072_v17, 0.0  ;;  %v2022_v25 = vmul.f32 %v7265_v21, %v1939_v10 }
 0x288   : > { %v7288_v28 = vld [vmem:[#allocation3 + $0x108] sm:$0xff] }
 0x289   : > { %2209 = vst.msk [vmem:[#allocation3 + $0x110] sm:$0xff] %vm1608_vm3, %v2104_v38  ;;  %v2058_v41 = vadd.f32 %v7270_v53, %v2022_v25  ;;  %v2514_v62 = vrot.slane %v7288_v28, 1  ;;  %v8866_v0 = vrot.slane %v7288_v28, 7 }
 0x28b   : > { %v2090_v51 = vmax.f32 %v2058_v41, 0.0 }
 0x28c   : > { %v7299_v45 = vld [vmem:[#allocation3 + $0x28] sm:$0xff] }
 0x28d   : > { %2195 = vst.msk [vmem:[#allocation3 + $0x30] sm:$0xff] %vm1608_vm3, %v2090_v51  ;;  %v2479_v52 = vrot.slane %v7299_v45, 1  ;;  %v8872_v18 = vrot.slane %v7299_v45, 7 }
 0x28e   : > { %v1942_v6 = vpop.f32.mrf.mxu0 }
 0x28f   : > { %v2023_v32 = vmul.f32 %v7265_v21, %v1942_v6 }
 0x290   : > { %v2260_v7 = vld [vmem:[#allocation3 + $0x110] sm:$0xff] }
 0x291   : > { %v2059_v33 = vadd.f32 %v7270_v53, %v2023_v32  ;;  %v2515_v60 = vrot.slane %v2260_v7, 1  ;;  %v2389_v24 = vrot.slane %v2260_v7, 7  ;;  %v7304_v13 = vpack.i.bf16 %v2260_v7, %v7288_v28  ;;  %v2265_v32 = vld [vmem:[#allocation3 + $0x138] sm:$0xff] }
 0x293   : > { %v2091_v55 = vmax.f32 %v2059_v33, 0.0  ;;  %v2516_v37 = vsel %vm699_vm1, %v2514_v62, %v2515_v60  ;;  %v2518_v14 = vsel %vm699_vm1, %v2515_v60, %v2517_v12  ;;  %v7311_v11 = vsel %vm570_vm2, %v8866_v0, %v2389_v24 }
 0x294   : > { %v2232_v23 = vld [vmem:[#allocation3 + $0x30] sm:$0xff]  ;;  %v7314_v49 = vpack.i.bf16 %v2518_v14, %v2516_v37  ;;  %v2522_v24 = vrot.slane %v2265_v32, 1  ;;  %v2269_v32 = vld [vmem:[#allocation3 + $0x158] sm:$0xff] }
 0x295   : > { %2196 = vst.msk [vmem:[#allocation3 + $0x48] sm:$0xff] %vm1608_vm3, %v2091_v55  ;;  %v7318_v30 = vpack.i.bf16 %v2232_v23, %v7299_v45  ;;  %v2354_v44 = vrot.slane %v2232_v23, 7  ;;  %v2480_v43 = vrot.slane %v2232_v23, 1 }
 0x296   : > { %9161 = vst [vmem:[#allocation26_spill] sm:$0xff] %v7314_v49  ;;  %v1977_v5 = vpop.f32.mrf.mxu3  ;;  %v1944_v48 = vpop.f32.mrf.mxu0 }
 0x297   : > { %v2037_v36 = vmul.f32 %v7265_v21, %v1977_v5  ;;  %v2024_v3 = vmul.f32 %v7265_v21, %v1944_v48  ;;  %4571 = vrot.lane.b32.xlu0 %v7318_v30, %s5248_s8  ;;  %v2481_v42 = vsel %vm699_vm1, %v2479_v52, %v2480_v43  ;;  %v2483_v57 = vsel %vm699_vm1, %v2480_v43, %v2482_v2 }
 0x298   : > { %v7327_v20 = vpack.i.bf16 %v2483_v57, %v2481_v42  ;;  %v7332_v35 = vsel %vm570_vm2, %v8872_v18, %v2354_v44 }
 0x299   : > { %v2073_v58 = vadd.f32 %v7270_v53, %v2037_v36  ;;  %v2060_v59 = vadd.f32 %v7270_v53, %v2024_v3 }
 0x29a   : > { %9162 = vst [vmem:[#allocation41_spill] sm:$0xff] %v7327_v20 }
 0x29b   : > { %v2105_v56 = vmax.f32 %v2073_v58, 0.0  ;;  %v2092_v31 = vmax.f32 %v2060_v59, 0.0 }
 0x29c   : > { %v7342_v40 = vld [vmem:[#allocation3 + $0x48] sm:$0xff] }
 0x29d   : > { %2210 = vst.msk [vmem:[#allocation3 + $0x128] sm:$0xff] %vm1608_vm3, %v2105_v56  ;;  %v2484_v29 = vrot.slane %v7342_v40, 1  ;;  %v8871_v38 = vrot.slane %v7342_v40, 7  ;;  %v2241_v56 = vld [vmem:[#allocation3 + $0x78] sm:$0xff] }
 0x29e   : > { %2197 = vst.msk [vmem:[#allocation3 + $0x50] sm:$0xff] %vm1608_vm3, %v2092_v31  ;;  %v1979_v61 = vpop.f32.mrf.mxu3  ;;  %v1947_v39 = vpop.f32.mrf.mxu0  ;;  %v2475_v31 = vrot.slane %v7292_v54, 1  ;;  %v2492_v63 = vrot.slane %v2241_v56, 1 }
 0x29f   : > { %v2038_v1 = vmul.f32 %v7265_v21, %v1979_v61  ;;  %v2025_v8 = vmul.f32 %v7265_v21, %v1947_v39  ;;  %v2474_v61 = vrot.slane %v7290_v47, 1 }
 0x2a1   : > { %v2074_v9 = vadd.f32 %v7270_v53, %v2038_v1  ;;  %v2061_v19 = vadd.f32 %v7270_v53, %v2025_v8 }
 0x2a3   : > { %v2106_v4 = vmax.f32 %v2074_v9, 0.0  ;;  %v2093_v34 = vmax.f32 %v2061_v19, 0.0  ;;  %v2229_v9 = vld [vmem:[#allocation3 + $0x18] sm:$0xff] }
 0x2a4   : > { %v7366_v62 = vld [vmem:[#allocation3 + $0x128] sm:$0xff]  ;;  %v2477_v19 = vrot.slane %v2229_v9, 1 }
 0x2a5   : > { %2211 = vst.msk [vmem:[#allocation3 + $0x130] sm:$0xff] %vm1608_vm3, %v2106_v4  ;;  %v2236_v15 = vld [vmem:[#allocation3 + $0x50] sm:$0xff]  ;;  %v2519_v55 = vrot.slane %v7366_v62, 1  ;;  %v8863_v44 = vrot.slane %v7366_v62, 7 }
 0x2a6   : > { %2198 = vst.msk [vmem:[#allocation3 + $0x68] sm:$0xff] %vm1608_vm3, %v2093_v34  ;;  %v1982_v27 = vpop.f32.mrf.mxu3  ;;  %v1949_v50 = vpop.f32.mrf.mxu0  ;;  %v7348_v17 = vpack.i.bf16 %v2236_v15, %v7342_v40  ;;  %v2485_v10 = vrot.slane %v2236_v15, 1  ;;  %v2359_v25 = vrot.slane %v2236_v15, 7 }
 0x2a7   : > { %v2039_v41 = vmul.f32 %v7265_v21, %v1982_v27  ;;  %v2026_v51 = vmul.f32 %v7265_v21, %v1949_v50  ;;  %v7399_v27 = vsel %vm699_vm1, %v2474_v61, %v2475_v31  ;;  %v7402_v50 = vsel %vm699_vm1, %v2475_v31, %v2477_v19 }
 0x2a8   : > { %9163 = vst [vmem:[#allocation45_spill] sm:$0xff] %v7348_v17  ;;  %4576 = vrot.lane.b32.xlu1 %v7348_v17, %s5248_s8  ;;  %v2486_v22 = vsel %vm699_vm1, %v2484_v29, %v2485_v10  ;;  %v2488_v6 = vsel %vm699_vm1, %v2485_v10, %v2487_v46  ;;  %v7360_v26 = vsel %vm570_vm2, %v8871_v38, %v2359_v25 }
 0x2a9   : > { %v2075_v16 = vadd.f32 %v7270_v53, %v2039_v41  ;;  %v2062_v12 = vadd.f32 %v7270_v53, %v2026_v51  ;;  %v7364_v7 = vpack.i.bf16 %v2488_v6, %v2486_v22  ;;  %v4615_v51 = vpack.i.bf16 %v7402_v50, %v7399_v27 }
 0x2ab   : > { %9164 = vst [vmem:[#allocation6_spill] sm:$0xff] %v7364_v7  ;;  %v2107_v33 = vmax.f32 %v2075_v16, 0.0  ;;  %v2094_v60 = vmax.f32 %v2062_v12, 0.0 }
 0x2ac   : > { %v2264_v2 = vld [vmem:[#allocation3 + $0x130] sm:$0xff] }
 0x2ad   : > { %2212 = vst.msk [vmem:[#allocation3 + $0x148] sm:$0xff] %vm1608_vm3, %v2107_v33  ;;  %v2520_v37 = vrot.slane %v2264_v2, 1  ;;  %v2394_v14 = vrot.slane %v2264_v2, 7  ;;  %v7373_v43 = vpack.i.bf16 %v2264_v2, %v7366_v62  ;;  %v7390_v39 = vld [vmem:[#allocation3 + $0x68] sm:$0xff] }
 0x2ae   : > { %2199 = vst.msk [vmem:[#allocation3 + $0x70] sm:$0xff] %vm1608_vm3, %v2094_v60  ;;  %v1984_v23 = vpop.f32.mrf.mxu3  ;;  %v1952_v52 = vpop.f32.mrf.mxu0  ;;  %v2489_v34 = vrot.slane %v7390_v39, 1  ;;  %v8868_v16 = vrot.slane %v7390_v39, 7 }
 0x2af   : > { %v2040_v5 = vmul.f32 %v7265_v21, %v1984_v23  ;;  %v2027_v48 = vmul.f32 %v7265_v21, %v1952_v52  ;;  %v2521_v36 = vsel %vm699_vm1, %v2519_v55, %v2520_v37  ;;  %v2523_v3 = vsel %vm699_vm1, %v2520_v37, %v2522_v24 }
 0x2b0   : > { %v7379_v42 = vpack.i.bf16 %v2523_v3, %v2521_v36  ;;  %v7384_v57 = vsel %vm570_vm2, %v8863_v44, %v2394_v14  ;;  %v2527_v23 = vrot.slane %v2269_v32, 1 }
 0x2b1   : > { %v2076_v58 = vadd.f32 %v7270_v53, %v2040_v5  ;;  %v2063_v59 = vadd.f32 %v7270_v53, %v2027_v48 }
 0x2b2   : > { %9165 = vst [vmem:[#allocation47_spill] sm:$0xff] %v7379_v42 }
 0x2b3   : > { %v2108_v1 = vmax.f32 %v2076_v58, 0.0  ;;  %v2095_v8 = vmax.f32 %v2063_v59, 0.0 }
 0x2b4   : > { %v7417_v2 = vld [vmem:[#allocation3 + $0x148] sm:$0xff] }
 0x2b5   : > { %2213 = vst.msk [vmem:[#allocation3 + $0x150] sm:$0xff] %vm1608_vm3, %v2108_v1  ;;  %v2240_v4 = vld [vmem:[#allocation3 + $0x70] sm:$0xff]  ;;  %v2524_v5 = vrot.slane %v7417_v2, 1  ;;  %v8864_v56 = vrot.slane %v7417_v2, 7 }
 0x2b6   : > { %2200 = vst.msk [vmem:[#allocation3 + $0x88] sm:$0xff] %vm1608_vm3, %v2095_v8  ;;  %v1987_v46 = vpop.f32.mrf.mxu3  ;;  %v1954_v15 = vpop.f32.mrf.mxu0  ;;  %v7396_v29 = vpack.i.bf16 %v2240_v4, %v7390_v39  ;;  %v2490_v10 = vrot.slane %v2240_v4, 1  ;;  %v2364_v12 = vrot.slane %v2240_v4, 7  ;;  %v2245_v4 = vld [vmem:[#allocation3 + $0x98] sm:$0xff] }
 0x2b7   : > { %v2041_v25 = vmul.f32 %v7265_v21, %v1987_v46  ;;  %v2028_v41 = vmul.f32 %v7265_v21, %v1954_v15 }
 0x2b8   : > { %9166 = vst [vmem:[#allocation8_spill] sm:$0xff] %v7396_v29  ;;  %4581 = vrot.lane.b32.xlu2 %v7396_v29, %s5248_s8  ;;  %v2491_v22 = vsel %vm699_vm1, %v2489_v34, %v2490_v10  ;;  %v2493_v6 = vsel %vm699_vm1, %v2490_v10, %v2492_v63  ;;  %v7422_v55 = vsel %vm570_vm2, %v8868_v16, %v2364_v12 }
 0x2b9   : > { %v2077_v33 = vadd.f32 %v7270_v53, %v2041_v25  ;;  %v2064_v60 = vadd.f32 %v7270_v53, %v2028_v41  ;;  %v7415_v24 = vpack.i.bf16 %v2493_v6, %v2491_v22  ;;  %v2497_v25 = vrot.slane %v2245_v4, 1 }
 0x2bb   : > { %9167 = vst [vmem:[#allocation9_spill] sm:$0xff] %v7415_v24  ;;  %v2109_v37 = vmax.f32 %v2077_v33, 0.0  ;;  %v2096_v14 = vmax.f32 %v2064_v60, 0.0 }
 0x2bc   : > { %v2268_v52 = vld [vmem:[#allocation3 + $0x150] sm:$0xff] }
 0x2bd   : > { %2214 = vst.msk [vmem:[#allocation3 + $0x168] sm:$0xff] %vm1608_vm3, %v2109_v37  ;;  %v2525_v48 = vrot.slane %v2268_v52, 1  ;;  %v2399_v36 = vrot.slane %v2268_v52, 7  ;;  %v7427_v3 = vpack.i.bf16 %v2268_v52, %v7417_v2  ;;  %v7446_v46 = vld [vmem:[#allocation3 + $0x88] sm:$0xff] }
 0x2be   : > { %2201 = vst.msk [vmem:[#allocation3 + $0x90] sm:$0xff] %vm1608_vm3, %v2096_v14  ;;  %v1989_v58 = vpop.f32.mrf.mxu3  ;;  %v1957_v59 = vpop.f32.mrf.mxu0  ;;  %v2494_v22 = vrot.slane %v7446_v46, 1  ;;  %v8869_v6 = vrot.slane %v7446_v46, 7 }
 0x2bf   : > { %9168 = vst [vmem:[#allocation11_spill] sm:$0xff] %v7427_v3  ;;  %v2042_v31 = vmul.f32 %v7265_v21, %v1989_v58  ;;  %v2029_v61 = vmul.f32 %v7265_v21, %v1957_v59  ;;  %v2526_v1 = vsel %vm699_vm1, %v2524_v5, %v2525_v48  ;;  %v2528_v8 = vsel %vm699_vm1, %v2525_v48, %v2527_v23  ;;  %v2273_v48 = vld [vmem:[#allocation3 + $0x178] sm:$0xff] }
 0x2c0   : > { %4601 = vrot.lane.b32.xlu2 %v7373_v43, %s5248_s8  ;;  %v7440_v9 = vsel %vm570_vm2, %v8864_v56, %v2399_v36  ;;  %v7444_v34 = vpack.i.bf16 %v2528_v8, %v2526_v1  ;;  %v2253_v56 = vld [vmem:[#allocation3 + $0xd8] sm:$0xff] }
 0x2c1   : > { %v2078_v19 = vadd.f32 %v7270_v53, %v2042_v31  ;;  %v2065_v63 = vadd.f32 %v7270_v53, %v2029_v61 }
 0x2c2   : > { %9169 = vst [vmem:[#allocation38_spill] sm:$0xff] %v7444_v34 }
 0x2c3   : > { %v2110_v15 = vmax.f32 %v2078_v19, 0.0  ;;  %v2097_v10 = vmax.f32 %v2065_v63, 0.0  ;;  %v2532_v19 = vrot.slane %v2273_v48, 1  ;;  %v2249_v48 = vld [vmem:[#allocation3 + $0xb8] sm:$0xff] }
 0x2c4   : > { %v7468_v31 = vld [vmem:[#allocation3 + $0x168] sm:$0xff] }
 0x2c5   : > { %2215 = vst.msk [vmem:[#allocation3 + $0x170] sm:$0xff] %vm1608_vm3, %v2110_v15  ;;  %v2244_v41 = vld [vmem:[#allocation3 + $0x90] sm:$0xff]  ;;  %v2529_v4 = vrot.slane %v7468_v31, 1 }
 0x2c6   : > { %2202 = vst.msk [vmem:[#allocation3 + $0xa8] sm:$0xff] %vm1608_vm3, %v2097_v10  ;;  %v1992_v32 = vpop.f32.mrf.mxu3  ;;  %v1959_v12 = vpop.f32.mrf.mxu0  ;;  %v7453_v33 = vpack.i.bf16 %v2244_v41, %v7446_v46  ;;  %v2495_v60 = vrot.slane %v2244_v41, 1  ;;  %v2369_v37 = vrot.slane %v2244_v41, 7 }
 0x2c7   : > { %v2043_v14 = vmul.f32 %v7265_v21, %v1992_v32  ;;  %v2030_v23 = vmul.f32 %v7265_v21, %v1959_v12  ;;  %v8865_v32 = vrot.slane %v7468_v31, 7 }
 0x2c8   : > { %9170 = vst [vmem:[#allocation37_spill] sm:$0xff] %v7453_v33  ;;  %4586 = vrot.lane.b32.xlu0 %v7453_v33, %s5248_s8  ;;  %v2496_v52 = vsel %vm699_vm1, %v2494_v22, %v2495_v60  ;;  %v2498_v5 = vsel %vm699_vm1, %v2495_v60, %v2497_v25  ;;  %v7464_v36 = vsel %vm570_vm2, %v8869_v6, %v2369_v37  ;;  %v2281_v6 = vld [vmem:[#allocation3 + $0x1b8] sm:$0xff] }
 0x2c9   : > { %v2079_v58 = vadd.f32 %v7270_v53, %v2043_v14  ;;  %v2066_v59 = vadd.f32 %v7270_v53, %v2030_v23  ;;  %v7470_v61 = vpack.i.bf16 %v2498_v5, %v2496_v52 }
 0x2cb   : > { %9171 = vst [vmem:[#allocation15_spill] sm:$0xff] %v7470_v61  ;;  %v2111_v1 = vmax.f32 %v2079_v58, 0.0  ;;  %v2098_v8 = vmax.f32 %v2066_v59, 0.0 }
 0x2cc   : > { %v2272_v63 = vld [vmem:[#allocation3 + $0x170] sm:$0xff] }
 0x2cd   : > { %2216 = vst.msk [vmem:[#allocation3 + $0x188] sm:$0xff] %vm1608_vm3, %v2111_v1  ;;  %v2530_v15 = vrot.slane %v2272_v63, 1  ;;  %v2404_v10 = vrot.slane %v2272_v63, 7  ;;  %v7475_v25 = vpack.i.bf16 %v2272_v63, %v7468_v31  ;;  %v7494_v59 = vld [vmem:[#allocation3 + $0xa8] sm:$0xff] }
 0x2ce   : > { %2203 = vst.msk [vmem:[#allocation3 + $0xb0] sm:$0xff] %vm1608_vm3, %v2098_v8  ;;  %v1994_v41 = vpop.f32.mrf.mxu3  ;;  %v1962_v22 = vpop.f32.mrf.mxu0 }
 0x2cf   : > { %9172 = vst [vmem:[#allocation10_spill] sm:$0xff] %v7475_v25  ;;  %v2044_v12 = vmul.f32 %v7265_v21, %v1994_v41  ;;  %v2031_v60 = vmul.f32 %v7265_v21, %v1962_v22  ;;  %v2531_v37 = vsel %vm699_vm1, %v2529_v4, %v2530_v15  ;;  %v2533_v14 = vsel %vm699_vm1, %v2530_v15, %v2532_v19 }
 0x2d0   : > { %4606 = vrot.lane.b32.xlu0 %v7427_v3, %s5248_s8  ;;  %v7488_v23 = vsel %vm570_vm2, %v8865_v32, %v2404_v10  ;;  %v7492_v58 = vpack.i.bf16 %v2533_v14, %v2531_v37  ;;  %v2502_v19 = vrot.slane %v2249_v48, 1  ;;  %v2499_v4 = vrot.slane %v7494_v59, 1  ;;  %v2277_v48 = vld [vmem:[#allocation3 + $0x198] sm:$0xff] }
 0x2d1   : > { %v2080_v52 = vadd.f32 %v7270_v53, %v2044_v12  ;;  %v2067_v5 = vadd.f32 %v7270_v53, %v2031_v60  ;;  %v8870_v15 = vrot.slane %v7494_v59, 7 }
 0x2d2   : > { %9173 = vst [vmem:[#allocation48_spill] sm:$0xff] %v7492_v58 }
 0x2d3   : > { %v2112_v1 = vmax.f32 %v2080_v52, 0.0  ;;  %v2099_v8 = vmax.f32 %v2067_v5, 0.0 }
 0x2d5   : > { %2217 = vst.msk [vmem:[#allocation3 + $0x190] sm:$0xff] %vm1608_vm3, %v2112_v1  ;;  %v2248_v63 = vld [vmem:[#allocation3 + $0xb0] sm:$0xff] }
 0x2d6   : > { %2204 = vst.msk [vmem:[#allocation3 + $0xc8] sm:$0xff] %vm1608_vm3, %v2099_v8  ;;  %v1997_v10 = vpop.f32.mrf.mxu3  ;;  %v1964_v41 = vpop.f32.mrf.mxu0  ;;  %v7501_v22 = vpack.i.bf16 %v2248_v63, %v7494_v59  ;;  %v2500_v12 = vrot.slane %v2248_v63, 1  ;;  %v2374_v60 = vrot.slane %v2248_v63, 7 }
 0x2d7   : > { %v2045_v37 = vmul.f32 %v7265_v21, %v1997_v10  ;;  %v2032_v14 = vmul.f32 %v7265_v21, %v1964_v41  ;;  %v7520_v10 = vld [vmem:[#allocation3 + $0x188] sm:$0xff]  ;;  %v2537_v41 = vrot.slane %v2277_v48, 1 }
 0x2d8   : > { %9174 = vst [vmem:[#allocation49_spill] sm:$0xff] %v7501_v22  ;;  %4616 = vrot.lane.b32.xlu0 %v4615_v51, %s5250_s10  ;;  %4591 = vrot.lane.b32.xlu1 %v7501_v22, %s5248_s8  ;;  %v2501_v52 = vsel %vm699_vm1, %v2499_v4, %v2500_v12  ;;  %v2503_v5 = vsel %vm699_vm1, %v2500_v12, %v2502_v19  ;;  %v2534_v19 = vrot.slane %v7520_v10, 1 }
 0x2d9   : > { %v7516_v1 = vsel %vm570_vm2, %v8870_v15, %v2374_v60  ;;  %v2081_v8 = vadd.f32 %v7270_v53, %v2045_v37  ;;  %v2068_v63 = vadd.f32 %v7270_v53, %v2032_v14  ;;  %v7522_v27 = vpack.i.bf16 %v2503_v5, %v2501_v52 }
 0x2da   : > { %v8867_v52 = vrot.slane %v7520_v10, 7 }
 0x2db   : > { %9175 = vst [vmem:[#allocation54_spill] sm:$0xff] %v7522_v27  ;;  %v2113_v50 = vmax.f32 %v2081_v8, 0.0  ;;  %v2100_v51 = vmax.f32 %v2068_v63, 0.0 }
 0x2dc   : > { %v2276_v4 = vld [vmem:[#allocation3 + $0x190] sm:$0xff] }
 0x2dd   : > { %2218 = vst.msk [vmem:[#allocation3 + $0x1a8] sm:$0xff] %vm1608_vm3, %v2113_v50  ;;  %v7527_v12 = vpack.i.bf16 %v2276_v4, %v7520_v10  ;;  %v2535_v60 = vrot.slane %v2276_v4, 1  ;;  %v2409_v44 = vrot.slane %v2276_v4, 7 }
 0x2de   : > { %2205 = vst.msk [vmem:[#allocation3 + $0xd0] sm:$0xff] %vm1608_vm3, %v2100_v51  ;;  %v1999_v37 = vpop.f32.mrf.mxu3  ;;  %v1967_v14 = vpop.f32.mrf.mxu0 }
 0x2df   : > { %9176 = vst [vmem:[#allocation66_spill] sm:$0xff] %v7527_v12  ;;  %v2046_v5 = vmul.f32 %v7265_v21, %v1999_v37  ;;  %4626 = vrot.lane.b32.xlu2 %v7527_v12, %s5248_s8  ;;  %v2033_v48 = vmul.f32 %v7265_v21, %v1967_v14  ;;  %v2536_v8 = vsel %vm699_vm1, %v2534_v19, %v2535_v60  ;;  %v7548_v14 = vld [vmem:[#allocation3 + $0xc8] sm:$0xff]  ;;  %v2257_v12 = vld [vmem:[#allocation3 + $0xf8] sm:$0xff] }
 0x2e0   : > { %v2538_v63 = vsel %vm699_vm1, %v2535_v60, %v2537_v41  ;;  %4596 = vrot.lane.b32.xlu1 %v7304_v13, %s5248_s8  ;;  %v7542_v50 = vsel %vm570_vm2, %v8867_v52, %v2409_v44  ;;  %v2507_v41 = vrot.slane %v2253_v56, 1  ;;  %v2504_v0 = vrot.slane %v7548_v14, 1 }
 0x2e1   : > { %v7544_v51 = vpack.i.bf16 %v2538_v63, %v2536_v8  ;;  %v2082_v4 = vadd.f32 %v7270_v53, %v2046_v5  ;;  %v2069_v37 = vadd.f32 %v7270_v53, %v2033_v48  ;;  %v8875_v44 = vrot.slane %v7548_v14, 7 }
 0x2e3   : > { %9177 = vst [vmem:[#allocation57_spill] sm:$0xff] %v7544_v51  ;;  %v2114_v19 = vmax.f32 %v2082_v4, 0.0  ;;  %v2101_v32 = vmax.f32 %v2069_v37, 0.0 }
 0x2e4   : > { %v7576_v18 = vld [vmem:[#allocation3 + $0x1a8] sm:$0xff] }
 0x2e5   : > { %2219 = vst.msk [vmem:[#allocation3 + $0x1b0] sm:$0xff] %vm1608_vm3, %v2114_v19  ;;  %v2252_v60 = vld [vmem:[#allocation3 + $0xd0] sm:$0xff] }
 0x2e6   : > { %2206 = vst.msk [vmem:[#allocation3 + $0xe8] sm:$0xff] %vm1608_vm3, %v2101_v32  ;;  %v2002_v8 = vpop.f32.mrf.mxu3  ;;  %v1969_v63 = vpop.f32.mrf.mxu0  ;;  %v7555_v5 = vpack.i.bf16 %v2252_v60, %v7548_v14  ;;  %v2505_v48 = vrot.slane %v2252_v60, 1  ;;  %v2379_v52 = vrot.slane %v2252_v60, 7  ;;  %v2349_v60 = vrot.slane %v7292_v54, 7 }
 0x2e7   : > { %v2047_v4 = vmul.f32 %v7265_v21, %v2002_v8  ;;  %v2034_v56 = vmul.f32 %v7265_v21, %v1969_v63  ;;  %v2347_v8 = vrot.slane %v7290_v47, 7  ;;  %v2226_v47 = vld [vmem:[#allocation3] sm:$0xff] }
 0x2e8   : > { %4611 = vrot.lane.b32.xlu1 %v7475_v25, %s5248_s8  ;;  %4631 = vrot.lane.b32.xlu2 %v7555_v5, %s5248_s8  ;;  %v2506_v37 = vsel %vm699_vm1, %v2504_v0, %v2505_v48  ;;  %v2508_v32 = vsel %vm699_vm1, %v2505_v48, %v2507_v41  ;;  %v7568_v19 = vsel %vm570_vm2, %v8875_v44, %v2379_v52  ;;  %v4567_v48 = vpop.permute.xlu2 %4566  ;;  %v2542_v25 = vrot.slane %v2281_v6, 1 }
 0x2e9   : > { %v2083_v63 = vadd.f32 %v7270_v53, %v2047_v4  ;;  %v2070_v16 = vadd.f32 %v7270_v53, %v2034_v56  ;;  %v7574_v15 = vpack.i.bf16 %v2508_v32, %v2506_v37  ;;  %v2350_v52 = vsel %vm570_vm2, %v2347_v8, %v2349_v60 }
 0x2ea   : > { %v4569_v4 = vunpack.i.h.bf16 %v4567_v48  ;;  %v4568_v56 = vunpack.i.l.bf16 %v4567_v48  ;;  %v2346_v32 = vrot.slane %v2226_v47, 7  ;;  %v8878_v47 = vrot.slane %v7576_v18, 7 }
 0x2eb   : > { %9178 = vst [vmem:[#allocation59_spill] sm:$0xff] %v7574_v15  ;;  %v2115_v38 = vmax.f32 %v2083_v63, 0.0  ;;  %v2102_v0 = vmax.f32 %v2070_v16, 0.0  ;;  %v2539_v16 = vrot.slane %v7576_v18, 1 }
 0x2ec   : > { %v2280_v41 = vld [vmem:[#allocation3 + $0x1b0] sm:$0xff]  ;;  %v2348_v60 = vsel %vm570_vm2, %v2346_v32, %v2347_v8 }
 0x2ed   : > { %2220 = vst.msk [vmem:[#allocation3 + $0x1c8] sm:$0xff] %vm1608_vm3, %v2115_v38  ;;  %v7580_v54 = vpack.i.bf16 %v2280_v41, %v7576_v18  ;;  %v2540_v63 = vrot.slane %v2280_v41, 1  ;;  %v7589_v38 = vsel %vm1608_vm3, %v2350_v52, %v4569_v4  ;;  %v2414_v6 = vrot.slane %v2280_v41, 7  ;;  %v7610_v32 = vld [vmem:[#allocation3 + $0xe8] sm:$0xff] }
 0x2ee   : > { %2207 = vst.msk [vmem:[#allocation3 + $0xf0] sm:$0xff] %vm1608_vm3, %v2102_v0  ;;  %v2004_v37 = vpop.f32.mrf.mxu3  ;;  %v7601_v52 = vsel %vm1608_vm3, %v2348_v60, %v4568_v56 }
 0x2ef   : > { %9179 = vst [vmem:[#allocation61_spill] sm:$0xff] %v7580_v54  ;;  %v2048_v44 = vmul.f32 %v7265_v21, %v2004_v37  ;;  %4641 = vrot.lane.b32.xlu0 %v7580_v54, %s5248_s8  ;;  %v2541_v0 = vsel %vm699_vm1, %v2539_v16, %v2540_v63  ;;  %v2543_v48 = vsel %vm699_vm1, %v2540_v63, %v2542_v25  ;;  %v2512_v16 = vrot.slane %v2257_v12, 1 }
 0x2f0   : > { %4621 = vrot.lane.b32.xlu1 %v7327_v20, %s5250_s10  ;;  %4636 = vrot.lane.b32.xlu2 %v7364_v7, %s5250_s10  ;;  %v7606_v41 = vsel %vm570_vm2, %v8878_v47, %v2414_v6  ;;  %v7608_v4 = vpack.i.bf16 %v2543_v48, %v2541_v0  ;;  %v2509_v63 = vrot.slane %v7610_v32, 1  ;;  %v2285_v48 = vld [vmem:[#allocation3 + $0x1d8] sm:$0xff]  ;;  %v2230_v7 = vld [vmem:[#allocation3 + $0x20] sm:$0xff] }
 0x2f1   : > { %v2084_v37 = vadd.f32 %v7270_v53, %v2048_v44  ;;  %v2547_v20 = vrot.slane %v2285_v48, 1 }
 0x2f2   : > { %9180 = vst [vmem:[#allocation64_spill] sm:$0xff] %v7608_v4 }
 0x2f3   : > { %v2116_v8 = vmax.f32 %v2084_v37, 0.0 }
 0x2f4   : > { %v7633_v47 = vld [vmem:[#allocation3 + $0x1c8] sm:$0xff] }
 0x2f5   : > { %2221 = vst.msk [vmem:[#allocation3 + $0x1d0] sm:$0xff] %vm1608_vm3, %v2116_v8  ;;  %v7613_v25 = vld [vmem:[#allocation3 + $0xf0] sm:$0xff] }
 0x2f6   : > { %v2007_v44 = vpop.f32.mrf.mxu3  ;;  %v7617_v56 = vpack.i.bf16 %v7613_v25, %v7610_v32  ;;  %v2510_v6 = vrot.slane %v7613_v25, 1 }
 0x2f7   : > { %v2049_v60 = vmul.f32 %v7265_v21, %v2007_v44 }
 0x2f8   : > { %4656 = vrot.lane.b32.xlu1 %v7470_v61, %s5250_s10  ;;  %4661 = vrot.lane.b32.xlu2 %v7522_v27, %s5250_s10  ;;  %v2511_v12 = vsel %vm699_vm1, %v2509_v63, %v2510_v6  ;;  %v2513_v0 = vsel %vm699_vm1, %v2510_v6, %v2512_v16  ;;  %v2544_v63 = vrot.slane %v7633_v47, 1 }
 0x2f9   : > { %v2085_v37 = vadd.f32 %v7270_v53, %v2049_v60  ;;  %4646 = vrot.lane.b32.xlu0 %v7617_v56, %s5248_s8  ;;  %v7631_v8 = vpack.i.bf16 %v2513_v0, %v2511_v12 }
 0x2fb   : > { %9181 = vst [vmem:[#allocation65_spill] sm:$0xff] %v7631_v8  ;;  %v2117_v44 = vmax.f32 %v2085_v37, 0.0 }
 0x2fc   : > { %v7635_v61 = vld [vmem:[#allocation3 + $0x1d0] sm:$0xff] }
 0x2fd   : > { %2222 = vst.msk [vmem:[#allocation3 + $0x1e8] sm:$0xff] %vm1608_vm3, %v2117_v44  ;;  %v2545_v16 = vrot.slane %v7635_v61, 1  ;;  %v7642_v6 = vpack.i.bf16 %v7635_v61, %v7633_v47 }
 0x2fe   : > { %v2009_v60 = vpop.f32.mrf.mxu3 }
 0x2ff   : > { %9182 = vst [vmem:[#allocation51_spill] sm:$0xff] %v7642_v6  ;;  %v2050_v12 = vmul.f32 %v7265_v21, %v2009_v60  ;;  %v2546_v0 = vsel %vm699_vm1, %v2544_v63, %v2545_v16  ;;  %v2548_v37 = vsel %vm699_vm1, %v2545_v16, %v2547_v20  ;;  %v2289_v20 = vld [vmem:[#allocation3 + $0x1f8] sm:$0xff] }
 0x300   : > { %4671 = vrot.lane.b32.xlu1 %v7642_v6, %s5248_s8  ;;  %4681 = vrot.lane.b32.xlu2 %v7314_v49, %s5250_s10  ;;  %v7651_v48 = vpack.i.bf16 %v2548_v37, %v2546_v0  ;;  %v2552_v37 = vrot.slane %v2289_v20, 1 }
 0x301   : > { %v2086_v44 = vadd.f32 %v7270_v53, %v2050_v12  ;;  %4651 = vrot.lane.b32.xlu0 %v7415_v24, %s5250_s10 }
 0x302   : > { %9183 = vst [vmem:[#allocation52_spill] sm:$0xff] %v7651_v48 }
 0x303   : > { %v2118_v27 = vmax.f32 %v2086_v44, 0.0 }
 0x304   : > { %v7665_v12 = vld [vmem:[#allocation3 + $0x1e8] sm:$0xff] }
 0x305   : > { %2223 = vst.msk [vmem:[#allocation3 + $0x1f0] sm:$0xff] %vm1608_vm3, %v2118_v27  ;;  %v2549_v44 = vrot.slane %v7665_v12, 1 }
 0x306   : > { %v2012_v60 = vpop.f32.mrf.mxu3 }
 0x307   : > { %v2051_v63 = vmul.f32 %v7265_v21, %v2012_v60 }
 0x308   : > { %4696 = vrot.lane.b32.xlu2 %v7492_v58, %s5250_s10  ;;  %4676 = vrot.lane.b32.xlu1 %v7631_v8, %s5250_s10 }
 0x309   : > { %v2087_v16 = vadd.f32 %v7270_v53, %v2051_v63  ;;  %4666 = vrot.lane.b32.xlu0 %v7574_v15, %s5250_s10 }
 0x30b   : > { %v2119_v0 = vmax.f32 %v2087_v16, 0.0 }
 0x30c   : > { %v7667_v27 = vld [vmem:[#allocation3 + $0x1f0] sm:$0xff] }
 0x30d   : > { %2224 = vst.msk [vmem:[#allocation3 + $0x208] sm:$0xff] %vm1608_vm3, %v2119_v0  ;;  %v2550_v60 = vrot.slane %v7667_v27, 1  ;;  %v7674_v58 = vpack.i.bf16 %v7667_v27, %v7665_v12 }
 0x30e   : > { %v2014_v63 = vpop.f32.mrf.mxu3 }
 0x30f   : > { %9184 = vst [vmem:[#allocation4_spill] sm:$0xff] %v7674_v58  ;;  %v2052_v8 = vmul.f32 %v7265_v21, %v2014_v63  ;;  %v2551_v49 = vsel %vm699_vm1, %v2549_v44, %v2550_v60  ;;  %v2553_v16 = vsel %vm699_vm1, %v2550_v60, %v2552_v37  ;;  %v2234_v21 = vld [vmem:[#allocation3 + $0x40] sm:$0xff]  ;;  %v2351_v44 = vrot.slane %v2230_v7, 7 }
 0x310   : > { %4711 = vrot.lane.b32.xlu2 %v7674_v58, %s5248_s8  ;;  %4691 = vrot.lane.b32.xlu1 %v7444_v34, %s5250_s10  ;;  %v7683_v20 = vpack.i.bf16 %v2553_v16, %v2551_v49  ;;  %v2356_v37 = vrot.slane %v2234_v21, 7  ;;  %v2290_v49 = vld [vmem:[#allocation3 + $0x200] sm:$0xff]  ;;  %v9186_v16 = vrot.slane %v7299_v45, 7  ;;  %v9187_v7 = vrot.slane %v7342_v40, 7 }
 0x311   : > { %v2088_v0 = vadd.f32 %v7270_v53, %v2052_v8  ;;  %4686 = vrot.lane.b32.xlu0 %v7379_v42, %s5250_s10  ;;  %v2293_v53 = vld [vmem:[#allocation3 + $0x218] sm:$0xff]  ;;  %v2557_v8 = vrot.slane %v2290_v49, 7  ;;  %v2242_v34 = vld [vmem:[#allocation3 + $0x80] sm:$0xff] }
 0x312   : > { %9185 = vst [vmem:[#allocation67_spill] sm:$0xff] %v7683_v20  ;;  %v2566_v21 = vrot.slane %v2293_v53, 1  ;;  %v2238_v40 = vld [vmem:[#allocation3 + $0x60] sm:$0xff]  ;;  %v2366_v53 = vrot.slane %v2242_v34, 7  ;;  %v9192_v34 = vrot.slane %v7446_v46, 7 }
 0x313   : > { %v2120_v15 = vmax.f32 %v2088_v0, 0.0  ;;  %v7703_v0 = vsel %vm570_vm2, %v2356_v37, %v9187_v7 }
 0x314   : > { %v2291_v60 = vld [vmem:[#allocation3 + $0x208] sm:$0xff] }
 0x315   : > { %2225 = vst.msk [vmem:[#allocation3 + $0x210] sm:$0xff] %vm1608_vm3, %v2120_v15  ;;  %v2558_v63 = vrot.slane %v2291_v60, 7  ;;  %v7698_v15 = vsel %vm570_vm2, %v2351_v44, %v9186_v16  ;;  %v2563_v42 = vrot.slane %v2291_v60, 1 }
 0x316   : > { %v4725_v49 = vpack.i.bf16 %v7332_v35, %v7698_v15 }
 0x317   : > { %v2559_v37 = vsel %vm570_vm2, %v2557_v8, %v2558_v63  ;;  %v2361_v8 = vrot.slane %v2238_v40, 7 }
 0x318   : > { %4716 = vrot.lane.b32.xlu2 %v7651_v48, %s5250_s10  ;;  %4706 = vrot.lane.b32.xlu1 %v7608_v4, %s5250_s10  ;;  %v7707_v48 = vpack.i.bf16 %v7360_v26, %v7703_v0 }
 0x319   : > { %4701 = vrot.lane.b32.xlu0 %v7544_v51, %s5250_s10  ;;  %v2246_v51 = vld [vmem:[#allocation3 + $0xa0] sm:$0xff] }
 0x31a   : > { %9188 = vst [vmem:[#allocation46_spill] sm:$0xff] %v7707_v48 }
 0x31c   : > { %v2292_v4 = vld [vmem:[#allocation3 + $0x210] sm:$0xff] }
 0x31d   : > { %v2560_v45 = vrot.slane %v2292_v4, 7  ;;  %v2564_v44 = vrot.slane %v2292_v4, 1  ;;  %v7711_v16 = vpack.i.bf16 %v2292_v4, %v2291_v60  ;;  %v2371_v4 = vrot.slane %v2246_v51, 7  ;;  %v2258_v51 = vld [vmem:[#allocation3 + $0x100] sm:$0xff] }
 0x31f   : > { %v2561_v7 = vsel %vm570_vm2, %v2558_v63, %v2560_v45  ;;  %v2565_v24 = vsel %vm699_vm1, %v2563_v42, %v2564_v44  ;;  %v2567_v6 = vsel %vm699_vm1, %v2564_v44, %v2566_v21  ;;  %v7734_v42 = vsel %vm570_vm2, %v2366_v53, %v9192_v34  ;;  %v7754_v45 = vpop.permute.xlu2 %4581 }
 0x320   : > { %4731 = vrot.lane.b32.xlu2 %v7707_v48, %s5252_s12  ;;  %4726 = vrot.lane.b32.xlu1 %v4725_v49, %s5252_s12  ;;  %v7722_v60 = vpack.i.bf16 %v2567_v6, %v2565_v24  ;;  %v7724_v58 = vpack.i.bf16 %v2561_v7, %v2559_v37  ;;  %v9191_v48 = vrot.slane %v7494_v59, 7  ;;  %v9193_v63 = vrot.slane %v7390_v39, 7  ;;  %v2254_v6 = vld [vmem:[#allocation3 + $0xe0] sm:$0xff] }
 0x321   : > { %4721 = vrot.lane.b32.xlu0 %v7683_v20, %s5250_s10  ;;  %v7747_v59 = vpack.i.bf16 %v7464_v36, %v7734_v42  ;;  %v2384_v39 = vrot.slane %v7613_v25, 7  ;;  %v2386_v44 = vrot.slane %v2258_v51, 7  ;;  %v2381_v40 = vrot.slane %v2254_v6, 7  ;;  %v2266_v6 = vld [vmem:[#allocation3 + $0x140] sm:$0xff] }
 0x322   : > { %9189 = vst [vmem:[#allocation89_spill] sm:$0xff] %v7722_v60  ;;  %v7729_v49 = vsel %vm570_vm2, %v2371_v4, %v9191_v48  ;;  %v7739_v21 = vsel %vm570_vm2, %v2361_v8, %v9193_v63  ;;  %v2250_v48 = vld [vmem:[#allocation3 + $0xc0] sm:$0xff]  ;;  %v2382_v37 = vrot.slane %v7610_v32, 7  ;;  %v9197_v25 = vrot.slane %v7288_v28, 7 }
 0x323   : > { %9190 = vst [vmem:[#allocation88_spill] sm:$0xff] %v7724_v58  ;;  %v7743_v24 = vpack.i.bf16 %v7516_v1, %v7729_v49  ;;  %v7751_v46 = vpack.i.bf16 %v7422_v55, %v7739_v21  ;;  %v2376_v53 = vrot.slane %v2250_v48, 7  ;;  %v9199_v63 = vrot.slane %v7548_v14, 7  ;;  %v2270_v28 = vld [vmem:[#allocation3 + $0x160] sm:$0xff] }
 0x324   : > { %9195 = vst [vmem:[#allocation23_spill] sm:$0xff] %v7747_v59  ;;  %v7764_v7 = vsel %vm570_vm2, %v2382_v37, %v2384_v39  ;;  %v7769_v4 = vsel %vm570_vm2, %v2386_v44, %v9197_v25  ;;  %v7772_v8 = vsel %vm570_vm2, %v2381_v40, %v2382_v37  ;;  %v2262_v48 = vld [vmem:[#allocation3 + $0x120] sm:$0xff]  ;;  %v2401_v14 = vrot.slane %v2270_v28, 7  ;;  %v7797_v40 = vpop.permute.xlu0 %4571 }
 0x325   : > { %9194 = vst [vmem:[#allocation22_spill] sm:$0xff] %v7743_v24  ;;  %v7776_v34 = vpack.i.bf16 %v7311_v11, %v7769_v4  ;;  %v7781_v32 = vsel %vm570_vm2, %v2376_v53, %v9199_v63  ;;  %v7785_v51 = vpack.i.bf16 %v7764_v7, %v7772_v8  ;;  %v2396_v44 = vrot.slane %v2266_v6, 7 }
 0x326   : > { %9196 = vst [vmem:[#allocation16_spill] sm:$0xff] %v7751_v46  ;;  %v7789_v39 = vpack.i.bf16 %v7568_v19, %v7781_v32  ;;  %v2391_v37 = vrot.slane %v2262_v48, 7  ;;  %v9202_v25 = vrot.slane %v7468_v31, 7  ;;  %v2282_v48 = vld [vmem:[#allocation3 + $0x1c0] sm:$0xff] }
 0x327   : > { %9198 = vst [vmem:[#allocation72_spill] sm:$0xff] %v7776_v34  ;;  %v7799_v53 = vpop.permute.xlu2 %4601 }
 0x328   : > { %4746 = vrot.lane.b32.xlu2 %v7743_v24, %s5252_s12  ;;  %4741 = vrot.lane.b32.xlu1 %v7747_v59, %s5252_s12  ;;  %9200 = vst [vmem:[#allocation82_spill] sm:$0xff] %v7785_v51  ;;  %v7804_v63 = vsel %vm570_vm2, %v2401_v14, %v9202_v25  ;;  %v2278_v14 = vld [vmem:[#allocation3 + $0x1a0] sm:$0xff] }
 0x329   : > { %4736 = vrot.lane.b32.xlu0 %v7751_v46, %s5252_s12  ;;  %9201 = vst [vmem:[#allocation76_spill] sm:$0xff] %v7789_v39  ;;  %v7818_v6 = vpack.i.bf16 %v7488_v23, %v7804_v63  ;;  %v2274_v25 = vld [vmem:[#allocation3 + $0x180] sm:$0xff] }
 0x32b   : > { %9205 = vst [vmem:[#allocation83_spill] sm:$0xff] %v7818_v6 }
 0x330   : > { %4761 = vrot.lane.b32.xlu2 %v7776_v34, %s5252_s12  ;;  %4756 = vrot.lane.b32.xlu1 %v7785_v51, %s5252_s12  ;;  %v9203_v34 = vrot.slane %v7417_v2, 7  ;;  %v9204_v51 = vrot.slane %v7366_v62, 7  ;;  %v2419_v62 = vrot.slane %v7635_v61, 7 }
 0x331   : > { %4751 = vrot.lane.b32.xlu0 %v7789_v39, %s5252_s12 }
 0x332   : > { %v7809_v59 = vsel %vm570_vm2, %v2396_v44, %v9203_v34  ;;  %v7814_v28 = vsel %vm570_vm2, %v2391_v37, %v9204_v51  ;;  %v2416_v34 = vrot.slane %v2282_v48, 7  ;;  %v2417_v51 = vrot.slane %v7633_v47, 7 }
 0x333   : > { %v7822_v31 = vpack.i.bf16 %v7440_v9, %v7809_v59  ;;  %v7826_v2 = vpack.i.bf16 %v7384_v57, %v7814_v28  ;;  %v2411_v44 = vrot.slane %v2278_v14, 7  ;;  %v2406_v37 = vrot.slane %v2274_v25, 7 }
 0x334   : > { %v7841_v61 = vsel %vm570_vm2, %v2417_v51, %v2419_v62  ;;  %v9209_v48 = vrot.slane %v7520_v10, 7  ;;  %v2424_v10 = vrot.slane %v7667_v27, 7 }
 0x335   : > { %9206 = vst [vmem:[#allocation80_spill] sm:$0xff] %v7822_v31 }
 0x336   : > { %9207 = vst [vmem:[#allocation43_spill] sm:$0xff] %v7826_v2  ;;  %v7854_v47 = vsel %vm570_vm2, %v2406_v37, %v9209_v48  ;;  %v2422_v37 = vrot.slane %v7665_v12, 7 }
 0x337   : > { %v7866_v62 = vpack.i.bf16 %v7542_v50, %v7854_v47 }
 0x338   : > { %4776 = vrot.lane.b32.xlu2 %v7818_v6, %s5252_s12  ;;  %4771 = vrot.lane.b32.xlu1 %v7822_v31, %s5252_s12  ;;  %v7844_v6 = vsel %vm570_vm2, %v2416_v34, %v2417_v51  ;;  %v9208_v31 = vrot.slane %v7576_v18, 7  ;;  %v2286_v18 = vld [vmem:[#allocation3 + $0x1e0] sm:$0xff]  ;;  %v7881_v48 = vsel %vm570_vm2, %v2422_v37, %v2424_v10 }
 0x339   : > { %4766 = vrot.lane.b32.xlu0 %v7826_v2, %s5252_s12  ;;  %v7836_v24 = vpop.permute.xlu2 %4626  ;;  %v7858_v14 = vpack.i.bf16 %v7841_v61, %v7844_v6  ;;  %9212 = vst [vmem:[#allocation53_spill] sm:$0xff] %v7866_v62 }
 0x33a   : > { %v7838_v39 = vpop.permute.xlu0 %4586  ;;  %v7849_v60 = vsel %vm570_vm2, %v2411_v44, %v9208_v31  ;;  %v4577_v31 = vpop.permute.xlu1 %4576  ;;  %v2421_v44 = vrot.slane %v2286_v18, 7 }
 0x33b   : > { %9210 = vst [vmem:[#allocation5_spill] sm:$0xff] %v7858_v14  ;;  %v7862_v25 = vpack.i.bf16 %v7606_v41, %v7849_v60  ;;  %v4578_v18 = vunpack.i.l.bf16 %v4577_v31 }
 0x33d   : > { %9211 = vst [vmem:[#allocation12_spill] sm:$0xff] %v7862_v25  ;;  %v3354_v20 = vsel %vm1608_vm3, %v7703_v0, %v4578_v18 }
 0x340   : > { %4791 = vrot.lane.b32.xlu2 %v7858_v14, %s5252_s12  ;;  %4786 = vrot.lane.b32.xlu1 %v7862_v25, %s5252_s12  ;;  %v7884_v14 = vsel %vm570_vm2, %v2421_v44, %v2422_v37 }
 0x341   : > { %4781 = vrot.lane.b32.xlu0 %v7866_v62, %s5252_s12  ;;  %v7888_v27 = vpack.i.bf16 %v7881_v48, %v7884_v14  ;;  %v4579_v62 = vunpack.i.h.bf16 %v4577_v31 }
 0x342   : > { %v7875_v34 = vpop.permute.xlu0 %4606  ;;  %v7877_v51 = vpop.permute.xlu2 %4631 }
 0x343   : > { %9213 = vst [vmem:[#allocation62_spill] sm:$0xff] %v7888_v27 }
 0x348   : > { %4806 = vrot.lane.b32.xlu2 %v7318_v30, %s5254_s14  ;;  %4801 = vrot.lane.b32.xlu1 %v7724_v58, %s5252_s12  ;;  %v3355_v30 = vsel %vm1608_vm3, %v7360_v26, %v4579_v62 }
 0x349   : > { %4796 = vrot.lane.b32.xlu0 %v7888_v27, %s5252_s12 }
 0x34a   : > { %v4617_v12 = vpop.permute.xlu0 %4616  ;;  %v4592_v10 = vpop.permute.xlu1 %4591 }
 0x34b   : > { %v4619_v25 = vunpack.i.h.bf16 %v4617_v12  ;;  %v4618_v44 = vunpack.i.l.bf16 %v4617_v12  ;;  %v4637_v37 = vpop.permute.xlu2 %4636  ;;  %v4594_v26 = vunpack.i.h.bf16 %v4592_v10  ;;  %v4593_v0 = vunpack.i.l.bf16 %v4592_v10 }
 0x34c   : > { %v4639_v2 = vunpack.i.h.bf16 %v4637_v37  ;;  %v4638_v46 = vunpack.i.l.bf16 %v4637_v37 }
 0x34d   : > { %v7902_v58 = vsel %vm1674_vm6, %v7589_v38, %v4619_v25  ;;  %v7906_v31 = vsel %vm1674_vm6, %v7601_v52, %v4618_v44 }
 0x34e   : > { %v7909_v27 = vsel %vm1674_vm6, %v3355_v30, %v4639_v2  ;;  %v7912_v12 = vsel %vm1674_vm6, %v3354_v20, %v4638_v46  ;;  %v3360_v2 = vsel %vm1608_vm3, %v7729_v49, %v4593_v0  ;;  %v3361_v20 = vsel %vm1608_vm3, %v7516_v1, %v4594_v26 }
 0x350   : > { %4821 = vrot.lane.b32.xlu2 %v7453_v33, %s5254_s14  ;;  %4816 = vrot.lane.b32.xlu1 %v7396_v29, %s5254_s14 }
 0x351   : > { %4811 = vrot.lane.b32.xlu0 %v7348_v17, %s5254_s14 }
 0x352   : > { %v4597_v38 = vpop.permute.xlu1 %4596 }
 0x353   : > { %v4662_v52 = vpop.permute.xlu2 %4661  ;;  %v4599_v10 = vunpack.i.h.bf16 %v4597_v38  ;;  %v4598_v44 = vunpack.i.l.bf16 %v4597_v38  ;;  %v4574_v38 = vunpack.i.h.bf16 %v7797_v40 }
 0x354   : > { %v4664_v25 = vunpack.i.h.bf16 %v4662_v52  ;;  %v4663_v62 = vunpack.i.l.bf16 %v4662_v52 }
 0x355   : > { %v3367_v26 = vsel %vm1608_vm3, %v7311_v11, %v4599_v10  ;;  %v3366_v0 = vsel %vm1608_vm3, %v7769_v4, %v4598_v44 }
 0x356   : > { %v7925_v46 = vsel %vm1674_vm6, %v3361_v20, %v4664_v25  ;;  %v7928_v18 = vsel %vm1674_vm6, %v3360_v2, %v4663_v62  ;;  %v4573_v62 = vunpack.i.l.bf16 %v7797_v40 }
 0x358   : > { %4836 = vrot.lane.b32.xlu2 %v7617_v56, %s5254_s14  ;;  %4831 = vrot.lane.b32.xlu1 %v7555_v5, %s5254_s14  ;;  %v3352_v40 = vsel %vm1608_vm3, %v7698_v15, %v4573_v62 }
 0x359   : > { %4826 = vrot.lane.b32.xlu0 %v7501_v22, %s5254_s14 }
 0x35a   : > { %v4612_v49 = vpop.permute.xlu1 %4611 }
 0x35b   : > { %v4682_v37 = vpop.permute.xlu2 %4681  ;;  %v4614_v11 = vunpack.i.h.bf16 %v4612_v49  ;;  %v4613_v2 = vunpack.i.l.bf16 %v4612_v49 }
 0x35c   : > { %v4684_v1 = vunpack.i.h.bf16 %v4682_v37  ;;  %v4683_v30 = vunpack.i.l.bf16 %v4682_v37 }
 0x35d   : > { %v3373_v49 = vsel %vm1608_vm3, %v7488_v23, %v4614_v11  ;;  %v9214_v23 = vld [vmem:[#allocation66_spill] sm:$0xff] }
 0x35e   : > { %v7941_v52 = vsel %vm1674_vm6, %v3367_v26, %v4684_v1  ;;  %v7944_v25 = vsel %vm1674_vm6, %v3366_v0, %v4683_v30  ;;  %v3353_v1 = vsel %vm1608_vm3, %v7332_v35, %v4574_v38  ;;  %v3372_v0 = vsel %vm1608_vm3, %v7804_v63, %v4613_v2  ;;  %v9215_v63 = vld [vmem:[#allocation10_spill] sm:$0xff] }
 0x35f   : > { %v4589_v35 = vunpack.i.h.bf16 %v7838_v39  ;;  %v4588_v38 = vunpack.i.l.bf16 %v7838_v39 }
 0x360   : > { %4851 = vrot.lane.b32.xlu2 %v7427_v3, %s5254_s14  ;;  %4846 = vrot.lane.b32.xlu1 %v7373_v43, %s5254_s14 }
 0x361   : > { %4841 = vrot.lane.b32.xlu0 %v7304_v13, %s5254_s14  ;;  %v7954_v20 = vpop.permute.xlu0 %4641  ;;  %v3359_v39 = vsel %vm1608_vm3, %v7464_v36, %v4589_v35 }
 0x362   : > { %v4622_v4 = vpop.permute.xlu1 %4621 }
 0x363   : > { %v4624_v10 = vunpack.i.h.bf16 %v4622_v4  ;;  %v4623_v44 = vunpack.i.l.bf16 %v4622_v4  ;;  %v4697_v37 = vpop.permute.xlu2 %4696 }
 0x364   : > { %v4699_v30 = vunpack.i.h.bf16 %v4697_v37  ;;  %v4698_v26 = vunpack.i.l.bf16 %v4697_v37  ;;  %v3358_v37 = vsel %vm1608_vm3, %v7734_v42, %v4588_v38  ;;  %v9217_v42 = vld [vmem:[#allocation51_spill] sm:$0xff] }
 0x365   : > { %v7965_v3 = vsel %vm1674_vm6, %v3353_v1, %v4624_v10  ;;  %v7968_v4 = vsel %vm1674_vm6, %v3352_v40, %v4623_v44 }
 0x366   : > { %v7971_v17 = vsel %vm1674_vm6, %v3373_v49, %v4699_v30  ;;  %v7974_v15 = vsel %vm1674_vm6, %v3372_v0, %v4698_v26  ;;  %v9216_v30 = vld [vmem:[#allocation4_spill] sm:$0xff]  ;;  %v4584_v26 = vunpack.i.h.bf16 %v7754_v45  ;;  %v4583_v49 = vunpack.i.l.bf16 %v7754_v45 }
 0x368   : > { %4866 = vrot.lane.b32.xlu2 %v7580_v54, %s5254_s14  ;;  %4861 = vrot.lane.b32.xlu1 %v9214_v23, %s5254_s14  ;;  %v3356_v29 = vsel %vm1608_vm3, %v7739_v21, %v4583_v49 }
 0x369   : > { %4856 = vrot.lane.b32.xlu0 %v9215_v63, %s5254_s14  ;;  %v3357_v63 = vsel %vm1608_vm3, %v7422_v55, %v4584_v26  ;;  %v4634_v26 = vunpack.i.h.bf16 %v7877_v51 }
 0x36a   : > { %v4657_v62 = vpop.permute.xlu1 %4656 }
 0x36b   : > { %v4659_v11 = vunpack.i.h.bf16 %v4657_v62  ;;  %v4658_v2 = vunpack.i.l.bf16 %v4657_v62  ;;  %v7984_v10 = vpop.permute.xlu2 %4711  ;;  %v4647_v44 = vpop.permute.xlu0 %4646 }
 0x36c   : > { %v4649_v49 = vunpack.i.h.bf16 %v4647_v44  ;;  %v4648_v55 = vunpack.i.l.bf16 %v4647_v44 }
 0x36d   : > { %v7991_v40 = vsel %vm1674_vm6, %v3359_v39, %v4659_v11  ;;  %v7994_v1 = vsel %vm1674_vm6, %v3358_v37, %v4658_v2 }
 0x36e   : > { %v3365_v44 = vsel %vm1608_vm3, %v7764_v7, %v4649_v49 }
 0x370   : > { %4881 = vrot.lane.b32.xlu2 %v7711_v16, %s5254_s14  ;;  %4876 = vrot.lane.b32.xlu1 %v9216_v30, %s5254_s14 }
 0x371   : > { %4871 = vrot.lane.b32.xlu0 %v9217_v42, %s5254_s14  ;;  %s3818_s14 = sshll.u32 %s9275_s25, 4 }
 0x372   : > { %v4672_v36 = vpop.permute.xlu1 %4671  ;;  %s278_s17 = scalar_lea.vmem %s8746_s7, %s3818_s14 }
 0x373   : > { %v4674_v0 = vunpack.i.h.bf16 %v4672_v36  ;;  %v4673_v35 = vunpack.i.l.bf16 %v4672_v36  ;;  %v4717_v38 = vpop.permute.xlu2 %4716  ;;  %v4652_v62 = vpop.permute.xlu0 %4651 }
 0x374   : > { %v4719_v11 = vunpack.i.h.bf16 %v4717_v38  ;;  %v4718_v2 = vunpack.i.l.bf16 %v4717_v38  ;;  %v4654_v37 = vunpack.i.h.bf16 %v4652_v62  ;;  %v4653_v39 = vunpack.i.l.bf16 %v4652_v62 }
 0x375   : > { %v3379_v45 = vsel %vm1608_vm3, %v7841_v61, %v4674_v0  ;;  %v3378_v23 = vsel %vm1608_vm3, %v7844_v6, %v4673_v35  ;;  %v9218_v61 = vld [vmem:[#allocation9_spill] sm:$0xff]  ;;  %v9219_v6 = vld [vmem:[#allocation6_spill] sm:$0xff] }
 0x376   : > { %v8013_v36 = vsel %vm1674_vm6, %v3379_v45, %v4719_v11  ;;  %v8016_v33 = vsel %vm1674_vm6, %v3378_v23, %v4718_v2  ;;  %v8019_v38 = vsel %vm1674_vm6, %v3357_v63, %v4654_v37  ;;  %v8022_v21 = vsel %vm1674_vm6, %v3356_v29, %v4653_v39  ;;  %v9220_v0 = vld [vmem:[#allocation41_spill] sm:$0xff] }
 0x377   : > { %v4633_v23 = vunpack.i.l.bf16 %v7877_v51  ;;  %v3364_v29 = vsel %vm1608_vm3, %v7772_v8, %v4648_v55 }
 0x378   : > { %4896 = vrot.lane.b32.xlu2 %v9218_v61, %s5255_s27  ;;  %4891 = vrot.lane.b32.xlu1 %v9219_v6, %s5255_s27 }
 0x379   : > { %4886 = vrot.lane.b32.xlu0 %v9220_v0, %s5255_s27  ;;  %v3362_v51 = vsel %vm1608_vm3, %v7781_v32, %v4633_v23  ;;  %v3363_v0 = vsel %vm1608_vm3, %v7568_v19, %v4634_v26  ;;  %v4609_v19 = vunpack.i.h.bf16 %v7875_v34  ;;  %v4608_v26 = vunpack.i.l.bf16 %v7875_v34  ;;  %v9221_v23 = vld [vmem:[#allocation59_spill] sm:$0xff] }
 0x37a   : > { %v4677_v63 = vpop.permute.xlu1 %4676 }
 0x37b   : > { %v4732_v35 = vpop.permute.xlu2 %4731  ;;  %v4667_v62 = vpop.permute.xlu0 %4666  ;;  %v4679_v11 = vunpack.i.h.bf16 %v4677_v63  ;;  %v4678_v2 = vunpack.i.l.bf16 %v4677_v63  ;;  %v4604_v63 = vunpack.i.h.bf16 %v7799_v53  ;;  %v3370_v34 = vsel %vm1608_vm3, %v7809_v59, %v4608_v26 }
 0x37c   : > { %v4734_v37 = vunpack.i.h.bf16 %v4732_v35  ;;  %v4733_v39 = vunpack.i.l.bf16 %v4732_v35  ;;  %v4669_v45 = vunpack.i.h.bf16 %v4667_v62  ;;  %v4668_v6 = vunpack.i.l.bf16 %v4667_v62 }
 0x37d   : > { %v3396_v61 = vsel %vm1674_vm6, %v3364_v29, %v4678_v2  ;;  %v3397_v8 = vsel %vm1674_vm6, %v3365_v44, %v4679_v11  ;;  %v9223_v29 = vld [vmem:[#allocation15_spill] sm:$0xff] }
 0x37e   : > { %v8044_v7 = vsel %vm1740_vm8, %v7965_v3, %v4734_v37  ;;  %v8048_v49 = vsel %vm1740_vm8, %v7968_v4, %v4733_v39  ;;  %v8051_v55 = vsel %vm1674_vm6, %v3363_v0, %v4669_v45  ;;  %v8054_v32 = vsel %vm1674_vm6, %v3362_v51, %v4668_v6  ;;  %v9222_v3 = vld [vmem:[#allocation54_spill] sm:$0xff] }
 0x37f   : > { %v4603_v4 = vunpack.i.l.bf16 %v7799_v53  ;;  %v3371_v6 = vsel %vm1608_vm3, %v7440_v9, %v4609_v19  ;;  %v3369_v53 = vsel %vm1608_vm3, %v7384_v57, %v4604_v63  ;;  %v4643_v63 = vunpack.i.l.bf16 %v7954_v20 }
 0x380   : > { %4911 = vrot.lane.b32.xlu2 %v9221_v23, %s5255_s27  ;;  %4906 = vrot.lane.b32.xlu1 %v9222_v3, %s5255_s27 }
 0x381   : > { %4901 = vrot.lane.b32.xlu0 %v9223_v29, %s5255_s27  ;;  %v3368_v0 = vsel %vm1608_vm3, %v7814_v28, %v4603_v4  ;;  %v4644_v28 = vunpack.i.h.bf16 %v7954_v20  ;;  %v9224_v4 = vld [vmem:[#allocation47_spill] sm:$0xff]  ;;  %v3376_v20 = vsel %vm1608_vm3, %v7849_v60, %v4643_v63 }
 0x382   : > { %v4692_v44 = vpop.permute.xlu1 %4691 }
 0x383   : > { %v4747_v35 = vpop.permute.xlu2 %4746  ;;  %v4687_v62 = vpop.permute.xlu0 %4686  ;;  %v4694_v11 = vunpack.i.h.bf16 %v4692_v44  ;;  %v4693_v2 = vunpack.i.l.bf16 %v4692_v44  ;;  %v4629_v44 = vunpack.i.h.bf16 %v7836_v24 }
 0x384   : > { %v4749_v37 = vunpack.i.h.bf16 %v4747_v35  ;;  %v4748_v39 = vunpack.i.l.bf16 %v4747_v35  ;;  %v4689_v45 = vunpack.i.h.bf16 %v4687_v62  ;;  %v4688_v51 = vunpack.i.l.bf16 %v4687_v62 }
 0x385   : > { %v3403_v29 = vsel %vm1674_vm6, %v3371_v6, %v4694_v11  ;;  %v3402_v9 = vsel %vm1674_vm6, %v3370_v34, %v4693_v2  ;;  %v9226_v6 = vld [vmem:[#allocation65_spill] sm:$0xff]  ;;  %v3377_v35 = vsel %vm1608_vm3, %v7606_v41, %v4644_v28 }
 0x386   : > { %v8078_v59 = vsel %vm1740_vm8, %v7991_v40, %v4749_v37  ;;  %v8082_v19 = vsel %vm1740_vm8, %v7994_v1, %v4748_v39  ;;  %v8085_v26 = vsel %vm1674_vm6, %v3369_v53, %v4689_v45  ;;  %v8088_v57 = vsel %vm1674_vm6, %v3368_v0, %v4688_v51  ;;  %v9225_v40 = vld [vmem:[#allocation26_spill] sm:$0xff] }
 0x387   : > { %v4628_v1 = vunpack.i.l.bf16 %v7836_v24  ;;  %v3375_v24 = vsel %vm1608_vm3, %v7542_v50, %v4629_v44  ;;  %v9227_v50 = vld [vmem:[#allocation57_spill] sm:$0xff]  ;;  %v4714_v44 = vunpack.i.h.bf16 %v7984_v10 }
 0x388   : > { %4926 = vrot.lane.b32.xlu2 %v9224_v4, %s5255_s27  ;;  %4921 = vrot.lane.b32.xlu1 %v9225_v40, %s5255_s27 }
 0x389   : > { %4916 = vrot.lane.b32.xlu0 %v9226_v6, %s5255_s27  ;;  %v3374_v0 = vsel %vm1608_vm3, %v7854_v47, %v4628_v1  ;;  %v9228_v47 = vld [vmem:[#allocation48_spill] sm:$0xff]  ;;  %v9229_v1 = vld [vmem:[#allocation38_spill] sm:$0xff] }
 0x38a   : > { %v4707_v34 = vpop.permute.xlu1 %4706 }
 0x38b   : > { %v4762_v62 = vpop.permute.xlu2 %4761  ;;  %v4702_v11 = vpop.permute.xlu0 %4701  ;;  %v4709_v2 = vunpack.i.h.bf16 %v4707_v34  ;;  %v4708_v37 = vunpack.i.l.bf16 %v4707_v34 }
 0x38c   : > { %v4764_v39 = vunpack.i.h.bf16 %v4762_v62  ;;  %v4763_v45 = vunpack.i.l.bf16 %v4762_v62  ;;  %v4704_v51 = vunpack.i.h.bf16 %v4702_v11  ;;  %v4703_v53 = vunpack.i.l.bf16 %v4702_v11 }
 0x38d   : > { %v3409_v22 = vsel %vm1674_vm6, %v3377_v35, %v4709_v2  ;;  %v3408_v41 = vsel %vm1674_vm6, %v3376_v20, %v4708_v37 }
 0x38e   : > { %v8111_v60 = vsel %vm1740_vm8, %v3396_v61, %v4763_v45  ;;  %v8114_v28 = vsel %vm1740_vm8, %v3397_v8, %v4764_v39  ;;  %v8117_v63 = vsel %vm1674_vm6, %v3375_v24, %v4704_v51  ;;  %v8120_v34 = vsel %vm1674_vm6, %v3374_v0, %v4703_v53 }
 0x38f   : > { %v4713_v61 = vunpack.i.l.bf16 %v7984_v10  ;;  %v3381_v51 = vsel %vm1608_vm3, %v7881_v48, %v4714_v44 }
 0x390   : > { %4941 = vrot.lane.b32.xlu2 %v9227_v50, %s5255_s27  ;;  %4936 = vrot.lane.b32.xlu1 %v9228_v47, %s5255_s27 }
 0x391   : > { %4931 = vrot.lane.b32.xlu0 %v9229_v1, %s5255_s27  ;;  %v3380_v53 = vsel %vm1608_vm3, %v7884_v14, %v4713_v61  ;;  %v9230_v14 = vld [vmem:[#allocation67_spill] sm:$0xff] }
 0x392   : > { %v4727_v8 = vpop.permute.xlu1 %4726 }
 0x393   : > { %v4777_v35 = vpop.permute.xlu2 %4776  ;;  %v4722_v20 = vpop.permute.xlu0 %4721  ;;  %v4729_v62 = vunpack.i.h.bf16 %v4727_v8  ;;  %v4728_v11 = vunpack.i.l.bf16 %v4727_v8 }
 0x394   : > { %v4779_v2 = vunpack.i.h.bf16 %v4777_v35  ;;  %v4778_v37 = vunpack.i.l.bf16 %v4777_v35  ;;  %v4724_v39 = vunpack.i.h.bf16 %v4722_v20  ;;  %v4723_v45 = vunpack.i.l.bf16 %v4722_v20 }
 0x395   : > { %v3415_v10 = vsel %vm1740_vm8, %v7902_v58, %v4729_v62  ;;  %v3414_v24 = vsel %vm1740_vm8, %v7906_v31, %v4728_v11  ;;  %v9231_v58 = vld [vmem:[#allocation52_spill] sm:$0xff] }
 0x396   : > { %v8139_v0 = vsel %vm1740_vm8, %v3402_v9, %v4778_v37  ;;  %v8142_v8 = vsel %vm1740_vm8, %v3403_v29, %v4779_v2  ;;  %v8145_v35 = vsel %vm1674_vm6, %v3381_v51, %v4724_v39  ;;  %v8148_v48 = vsel %vm1674_vm6, %v3380_v53, %v4723_v45  ;;  %v9232_v31 = vld [vmem:[#allocation64_spill] sm:$0xff] }
 0x398   : > { %4956 = vrot.lane.b32.xlu2 %v9230_v14, %s5255_s27  ;;  %4951 = vrot.lane.b32.xlu1 %v9231_v58, %s5255_s27 }
 0x399   : > { %4946 = vrot.lane.b32.xlu0 %v9232_v31, %s5255_s27 }
 0x39a   : > { %v4742_v9 = vpop.permute.xlu1 %4741 }
 0x39b   : > { %v4792_v44 = vpop.permute.xlu2 %4791  ;;  %v4737_v61 = vpop.permute.xlu0 %4736  ;;  %v4744_v29 = vunpack.i.h.bf16 %v4742_v9  ;;  %v4743_v20 = vunpack.i.l.bf16 %v4742_v9 }
 0x39c   : > { %v4794_v62 = vunpack.i.h.bf16 %v4792_v44  ;;  %v4793_v11 = vunpack.i.l.bf16 %v4792_v44  ;;  %v4739_v2 = vunpack.i.h.bf16 %v4737_v61  ;;  %v4738_v37 = vunpack.i.l.bf16 %v4737_v61 }
 0x39d   : > { %v3421_v39 = vsel %vm1740_vm8, %v8019_v38, %v4744_v29  ;;  %v3420_v45 = vsel %vm1740_vm8, %v8022_v21, %v4743_v20  ;;  %v9233_v38 = vld [vmem:[#allocation16_spill] sm:$0xff]  ;;  %v9234_v21 = vld [vmem:[#allocation46_spill] sm:$0xff] }
 0x39e   : > { %v8161_v51 = vsel %vm1740_vm8, %v3408_v41, %v4793_v11  ;;  %v8164_v53 = vsel %vm1740_vm8, %v3409_v22, %v4794_v62  ;;  %v8168_v1 = vsel %vm1740_vm8, %v7909_v27, %v4739_v2  ;;  %v8172_v9 = vsel %vm1740_vm8, %v7912_v12, %v4738_v37  ;;  %v9235_v41 = vld [vmem:[#allocation89_spill] sm:$0xff] }
 0x3a0   : > { %4971 = vrot.lane.b32.xlu2 %v9233_v38, %s5256_s28  ;;  %4966 = vrot.lane.b32.xlu1 %v9234_v21, %s5256_s28 }
 0x3a1   : > { %4961 = vrot.lane.b32.xlu0 %v9235_v41, %s5255_s27 }
 0x3a2   : > { %v4757_v22 = vpop.permute.xlu1 %4756 }
 0x3a3   : > { %v4807_v44 = vpop.permute.xlu2 %4806  ;;  %v4752_v61 = vpop.permute.xlu0 %4751  ;;  %v4759_v29 = vunpack.i.h.bf16 %v4757_v22  ;;  %v4758_v27 = vunpack.i.l.bf16 %v4757_v22 }
 0x3a4   : > { %v4809_v20 = vunpack.i.h.bf16 %v4807_v44  ;;  %v4808_v62 = vunpack.i.l.bf16 %v4807_v44  ;;  %v4754_v11 = vunpack.i.h.bf16 %v4752_v61  ;;  %v4753_v12 = vunpack.i.l.bf16 %v4752_v61  ;;  %v2296_v44 = vld [vmem:[#allocation3 + $0x230] sm:$0xff]  ;;  %v2294_v61 = vld [vmem:[#allocation3 + $0x220] sm:$0xff] }
 0x3a5   : > { %v3427_v2 = vsel %vm1740_vm8, %v8051_v55, %v4759_v29  ;;  %v3426_v37 = vsel %vm1740_vm8, %v8054_v32, %v4758_v27  ;;  %v9238_v55 = vld [vmem:[#allocation76_spill] sm:$0xff]  ;;  %v9239_v32 = vld [vmem:[#allocation22_spill] sm:$0xff]  ;;  %v2574_v27 = vrot.slane %v2296_v44, 7 }
 0x3a6   : > { %v8185_v38 = vsel %vm1806_vm10, %v3414_v24, %v4808_v62  ;;  %v8188_v21 = vsel %vm1806_vm10, %v3415_v10, %v4809_v20  ;;  %v8192_v47 = vsel %vm1740_vm8, %v7925_v46, %v4754_v11  ;;  %v8196_v22 = vsel %vm1740_vm8, %v7928_v18, %v4753_v12  ;;  %v2295_v24 = vld [vmem:[#allocation3 + $0x228] sm:$0xff]  ;;  %v9240_v10 = vld [vmem:[#allocation23_spill] sm:$0xff] }
 0x3a7   : > { %9236 = vst [vmem:[#allocation40_spill] sm:$0xff] %v8185_v38  ;;  %v2572_v18 = vrot.slane %v2295_v24, 7  ;;  %v2571_v12 = vrot.slane %v2294_v61, 7 }
 0x3a8   : > { %9237 = vst [vmem:[#allocation20_spill] sm:$0xff] %v8188_v21  ;;  %4986 = vrot.lane.b32.xlu2 %v9238_v55, %s5256_s28  ;;  %4981 = vrot.lane.b32.xlu1 %v9239_v32, %s5256_s28 }
 0x3a9   : > { %4976 = vrot.lane.b32.xlu0 %v9240_v10, %s5256_s28 }
 0x3aa   : > { %v4772_v29 = vpop.permute.xlu1 %4771 }
 0x3ab   : > { %v4822_v46 = vpop.permute.xlu2 %4821  ;;  %v4767_v20 = vpop.permute.xlu0 %4766  ;;  %v4774_v62 = vunpack.i.h.bf16 %v4772_v29  ;;  %v4773_v11 = vunpack.i.l.bf16 %v4772_v29 }
 0x3ac   : > { %v4824_v50 = vunpack.i.h.bf16 %v4822_v46  ;;  %v4823_v3 = vunpack.i.l.bf16 %v4822_v46  ;;  %v4769_v23 = vunpack.i.h.bf16 %v4767_v20  ;;  %v4768_v55 = vunpack.i.l.bf16 %v4767_v20  ;;  %v9243_v46 = vld [vmem:[#allocation43_spill] sm:$0xff] }
 0x3ad   : > { %v3433_v32 = vsel %vm1740_vm8, %v8085_v26, %v4774_v62  ;;  %v3432_v54 = vsel %vm1740_vm8, %v8088_v57, %v4773_v11  ;;  %v9244_v26 = vld [vmem:[#allocation72_spill] sm:$0xff]  ;;  %v2575_v57 = vsel %vm570_vm2, %v2572_v18, %v2574_v27  ;;  %v5015_v11 = vpack.i.bf16 %v2296_v44, %v2295_v24 }
 0x3ae   : > { %v8209_v10 = vsel %vm1806_vm10, %v3420_v45, %v4823_v3  ;;  %v8212_v31 = vsel %vm1806_vm10, %v3421_v39, %v4824_v50  ;;  %v8216_v29 = vsel %vm1740_vm8, %v7941_v52, %v4769_v23  ;;  %v8220_v61 = vsel %vm1740_vm8, %v7944_v25, %v4768_v55  ;;  %v9245_v50 = vld [vmem:[#allocation82_spill] sm:$0xff]  ;;  %v2297_v23 = vld [vmem:[#allocation3 + $0x238] sm:$0xff] }
 0x3af   : > { %9241 = vst [vmem:[#allocation25_spill] sm:$0xff] %v8209_v10  ;;  %v2573_v3 = vsel %vm570_vm2, %v2571_v12, %v2572_v18  ;;  %v2578_v52 = vrot.slane %v2296_v44, 1  ;;  %v2577_v18 = vrot.slane %v2295_v24, 1 }
 0x3b0   : > { %9242 = vst [vmem:[#allocation68_spill] sm:$0xff] %v8212_v31  ;;  %5001 = vrot.lane.b32.xlu2 %v9243_v46, %s5256_s28  ;;  %4996 = vrot.lane.b32.xlu1 %v9244_v26, %s5256_s28  ;;  %v5010_v55 = vpack.i.bf16 %v2575_v57, %v2573_v3 }
 0x3b1   : > { %4991 = vrot.lane.b32.xlu0 %v9245_v50, %s5256_s28  ;;  %v2580_v50 = vrot.slane %v2297_v23, 1 }
 0x3b2   : > { %v4787_v39 = vpop.permute.xlu1 %4786 }
 0x3b3   : > { %v4837_v45 = vpop.permute.xlu2 %4836  ;;  %v4782_v20 = vpop.permute.xlu0 %4781  ;;  %v4789_v25 = vunpack.i.h.bf16 %v4787_v39  ;;  %v4788_v62 = vunpack.i.l.bf16 %v4787_v39 }
 0x3b4   : > { %v4839_v46 = vunpack.i.h.bf16 %v4837_v45  ;;  %v4838_v31 = vunpack.i.l.bf16 %v4837_v45  ;;  %v4784_v10 = vunpack.i.h.bf16 %v4782_v20  ;;  %v4783_v26 = vunpack.i.l.bf16 %v4782_v20 }
 0x3b5   : > { %v3439_v12 = vsel %vm1740_vm8, %v8117_v63, %v4789_v25  ;;  %v3438_v27 = vsel %vm1740_vm8, %v8120_v34, %v4788_v62  ;;  %v9246_v63 = vld [vmem:[#allocation80_spill] sm:$0xff] }
 0x3b6   : > { %v8235_v21 = vsel %vm1806_vm10, %v3426_v37, %v4838_v31  ;;  %v8238_v38 = vsel %vm1806_vm10, %v3427_v2, %v4839_v46  ;;  %v8242_v44 = vsel %vm1740_vm8, %v7971_v17, %v4784_v10  ;;  %v8246_v3 = vsel %vm1740_vm8, %v7974_v15, %v4783_v26 }
 0x3b7   : > { %v2579_v31 = vsel %vm699_vm1, %v2577_v18, %v2578_v52  ;;  %v2581_v2 = vsel %vm699_vm1, %v2578_v52, %v2580_v50 }
 0x3b8   : > { %5016 = vrot.lane.b32.xlu2 %v5015_v11, %s5257_s29  ;;  %5011 = vrot.lane.b32.xlu1 %v5010_v55, %s5256_s28  ;;  %v5020_v25 = vpack.i.bf16 %v2581_v2, %v2579_v31 }
 0x3b9   : > { %5006 = vrot.lane.b32.xlu0 %v9246_v63, %s5256_s28 }
 0x3ba   : > { %v4802_v34 = vpop.permute.xlu1 %4801 }
 0x3bb   : > { %v4852_v37 = vpop.permute.xlu2 %4851  ;;  %v4797_v17 = vpop.permute.xlu0 %4796  ;;  %v4804_v24 = vunpack.i.h.bf16 %v4802_v34  ;;  %v4803_v10 = vunpack.i.l.bf16 %v4802_v34 }
 0x3bc   : > { %v4854_v57 = vunpack.i.h.bf16 %v4852_v37  ;;  %v4853_v15 = vunpack.i.l.bf16 %v4852_v37  ;;  %v4799_v39 = vunpack.i.h.bf16 %v4797_v17  ;;  %v4798_v23 = vunpack.i.l.bf16 %v4797_v17 }
 0x3bd   : > { %v3445_v45 = vsel %vm1740_vm8, %v8145_v35, %v4804_v24  ;;  %v3444_v20 = vsel %vm1740_vm8, %v8148_v48, %v4803_v10  ;;  %v9247_v35 = vld [vmem:[#allocation88_spill] sm:$0xff] }
 0x3be   : > { %v8259_v62 = vsel %vm1806_vm10, %v3432_v54, %v4853_v15  ;;  %v8262_v52 = vsel %vm1806_vm10, %v3433_v32, %v4854_v57  ;;  %v8266_v11 = vsel %vm1740_vm8, %v8013_v36, %v4799_v39  ;;  %v8270_v55 = vsel %vm1740_vm8, %v8016_v33, %v4798_v23 }
 0x3c0   : > { %5031 = vrot.lane.b32.xlu2 %v9247_v35, %s5256_s28  ;;  %5026 = vrot.lane.b32.xlu1 %v7373_v43, %s5257_s29 }
 0x3c1   : > { %5021 = vrot.lane.b32.xlu0 %v5020_v25, %s5258_s30 }
 0x3c2   : > { %v4817_v54 = vpop.permute.xlu1 %4816 }
 0x3c3   : > { %v4867_v48 = vpop.permute.xlu2 %4866  ;;  %v4812_v32 = vpop.permute.xlu0 %4811  ;;  %v4819_v46 = vunpack.i.h.bf16 %v4817_v54  ;;  %v4818_v26 = vunpack.i.l.bf16 %v4817_v54 }
 0x3c4   : > { %v4869_v36 = vunpack.i.h.bf16 %v4867_v48  ;;  %v4868_v18 = vunpack.i.l.bf16 %v4867_v48  ;;  %v4814_v50 = vunpack.i.h.bf16 %v4812_v32  ;;  %v4813_v63 = vunpack.i.l.bf16 %v4812_v32 }
 0x3c5   : > { %v3451_v33 = vsel %vm1806_vm10, %v8168_v1, %v4819_v46  ;;  %v3450_v34 = vsel %vm1806_vm10, %v8172_v9, %v4818_v26 }
 0x3c6   : > { %v8282_v43 = vsel %vm1806_vm10, %v3438_v27, %v4868_v18  ;;  %v8285_v31 = vsel %vm1806_vm10, %v3439_v12, %v4869_v36  ;;  %v8289_v2 = vsel %vm1806_vm10, %v8044_v7, %v4814_v50  ;;  %v8293_v37 = vsel %vm1806_vm10, %v8048_v49, %v4813_v63 }
 0x3c8   : > { %5046 = vrot.lane.b32.xlu2 %v9235_v41, %s5258_s30  ;;  %5041 = vrot.lane.b32.xlu1 %v7711_v16, %s5257_s29 }
 0x3c9   : > { %5036 = vrot.lane.b32.xlu0 %v9224_v4, %s5258_s30 }
 0x3ca   : > { %v4832_v1 = vpop.permute.xlu1 %4831 }
 0x3cb   : > { %v4882_v9 = vpop.permute.xlu2 %4881  ;;  %v4827_v12 = vpop.permute.xlu0 %4826  ;;  %v4834_v27 = vunpack.i.h.bf16 %v4832_v1  ;;  %v4833_v17 = vunpack.i.l.bf16 %v4832_v1 }
 0x3cc   : > { %v4884_v7 = vunpack.i.h.bf16 %v4882_v9  ;;  %v4883_v24 = vunpack.i.l.bf16 %v4882_v9  ;;  %v4829_v10 = vunpack.i.h.bf16 %v4827_v12  ;;  %v4828_v57 = vunpack.i.l.bf16 %v4827_v12 }
 0x3cd   : > { %v3457_v49 = vsel %vm1806_vm10, %v8192_v47, %v4834_v27  ;;  %v3456_v41 = vsel %vm1806_vm10, %v8196_v22, %v4833_v17  ;;  %v9248_v47 = vld [vmem:[#allocation62_spill] sm:$0xff] }
 0x3ce   : > { %v8306_v16 = vsel %vm1806_vm10, %v3444_v20, %v4883_v24  ;;  %v8309_v4 = vsel %vm1806_vm10, %v3445_v45, %v4884_v7  ;;  %v8313_v15 = vsel %vm1806_vm10, %v8078_v59, %v4829_v10  ;;  %v8317_v39 = vsel %vm1806_vm10, %v8082_v19, %v4828_v57 }
 0x3d0   : > { %5061 = vrot.lane.b32.xlu2 %v9225_v40, %s5258_s30  ;;  %5056 = vrot.lane.b32.xlu1 %v9248_v47, %s5256_s28 }
 0x3d1   : > { %5051 = vrot.lane.b32.xlu0 %v7304_v13, %s5257_s29 }
 0x3d2   : > { %v4847_v22 = vpop.permute.xlu1 %4846 }
 0x3d3   : > { %v4897_v23 = vpop.permute.xlu2 %4896  ;;  %v4842_v45 = vpop.permute.xlu0 %4841  ;;  %v4849_v20 = vunpack.i.h.bf16 %v4847_v22  ;;  %v4848_v59 = vunpack.i.l.bf16 %v4847_v22 }
 0x3d4   : > { %v4899_v25 = vunpack.i.h.bf16 %v4897_v23  ;;  %v4898_v35 = vunpack.i.l.bf16 %v4897_v23  ;;  %v4844_v54 = vunpack.i.h.bf16 %v4842_v45  ;;  %v4843_v19 = vunpack.i.l.bf16 %v4842_v45 }
 0x3d5   : > { %v3463_v48 = vsel %vm1806_vm10, %v8216_v29, %v4849_v20  ;;  %v3462_v40 = vsel %vm1806_vm10, %v8220_v61, %v4848_v59 }
 0x3d6   : > { %v8330_v32 = vsel %vm3478_vm12, %v3450_v34, %v4898_v35  ;;  %v8333_v13 = vsel %vm3478_vm12, %v3451_v33, %v4899_v25  ;;  %v8337_v46 = vsel %vm1806_vm10, %v8111_v60, %v4843_v19  ;;  %v8341_v26 = vsel %vm1806_vm10, %v8114_v28, %v4844_v54  ;;  %v9251_v19 = vld [vmem:[#allocation40_spill] sm:$0xff] }
 0x3d8   : > { %5076 = vrot.lane.b32.xlu2 %v7617_v56, %s5257_s29  ;;  %5071 = vrot.lane.b32.xlu1 %v9230_v14, %s5258_s30 }
 0x3d9   : > { %5066 = vrot.lane.b32.xlu0 %v9216_v30, %s5257_s29 }
 0x3da   : > { %v4862_v29 = vpop.permute.xlu1 %4861 }
 0x3db   : > { %v4912_v61 = vpop.permute.xlu2 %4911  ;;  %v4857_v36 = vpop.permute.xlu0 %4856  ;;  %v4864_v18 = vunpack.i.h.bf16 %v4862_v29  ;;  %v4863_v50 = vunpack.i.l.bf16 %v4862_v29 }
 0x3dc   : > { %v4914_v60 = vunpack.i.h.bf16 %v4912_v61  ;;  %v4913_v63 = vunpack.i.l.bf16 %v4912_v61  ;;  %v4859_v33 = vunpack.i.h.bf16 %v4857_v36  ;;  %v4858_v34 = vunpack.i.l.bf16 %v4857_v36  ;;  %v9253_v61 = vld [vmem:[#allocation64_spill] sm:$0xff] }
 0x3dd   : > { %v3469_v28 = vsel %vm1806_vm10, %v8242_v44, %v4864_v18  ;;  %v3468_v56 = vsel %vm1806_vm10, %v8246_v3, %v4863_v50  ;;  %v9249_v44 = vld [vmem:[#allocation5_spill] sm:$0xff] }
 0x3de   : > { %v8354_v14 = vsel %vm3478_vm12, %v3456_v41, %v4913_v63  ;;  %v8357_v30 = vsel %vm3478_vm12, %v3457_v49, %v4914_v60  ;;  %v8361_v1 = vsel %vm1806_vm10, %v8139_v0, %v4858_v34  ;;  %v8365_v9 = vsel %vm1806_vm10, %v8142_v8, %v4859_v33 }
 0x3e0   : > { %5091 = vrot.lane.b32.xlu2 %v9217_v42, %s5257_s29  ;;  %5086 = vrot.lane.b32.xlu1 %v9226_v6, %s5258_s30 }
 0x3e1   : > { %5081 = vrot.lane.b32.xlu0 %v9249_v44, %s5256_s28  ;;  %v9256_v44 = vld [vmem:[#allocation25_spill] sm:$0xff] }
 0x3e2   : > { %v4877_v3 = vpop.permute.xlu1 %4876 }
 0x3e3   : > { %v4927_v12 = vpop.permute.xlu2 %4926  ;;  %v4872_v27 = vpop.permute.xlu0 %4871  ;;  %v4879_v17 = vunpack.i.h.bf16 %v4877_v3  ;;  %v4878_v7 = vunpack.i.l.bf16 %v4877_v3 }
 0x3e4   : > { %v4929_v0 = vunpack.i.h.bf16 %v4927_v12  ;;  %v4928_v24 = vunpack.i.l.bf16 %v4927_v12  ;;  %v4874_v10 = vunpack.i.h.bf16 %v4872_v27  ;;  %v4873_v57 = vunpack.i.l.bf16 %v4872_v27  ;;  %v9257_v12 = vld [vmem:[#allocation68_spill] sm:$0xff] }
 0x3e5   : > { %v8375_v8 = vsel %vm1806_vm10, %v8266_v11, %v4879_v17  ;;  %v8379_v42 = vsel %vm1806_vm10, %v8270_v55, %v4878_v7  ;;  %v9250_v11 = vld [vmem:[#allocation12_spill] sm:$0xff]  ;;  %v9258_v17 = vld [vmem:[#allocation54_spill] sm:$0xff]  ;;  %v9259_v7 = vld [vmem:[#allocation53_spill] sm:$0xff] }
 0x3e6   : > { %v8382_v6 = vsel %vm3478_vm12, %v3462_v40, %v4928_v24  ;;  %v8385_v49 = vsel %vm3478_vm12, %v3463_v48, %v4929_v0  ;;  %v8389_v41 = vsel %vm1806_vm10, %v8161_v51, %v4873_v57  ;;  %v8393_v47 = vsel %vm1806_vm10, %v8164_v53, %v4874_v10  ;;  %v9252_v40 = vld [vmem:[#allocation20_spill] sm:$0xff]  ;;  %v9260_v0 = vld [vmem:[#allocation49_spill] sm:$0xff] }
 0x3e8   : > { %5106 = vrot.lane.b32.xlu2 %v9250_v11, %s5256_s28  ;;  %5101 = vrot.lane.b32.xlu1 %v7555_v5, %s5257_s29 }
 0x3e9   : > { %5096 = vrot.lane.b32.xlu0 %v9231_v58, %s5258_s30 }
 0x3ea   : > { %v4892_v55 = vpop.permute.xlu1 %4891 }
 0x3eb   : > { %v4942_v22 = vpop.permute.xlu2 %4941  ;;  %v4887_v23 = vpop.permute.xlu0 %4886  ;;  %v4894_v45 = vunpack.i.h.bf16 %v4892_v55  ;;  %v4893_v20 = vunpack.i.l.bf16 %v4892_v55 }
 0x3ec   : > { %v4944_v51 = vunpack.i.h.bf16 %v4942_v22  ;;  %v4943_v59 = vunpack.i.l.bf16 %v4942_v22  ;;  %v4889_v25 = vunpack.i.h.bf16 %v4887_v23  ;;  %v4888_v35 = vunpack.i.l.bf16 %v4887_v23 }
 0x3ed   : > { %v3482_v53 = vsel %vm3478_vm12, %v8289_v2, %v4894_v45  ;;  %v3481_v54 = vsel %vm3478_vm12, %v8293_v37, %v4893_v20  ;;  %v9254_v2 = vld [vmem:[#allocation61_spill] sm:$0xff]  ;;  %v9255_v37 = vld [vmem:[#allocation59_spill] sm:$0xff] }
 0x3ee   : > { %v8406_v5 = vsel %vm3478_vm12, %v3468_v56, %v4943_v59  ;;  %v8409_v58 = vsel %vm3478_vm12, %v3469_v28, %v4944_v51  ;;  %v8413_v48 = vsel %vm3478_vm12, %v9251_v19, %v4888_v35  ;;  %v8417_v29 = vsel %vm3478_vm12, %v9252_v40, %v4889_v25  ;;  %v9261_v51 = vld [vmem:[#allocation37_spill] sm:$0xff]  ;;  %v9263_v25 = vld [vmem:[#allocation66_spill] sm:$0xff] }
 0x3ef   : > { %v9262_v59 = vld [vmem:[#allocation57_spill] sm:$0xff] }
 0x3f0   : > { %5121 = vrot.lane.b32.xlu2 %v9253_v61, %s5258_s30  ;;  %5116 = vrot.lane.b32.xlu1 %v9254_v2, %s5257_s29 }
 0x3f1   : > { %5111 = vrot.lane.b32.xlu0 %v9255_v37, %s5258_s30 }
 0x3f2   : > { %v4907_v36 = vpop.permute.xlu1 %4906 }
 0x3f3   : > { %v8425_v18 = vpop.permute.xlu2 %4956  ;;  %v4902_v50 = vpop.permute.xlu0 %4901  ;;  %v4909_v60 = vunpack.i.h.bf16 %v4907_v36  ;;  %v4908_v63 = vunpack.i.l.bf16 %v4907_v36 }
 0x3f4   : > { %v4904_v33 = vunpack.i.h.bf16 %v4902_v50  ;;  %v4903_v34 = vunpack.i.l.bf16 %v4902_v50 }
 0x3f5   : > { %v3488_v28 = vsel %vm3478_vm12, %v8313_v15, %v4909_v60  ;;  %v3487_v56 = vsel %vm3478_vm12, %v8317_v39, %v4908_v63 }
 0x3f6   : > { %v8433_v3 = vsel %vm3478_vm12, %v9256_v44, %v4903_v34  ;;  %v8437_v27 = vsel %vm3478_vm12, %v9257_v12, %v4904_v33  ;;  %v9266_v34 = vld [vmem:[#allocation83_spill] sm:$0xff] }
 0x3f8   : > { %5136 = vrot.lane.b32.xlu2 %v9258_v17, %s5258_s30  ;;  %5131 = vrot.lane.b32.xlu1 %v9259_v7, %s5256_s28  ;;  %v9267_v7 = vld [vmem:[#allocation9_spill] sm:$0xff] }
 0x3f9   : > { %5126 = vrot.lane.b32.xlu0 %v9260_v0, %s5257_s29  ;;  %v9268_v0 = vld [vmem:[#allocation8_spill] sm:$0xff] }
 0x3fa   : > { %v8445_v15 = vpop.permute.xlu1 %4921 }
 0x3fb   : > { %v4972_v39 = vpop.permute.xlu2 %4971  ;;  %v4917_v24 = vpop.permute.xlu0 %4916 }
 0x3fc   : > { %v4974_v10 = vunpack.i.h.bf16 %v4972_v39  ;;  %v4973_v57 = vunpack.i.l.bf16 %v4972_v39  ;;  %v4919_v11 = vunpack.i.h.bf16 %v4917_v24  ;;  %v4918_v55 = vunpack.i.l.bf16 %v4917_v24  ;;  %v9269_v39 = vld [vmem:[#allocation48_spill] sm:$0xff] }
 0x3fe   : > { %v8448_v22 = vsel %vm3511_vm13, %v3481_v54, %v4973_v57  ;;  %v8451_v23 = vsel %vm3511_vm13, %v3482_v53, %v4974_v10  ;;  %v8455_v45 = vsel %vm3478_vm12, %v8235_v21, %v4918_v55  ;;  %v8459_v20 = vsel %vm3478_vm12, %v8238_v38, %v4919_v11 }
 0x400   : > { %5151 = vrot.lane.b32.xlu2 %v9261_v51, %s5257_s29  ;;  %5146 = vrot.lane.b32.xlu1 %v9262_v59, %s5258_s30  ;;  %v9270_v51 = vld [vmem:[#allocation45_spill] sm:$0xff]  ;;  %v9271_v59 = vld [vmem:[#allocation38_spill] sm:$0xff] }
 0x401   : > { %5141 = vrot.lane.b32.xlu0 %v9263_v25, %s5257_s29  ;;  %v9272_v25 = vld [vmem:[#allocation11_spill] sm:$0xff] }
 0x402   : > { %v4937_v35 = vpop.permute.xlu1 %4936 }
 0x403   : > { %v4987_v53 = vpop.permute.xlu2 %4986  ;;  %v4932_v54 = vpop.permute.xlu0 %4931  ;;  %v4939_v19 = vunpack.i.h.bf16 %v4937_v35  ;;  %v4938_v40 = vunpack.i.l.bf16 %v4937_v35 }
 0x404   : > { %v4989_v21 = vunpack.i.h.bf16 %v4987_v53  ;;  %v4988_v61 = vunpack.i.l.bf16 %v4987_v53  ;;  %v4934_v2 = vunpack.i.h.bf16 %v4932_v54  ;;  %v4933_v37 = vunpack.i.l.bf16 %v4932_v54 }
 0x405   : > { %v8469_v38 = vsel %vm3478_vm12, %v8365_v9, %v4939_v19  ;;  %v8473_v36 = vsel %vm3478_vm12, %v8361_v1, %v4938_v40  ;;  %v9264_v9 = vld [vmem:[#allocation10_spill] sm:$0xff]  ;;  %v9265_v1 = vld [vmem:[#allocation15_spill] sm:$0xff] }
 0x406   : > { %v8476_v50 = vsel %vm3511_vm13, %v3487_v56, %v4988_v61  ;;  %v8479_v60 = vsel %vm3511_vm13, %v3488_v28, %v4989_v21  ;;  %v8483_v63 = vsel %vm3478_vm12, %v8259_v62, %v4933_v37  ;;  %v8487_v33 = vsel %vm3478_vm12, %v8262_v52, %v4934_v2 }
 0x408   : > { %5166 = vrot.lane.b32.xlu2 %v9264_v9, %s5257_s29  ;;  %5161 = vrot.lane.b32.xlu1 %v9265_v1, %s5258_s30  ;;  %v9273_v9 = vld [vmem:[#allocation6_spill] sm:$0xff] }
 0x409   : > { %5156 = vrot.lane.b32.xlu0 %v9266_v34, %s5256_s28 }
 0x40a   : > { %v8495_v56 = vpop.permute.xlu1 %4951 }
 0x40b   : > { %v8497_v28 = vpop.permute.xlu2 %5001  ;;  %v4947_v44 = vpop.permute.xlu0 %4946 }
 0x40c   : > { %v4949_v62 = vunpack.i.h.bf16 %v4947_v44  ;;  %v4948_v12 = vunpack.i.l.bf16 %v4947_v44 }
 0x40e   : > { %v8501_v52 = vsel %vm3478_vm12, %v8282_v43, %v4948_v12  ;;  %v8505_v17 = vsel %vm3478_vm12, %v8285_v31, %v4949_v62 }
 0x410   : > { %5181 = vrot.lane.b32.xlu2 %v9267_v7, %s5258_s30  ;;  %5176 = vrot.lane.b32.xlu1 %v9268_v0, %s5257_s29 }
 0x411   : > { %5171 = vrot.lane.b32.xlu0 %v9269_v39, %s5258_s30 }
 0x412   : > { %v4967_v24 = vpop.permute.xlu1 %4966 }
 0x413   : > { %v5017_v10 = vpop.permute.xlu2 %5016  ;;  %v4962_v57 = vpop.permute.xlu0 %4961  ;;  %v4969_v11 = vunpack.i.h.bf16 %v4967_v24  ;;  %v4968_v55 = vunpack.i.l.bf16 %v4967_v24 }
 0x414   : > { %v4964_v7 = vunpack.i.h.bf16 %v4962_v57 }
 0x415   : > { %v8515_v43 = vsel %vm3511_vm13, %v8417_v29, %v4969_v11  ;;  %v8519_v31 = vsel %vm3511_vm13, %v8413_v48, %v4968_v55  ;;  %v5019_v11 = vunpack.i.h.bf16 %v5017_v10  ;;  %v5018_v55 = vunpack.i.l.bf16 %v5017_v10 }
 0x416   : > { %v4958_v10 = vunpack.i.l.bf16 %v8425_v18 }
 0x418   : > { %5196 = vrot.lane.b32.xlu2 %v9270_v51, %s5257_s29  ;;  %5191 = vrot.lane.b32.xlu1 %v9271_v59, %s5258_s30  ;;  %v3510_v59 = vsel %vm3478_vm12, %v8309_v4, %v4964_v7  ;;  %v4924_v4 = vunpack.i.h.bf16 %v8445_v15 }
 0x419   : > { %5186 = vrot.lane.b32.xlu0 %v9272_v25, %s5257_s29 }
 0x41a   : > { %v4982_v35 = vpop.permute.xlu1 %4981 }
 0x41b   : > { %v4977_v53 = vpop.permute.xlu0 %4976  ;;  %v4984_v54 = vunpack.i.h.bf16 %v4982_v35  ;;  %v4983_v19 = vunpack.i.l.bf16 %v4982_v35  ;;  %v5032_v21 = vpop.permute.xlu2 %5031 }
 0x41c   : > { %v4979_v40 = vunpack.i.h.bf16 %v4977_v53  ;;  %v4978_v29 = vunpack.i.l.bf16 %v4977_v53 }
 0x41d   : > { %v8529_v48 = vsel %vm3511_vm13, %v8437_v27, %v4984_v54  ;;  %v8533_v61 = vsel %vm3511_vm13, %v8433_v3, %v4983_v19  ;;  %v4923_v54 = vunpack.i.l.bf16 %v8445_v15  ;;  %v3494_v15 = vsel %vm3478_vm12, %v8341_v26, %v4924_v4 }
 0x41e   : > { %v8537_v2 = vsel %vm3511_vm13, %v8330_v32, %v4978_v29  ;;  %v8541_v37 = vsel %vm3511_vm13, %v8333_v13, %v4979_v40  ;;  %v4963_v32 = vunpack.i.l.bf16 %v4962_v57  ;;  %v5004_v40 = vunpack.i.h.bf16 %v8497_v28 }
 0x420   : > { %v3509_v51 = vsel %vm3478_vm12, %v8306_v16, %v4963_v32  ;;  %v3493_v32 = vsel %vm3478_vm12, %v8337_v46, %v4923_v54 }
 0x421   : > { %5201 = vrot.lane.b32.xlu0 %v9273_v9, %s5258_s30 }
 0x422   : > { %v8545_v1 = vpop.permute.xlu1 %4996 }
 0x423   : > { %v8547_v34 = vpop.permute.xlu0 %4991  ;;  %v8549_v27 = vpop.permute.xlu2 %5046 }
 0x42a   : > { %v5012_v44 = vpop.permute.xlu1 %5011 }
 0x42b   : > { %v5007_v3 = vpop.permute.xlu0 %5006  ;;  %v5014_v39 = vunpack.i.h.bf16 %v5012_v44  ;;  %v5013_v24 = vunpack.i.l.bf16 %v5012_v44  ;;  %v8563_v25 = vpop.permute.xlu2 %5061  ;;  %v5003_v44 = vunpack.i.l.bf16 %v8497_v28  ;;  %v3507_v28 = vsel %vm3478_vm12, %v8379_v42, %v4958_v10 }
 0x42c   : > { %v5009_v62 = vunpack.i.h.bf16 %v5007_v3  ;;  %v5008_v12 = vunpack.i.l.bf16 %v5007_v3  ;;  %v5049_v42 = vunpack.i.h.bf16 %v8549_v27  ;;  %v5048_v10 = vunpack.i.l.bf16 %v8549_v27 }
 0x42d   : > { %v3542_v57 = vsel %vm3511_vm13, %v3509_v51, %v5013_v24  ;;  %v3526_v51 = vsel %vm3511_vm13, %v3493_v32, %v5003_v44 }
 0x42e   : > { %v8553_v0 = vsel %vm3511_vm13, %v8382_v6, %v5008_v12  ;;  %v8557_v13 = vsel %vm3511_vm13, %v8385_v49, %v5009_v62  ;;  %v3543_v6 = vsel %vm3511_vm13, %v3510_v59, %v5014_v39  ;;  %v4959_v49 = vunpack.i.h.bf16 %v8425_v18 }
 0x42f   : > { %v3575_v29 = vsel %vm3544_vm14, %v3542_v57, %v5018_v55  ;;  %v3576_v9 = vsel %vm3544_vm14, %v3543_v6, %v5019_v11  ;;  %v5034_v18 = vunpack.i.h.bf16 %v5032_v21  ;;  %v5033_v12 = vunpack.i.l.bf16 %v5032_v21 }
 0x430   : > { %v3508_v55 = vsel %vm3478_vm12, %v8375_v8, %v4959_v49  ;;  %v3527_v21 = vsel %vm3511_vm13, %v3494_v15, %v5004_v40 }
 0x431   : > { %v3540_v46 = vsel %vm3511_vm13, %v3507_v28, %v5033_v12  ;;  %v3541_v26 = vsel %vm3511_vm13, %v3508_v55, %v5034_v18  ;;  %v4998_v18 = vunpack.i.l.bf16 %v8545_v1  ;;  %v5064_v55 = vunpack.i.h.bf16 %v8563_v25 }
 0x432   : > { %v5027_v35 = vpop.permute.xlu1 %5026 }
 0x433   : > { %v5022_v53 = vpop.permute.xlu0 %5021  ;;  %v5029_v39 = vunpack.i.h.bf16 %v5027_v35  ;;  %v5028_v24 = vunpack.i.l.bf16 %v5027_v35  ;;  %v8590_v57 = vpop.permute.xlu2 %5076 }
 0x434   : > { %v5024_v16 = vunpack.i.h.bf16 %v5022_v53  ;;  %v5023_v19 = vunpack.i.l.bf16 %v5022_v53 }
 0x435   : > { %v3559_v54 = vsel %vm3544_vm14, %v3526_v51, %v5028_v24 }
 0x436   : > { %v3608_v3 = vsel %vm3577_vm15, %v3575_v29, %v5023_v19  ;;  %v3609_v62 = vsel %vm3577_vm15, %v3576_v9, %v5024_v16  ;;  %v3560_v16 = vsel %vm3544_vm14, %v3527_v21, %v5029_v39 }
 0x437   : > { %v3625_v7 = vpack.c.bf16 %v3609_v62, %v3608_v3  ;;  %v4999_v62 = vunpack.i.h.bf16 %v8545_v1  ;;  %v5063_v1 = vunpack.i.l.bf16 %v8563_v25 }
 0x439   : > { %v3677_v11 = vsel %vm3627_vm0, %v3625_v7, 0  ;;  %v3525_v28 = vsel %vm3511_vm13, %v8459_v20, %v4999_v62 }
 0x43a   : > { %3692 = vmatpush.bf16.xpose.msra.mxu2 %v3677_v11  ;;  %v5042_v59 = vpop.permute.xlu1 %5041  ;;  %v3524_v11 = vsel %vm3511_vm13, %v8455_v45, %v4998_v18  ;;  %v4953_v45 = vunpack.i.l.bf16 %v8495_v56  ;;  %v5078_v18 = vunpack.i.l.bf16 %v8590_v57 }
 0x43b   : > { %v5037_v6 = vpop.permute.xlu0 %5036  ;;  %v5044_v35 = vunpack.i.h.bf16 %v5042_v59  ;;  %v5043_v53 = vunpack.i.l.bf16 %v5042_v59  ;;  %v5092_v51 = vpop.permute.xlu2 %5091 }
 0x43c   : > { %v5039_v8 = vunpack.i.h.bf16 %v5037_v6  ;;  %v5038_v49 = vunpack.i.l.bf16 %v5037_v6  ;;  %v4954_v6 = vunpack.i.h.bf16 %v8495_v56 }
 0x43d   : > { %v3573_v19 = vsel %vm3544_vm14, %v3540_v46, %v5043_v53  ;;  %v3574_v4 = vsel %vm3544_vm14, %v3541_v26, %v5044_v35 }
 0x43e   : > { %v3592_v40 = vsel %vm3577_vm15, %v3559_v54, %v5038_v49  ;;  %v3593_v29 = vsel %vm3577_vm15, %v3560_v16, %v5039_v8  ;;  %v3606_v9 = vsel %vm3577_vm15, %v3573_v19, %v5048_v10  ;;  %v3607_v44 = vsel %vm3577_vm15, %v3574_v4, %v5049_v42 }
 0x43f   : > { %v3617_v3 = vpack.c.bf16 %v3593_v29, %v3592_v40  ;;  %v3624_v27 = vpack.c.bf16 %v3607_v44, %v3606_v9  ;;  %v3506_v54 = vsel %vm3478_vm12, %v8393_v47, %v4954_v6  ;;  %v3505_v16 = vsel %vm3478_vm12, %v8389_v41, %v4953_v45 }
 0x440   : > { %v4994_v44 = vunpack.i.h.bf16 %v8547_v34  ;;  %v5079_v41 = vunpack.i.h.bf16 %v8590_v57 }
 0x441   : > { %v3653_v12 = vsel %vm3627_vm0, %v3617_v3, 0  ;;  %v3674_v7 = vsel %vm3627_vm0, %v3624_v27, 0  ;;  %v4993_v3 = vunpack.i.l.bf16 %v8547_v34 }
 0x442   : > { %3679 = vmatpush.bf16.xpose.msra.mxu1 %v3653_v12  ;;  %v5057_v32 = vpop.permute.xlu1 %5056  ;;  %3693 = vmatpush.bf16.xpose.msra.mxu2 %v3674_v7 }
 0x443   : > { %v5052_v15 = vpop.permute.xlu0 %5051  ;;  %v5059_v53 = vunpack.i.h.bf16 %v5057_v32  ;;  %v5058_v20 = vunpack.i.l.bf16 %v5057_v32  ;;  %v5107_v27 = vpop.permute.xlu2 %5106 }
 0x444   : > { %v5054_v39 = vunpack.i.h.bf16 %v5052_v15  ;;  %v5053_v24 = vunpack.i.l.bf16 %v5052_v15  ;;  %v3522_v15 = vsel %vm3511_vm13, %v8354_v14, %v4993_v3 }
 0x445   : > { %v3538_v56 = vsel %vm3511_vm13, %v3505_v16, %v5058_v20  ;;  %v3539_v40 = vsel %vm3511_vm13, %v3506_v54, %v5059_v53  ;;  %v5093_v53 = vunpack.i.l.bf16 %v5092_v51  ;;  %v5109_v16 = vunpack.i.h.bf16 %v5107_v27 }
 0x446   : > { %v3557_v21 = vsel %vm3544_vm14, %v3524_v11, %v5053_v24  ;;  %v3558_v59 = vsel %vm3544_vm14, %v3525_v28, %v5054_v39  ;;  %v3523_v39 = vsel %vm3511_vm13, %v8357_v30, %v4994_v44  ;;  %v3555_v28 = vsel %vm3544_vm14, %v3522_v15, %v5078_v18 }
 0x447   : > { %v3590_v46 = vsel %vm3577_vm15, %v3557_v21, %v5063_v1  ;;  %v3591_v26 = vsel %vm3577_vm15, %v3558_v59, %v5064_v55  ;;  %v3556_v55 = vsel %vm3544_vm14, %v3523_v39, %v5079_v41 }
 0x448   : > { %v3616_v35 = vpack.c.bf16 %v3591_v26, %v3590_v46 }
 0x44a   : > { %v5072_v42 = vpop.permute.xlu1 %5071  ;;  %v3650_v10 = vsel %vm3627_vm0, %v3616_v35, 0  ;;  %v5094_v35 = vunpack.i.h.bf16 %v5092_v51 }
 0x44b   : > { %v5067_v25 = vpop.permute.xlu0 %5066  ;;  %v5074_v8 = vunpack.i.h.bf16 %v5072_v42  ;;  %v5073_v49 = vunpack.i.l.bf16 %v5072_v42  ;;  %3680 = vmatpush.bf16.xpose.msra.mxu1 %v3650_v10  ;;  %v5122_v26 = vpop.permute.xlu2 %5121 }
 0x44c   : > { %v5069_v19 = vunpack.i.h.bf16 %v5067_v25  ;;  %v5068_v4 = vunpack.i.l.bf16 %v5067_v25  ;;  %v5123_v41 = vunpack.i.l.bf16 %v5122_v26 }
 0x44e   : > { %v3571_v29 = vsel %vm3544_vm14, %v3538_v56, %v5068_v4  ;;  %v3572_v9 = vsel %vm3544_vm14, %v3539_v40, %v5069_v19  ;;  %v5108_v19 = vunpack.i.l.bf16 %v5107_v27 }
 0x44f   : > { %v3604_v47 = vsel %vm3577_vm15, %v3571_v29, %v5073_v49  ;;  %v3605_v62 = vsel %vm3577_vm15, %v3572_v9, %v5074_v8  ;;  %v3535_v29 = vsel %vm3511_vm13, %v8409_v58, %v5109_v16 }
 0x450   : > { %v3623_v12 = vpack.c.bf16 %v3605_v62, %v3604_v47  ;;  %v3534_v40 = vsel %vm3511_vm13, %v8406_v5, %v5108_v19  ;;  %v5124_v62 = vunpack.i.h.bf16 %v5122_v26 }
 0x452   : > { %v5087_v7 = vpop.permute.xlu1 %5086  ;;  %v3671_v32 = vsel %vm3627_vm0, %v3623_v12, 0 }
 0x453   : > { %v5082_v34 = vpop.permute.xlu0 %5081  ;;  %v5089_v24 = vunpack.i.h.bf16 %v5087_v7  ;;  %v5088_v11 = vunpack.i.l.bf16 %v5087_v7  ;;  %3694 = vmatpush.bf16.xpose.msra.mxu2 %v3671_v32  ;;  %v5137_v9 = vpop.permute.xlu2 %5136 }
 0x454   : > { %v5084_v21 = vunpack.i.h.bf16 %v5082_v34  ;;  %v5083_v59 = vunpack.i.l.bf16 %v5082_v34 }
 0x455   : > { %v3588_v57 = vsel %vm3577_vm15, %v3555_v28, %v5088_v11  ;;  %v3589_v1 = vsel %vm3577_vm15, %v3556_v55, %v5089_v24 }
 0x456   : > { %v3615_v46 = vpack.c.bf16 %v3589_v1, %v3588_v57  ;;  %v3536_v30 = vsel %vm3511_vm13, %v8501_v52, %v5083_v59  ;;  %v3537_v6 = vsel %vm3511_vm13, %v8505_v17, %v5084_v21  ;;  %v5139_v21 = vunpack.i.h.bf16 %v5137_v9 }
 0x457   : > { %v3569_v25 = vsel %vm3544_vm14, %v3536_v30, %v5093_v53  ;;  %v3570_v8 = vsel %vm3544_vm14, %v3537_v6, %v5094_v35  ;;  %v5138_v59 = vunpack.i.l.bf16 %v5137_v9 }
 0x458   : > { %v3647_v14 = vsel %vm3627_vm0, %v3615_v46, 0 }
 0x459   : > { %3681 = vmatpush.bf16.xpose.msra.mxu1 %v3647_v14 }
 0x45a   : > { %v5102_v45 = vpop.permute.xlu1 %5101 }
 0x45b   : > { %v5097_v20 = vpop.permute.xlu0 %5096  ;;  %v5104_v4 = vunpack.i.h.bf16 %v5102_v45  ;;  %v5103_v56 = vunpack.i.l.bf16 %v5102_v45  ;;  %v5152_v46 = vpop.permute.xlu2 %5151 }
 0x45c   : > { %v5099_v42 = vunpack.i.h.bf16 %v5097_v20  ;;  %v5098_v10 = vunpack.i.l.bf16 %v5097_v20 }
 0x45d   : > { %v3553_v12 = vsel %vm3544_vm14, %v8476_v50, %v5103_v56  ;;  %v3554_v7 = vsel %vm3544_vm14, %v8479_v60, %v5104_v4 }
 0x45e   : > { %v3602_v49 = vsel %vm3577_vm15, %v3569_v25, %v5098_v10  ;;  %v3603_v54 = vsel %vm3577_vm15, %v3570_v8, %v5099_v42 }
 0x45f   : > { %v3622_v52 = vpack.c.bf16 %v3603_v54, %v3602_v49 }
 0x461   : > { %v3668_v17 = vsel %vm3627_vm0, %v3622_v52, 0 }
 0x462   : > { %3695 = vmatpush.bf16.xpose.msra.mxu2 %v3668_v17  ;;  %v5117_v51 = vpop.permute.xlu1 %5116  ;;  %v5154_v17 = vunpack.i.h.bf16 %v5152_v46 }
 0x463   : > { %v5112_v44 = vpop.permute.xlu0 %5111  ;;  %v5119_v3 = vunpack.i.h.bf16 %v5117_v51  ;;  %v5118_v47 = vunpack.i.l.bf16 %v5117_v51  ;;  %v5167_v52 = vpop.permute.xlu2 %5166  ;;  %v5153_v51 = vunpack.i.l.bf16 %v5152_v46 }
 0x464   : > { %v5114_v27 = vunpack.i.h.bf16 %v5112_v44  ;;  %v5113_v18 = vunpack.i.l.bf16 %v5112_v44 }
 0x465   : > { %v3567_v32 = vsel %vm3544_vm14, %v3534_v40, %v5118_v47  ;;  %v3568_v5 = vsel %vm3544_vm14, %v3535_v29, %v5119_v3  ;;  %v3550_v47 = vsel %vm3544_vm14, %v8541_v37, %v5154_v17 }
 0x466   : > { %v3586_v58 = vsel %vm3577_vm15, %v3553_v12, %v5113_v18  ;;  %v3587_v15 = vsel %vm3577_vm15, %v3554_v7, %v5114_v27  ;;  %v3600_v39 = vsel %vm3577_vm15, %v3567_v32, %v5123_v41  ;;  %v3601_v34 = vsel %vm3577_vm15, %v3568_v5, %v5124_v62  ;;  %v3705_v5 = vld [vmem:[%s8744_s5] sm:$0xff] }
 0x467   : > { %v3614_v24 = vpack.c.bf16 %v3587_v15, %v3586_v58  ;;  %v3621_v11 = vpack.c.bf16 %v3601_v34, %v3600_v39  ;;  %v5259_v39 = vmov 0   ;;  %v5169_v34 = vunpack.i.h.bf16 %v5167_v52 }
 0x468   : > { %5205 = vset.pattern.permute.xlu1 %v5259_v39  ;;  %5206 = vset.pattern.permute.xlu2 %v5259_v39 }
 0x469   : > { %v3644_v28 = vsel %vm3627_vm0, %v3614_v24, 0  ;;  %v3665_v50 = vsel %vm3627_vm0, %v3621_v11, 0  ;;  %v5168_v24 = vunpack.i.l.bf16 %v5167_v52  ;;  %3708 = vperm.xlu1 %5205, %v3705_v5   ;;  %5207 = vset.pattern.permute.xlu0 %v5259_v39 }
 0x46a   : > { %3682 = vmatpush.bf16.xpose.msra.mxu1 %v3644_v28  ;;  %v5132_v60 = vpop.permute.xlu1 %5131  ;;  %3696 = vmatpush.bf16.xpose.msra.mxu2 %v3665_v50 }
 0x46b   : > { %v5127_v55 = vpop.permute.xlu0 %5126  ;;  %v5134_v35 = vunpack.i.h.bf16 %v5132_v60  ;;  %v5133_v53 = vunpack.i.l.bf16 %v5132_v60  ;;  %v5182_v32 = vpop.permute.xlu2 %5181 }
 0x46c   : > { %v5129_v57 = vunpack.i.h.bf16 %v5127_v55  ;;  %v5128_v1 = vunpack.i.l.bf16 %v5127_v55  ;;  %v5184_v60 = vunpack.i.h.bf16 %v5182_v32  ;;  %v5183_v55 = vunpack.i.l.bf16 %v5182_v32 }
 0x46e   : > { %v3551_v14 = vsel %vm3544_vm14, %v8533_v61, %v5128_v1  ;;  %v3552_v26 = vsel %vm3544_vm14, %v8529_v48, %v5129_v57  ;;  %v3532_v61 = vsel %vm3511_vm13, %v8473_v36, %v5133_v53  ;;  %v3533_v48 = vsel %vm3511_vm13, %v8469_v38, %v5134_v35 }
 0x46f   : > { %v3584_v30 = vsel %vm3577_vm15, %v3551_v14, %v5138_v59  ;;  %v3585_v6 = vsel %vm3577_vm15, %v3552_v26, %v5139_v21  ;;  %v3549_v38 = vsel %vm3544_vm14, %v8537_v2, %v5153_v51  ;;  %v3713_v2 = vld [vmem:[%s8745_s6] sm:$0xff] }
 0x470   : > { %v3613_v45 = vpack.c.bf16 %v3585_v6, %v3584_v30  ;;  %3716 = vperm.xlu2 %5206, %v3713_v2  }
 0x472   : > { %v5147_v20 = vpop.permute.xlu1 %5146  ;;  %v3641_v42 = vsel %vm3627_vm0, %v3613_v45, 0 }
 0x473   : > { %v5142_v10 = vpop.permute.xlu0 %5141  ;;  %v5149_v25 = vunpack.i.h.bf16 %v5147_v20  ;;  %v5148_v8 = vunpack.i.l.bf16 %v5147_v20  ;;  %3683 = vmatpush.bf16.xpose.msra.mxu1 %v3641_v42 }
 0x474   : > { %v5144_v49 = vunpack.i.h.bf16 %v5142_v10  ;;  %v5143_v54 = vunpack.i.l.bf16 %v5142_v10 }
 0x476   : > { %v3565_v16 = vsel %vm3544_vm14, %v3532_v61, %v5143_v54  ;;  %v3566_v19 = vsel %vm3544_vm14, %v3533_v48, %v5144_v49 }
 0x477   : > { %v3598_v4 = vsel %vm3577_vm15, %v3565_v16, %v5148_v8  ;;  %v3599_v56 = vsel %vm3577_vm15, %v3566_v19, %v5149_v25  ;;  %v5197_v8 = vpop.permute.xlu2 %5196 }
 0x478   : > { %v3620_v40 = vpack.c.bf16 %v3599_v56, %v3598_v4  ;;  %v5199_v19 = vunpack.i.h.bf16 %v5197_v8  ;;  %v5198_v52 = vunpack.i.l.bf16 %v5197_v8 }
 0x47a   : > { %v5162_v29 = vpop.permute.xlu1 %5161  ;;  %v3662_v9 = vsel %vm3627_vm0, %v3620_v40, 0 }
 0x47b   : > { %v5157_v44 = vpop.permute.xlu0 %5156  ;;  %v5164_v36 = vunpack.i.h.bf16 %v5162_v29  ;;  %v5163_v3 = vunpack.i.l.bf16 %v5162_v29  ;;  %3697 = vmatpush.bf16.xpose.msra.mxu2 %v3662_v9 }
 0x47c   : > { %v5159_v27 = vunpack.i.h.bf16 %v5157_v44  ;;  %v5158_v18 = vunpack.i.l.bf16 %v5157_v44  ;;  %v3626_v44 = vld [vmem:[%s8743_s4] sm:$0xf] }
 0x47d   : > { %v3582_v62 = vsel %vm3577_vm15, %v3549_v38, %v5163_v3  ;;  %v3583_v41 = vsel %vm3577_vm15, %v3550_v47, %v5164_v36 }
 0x47e   : > { %v3612_v12 = vpack.c.bf16 %v3583_v41, %v3582_v62  ;;  %v3530_v37 = vsel %vm3511_vm13, %v8483_v63, %v5158_v18  ;;  %v3531_v58 = vsel %vm3511_vm13, %v8487_v33, %v5159_v27 }
 0x47f   : > { %v3563_v63 = vsel %vm3544_vm14, %v3530_v37, %v5168_v24  ;;  %v3564_v33 = vsel %vm3544_vm14, %v3531_v58, %v5169_v34 }
 0x480   : > { %v3638_v7 = vsel %vm3627_vm0, %v3612_v12, 0 }
 0x481   : > { %3684 = vmatpush.bf16.xpose.msra.mxu1 %v3638_v7 }
 0x482   : > { %v5177_v15 = vpop.permute.xlu1 %5176 }
 0x483   : > { %v5172_v11 = vpop.permute.xlu0 %5171  ;;  %v5179_v28 = vunpack.i.h.bf16 %v5177_v15  ;;  %v5178_v50 = vunpack.i.l.bf16 %v5177_v15 }
 0x484   : > { %v5174_v57 = vunpack.i.h.bf16 %v5172_v11  ;;  %v5173_v1 = vunpack.i.l.bf16 %v5172_v11 }
 0x485   : > { %v3547_v21 = vsel %vm3544_vm14, %v8448_v22, %v5178_v50  ;;  %v3548_v59 = vsel %vm3544_vm14, %v8451_v23, %v5179_v28 }
 0x486   : > { %v3596_v46 = vsel %vm3577_vm15, %v3563_v63, %v5173_v1  ;;  %v3597_v14 = vsel %vm3577_vm15, %v3564_v33, %v5174_v57  ;;  %v3580_v26 = vsel %vm3577_vm15, %v3547_v21, %v5183_v55  ;;  %v3581_v30 = vsel %vm3577_vm15, %v3548_v59, %v5184_v60 }
 0x487   : > { %v3619_v6 = vpack.c.bf16 %v3597_v14, %v3596_v46  ;;  %v3611_v45 = vpack.c.bf16 %v3581_v30, %v3580_v26 }
 0x489   : > { %v3659_v35 = vsel %vm3627_vm0, %v3619_v6, 0  ;;  %v3635_v53 = vsel %vm3627_vm0, %v3611_v45, 0 }
 0x48a   : > { %3698 = vmatpush.bf16.xpose.msra.mxu2 %v3659_v35  ;;  %v5192_v20 = vpop.permute.xlu1 %5191  ;;  %3685 = vmatpush.bf16.xpose.msra.mxu1 %v3635_v53 }
 0x48b   : > { %v5187_v22 = vpop.permute.xlu0 %5186  ;;  %v5194_v42 = vunpack.i.h.bf16 %v5192_v20  ;;  %v5193_v23 = vunpack.i.l.bf16 %v5192_v20 }
 0x48c   : > { %v5189_v10 = vunpack.i.h.bf16 %v5187_v22  ;;  %v5188_v25 = vunpack.i.l.bf16 %v5187_v22 }
 0x48e   : > { %v3561_v49 = vsel %vm3544_vm14, %v8553_v0, %v5188_v25  ;;  %v3562_v54 = vsel %vm3544_vm14, %v8557_v13, %v5189_v10  ;;  %v3545_v0 = vsel %vm3544_vm14, %v8519_v31, %v5198_v52  ;;  %v3546_v13 = vsel %vm3544_vm14, %v8515_v43, %v5199_v19 }
 0x48f   : > { %v3594_v61 = vsel %vm3577_vm15, %v3561_v49, %v5193_v23  ;;  %v3595_v48 = vsel %vm3577_vm15, %v3562_v54, %v5194_v42 }
 0x490   : > { %v3618_v16 = vpack.c.bf16 %v3595_v48, %v3594_v61 }
 0x492   : > { %v3656_v4 = vsel %vm3627_vm0, %v3618_v16, 0 }
 0x493   : > { %v5202_v56 = vpop.permute.xlu0 %5201  ;;  %3699 = vmatpush.bf16.xpose.msra.mxu2 %v3656_v4 }
 0x494   : > { %v5204_v17 = vunpack.i.h.bf16 %v5202_v56  ;;  %v5203_v51 = vunpack.i.l.bf16 %v5202_v56 }
 0x496   : > { %v3578_v40 = vsel %vm3577_vm15, %v3545_v0, %v5203_v51  ;;  %v3579_v29 = vsel %vm3577_vm15, %v3546_v13, %v5204_v17 }
 0x497   : > { %v3610_v9 = vpack.c.bf16 %v3579_v29, %v3578_v40 }
 0x499   : > { %v3632_v36 = vsel %vm3627_vm0, %v3610_v9, 0 }
 0x49a   : > { %3686 = vmatpush.bf16.xpose.msra.mxu1 %v3632_v36  ;;  %3814 = vmatmul.msk.bf16.vlgmr.msra.gmra.mxu2 %vm3627_vm0, %v3626_v44 }
 0x4a1   : > { %3813 = vmatmul.msk.bf16.vlgmr.msra.gmra.mxu1 %vm3627_vm0, %v3626_v44 }
 0x4ca   : > { %v3717_v38 = vpop.permute.xlu2 %3716 }
 0x4db   : > { %v3709_v31 = vpop.permute.xlu1 %3708 }
 0x51d   : > { %v3701_v3 = vpop.f32.mrf.mxu2 }
 0x51e   : > { %v3712_v43 = vmul.f32 %v3709_v31, %v3701_v3  ;;  %v3688_v47 = vpop.f32.mrf.mxu1 }
 0x51f   : > { %v3711_v62 = vmul.f32 %v3709_v31, %v3688_v47 }
 0x520   : > { %v3720_v41 = vadd.f32 %v3717_v38, %v3712_v43 }
 0x521   : > { %v3719_v27 = vadd.f32 %v3717_v38, %v3711_v62 }
 0x522   : > { %v3722_v18 = vmax.f32 %v3720_v41, 0.0 }
 0x523   : > { %v3721_v12 = vmax.f32 %v3719_v27, 0.0 }
 0x524   : > { %3724 = vst [vmem:[%s278_s17 + $0x8] sm:$0xff] %v3722_v18 }
 0x525   : > { %3723 = vst [vmem:[%s278_s17] sm:$0xff] %v3721_v12  ;;  %v3703_v7 = vpop.f32.mrf.mxu2 }
 0x526   : > { %v3690_v32 = vpop.f32.mrf.mxu1 }
 0x527 PF: > { %s17_s24 = sadd.s32 1, %s5244_s24  }
 0x528   : > { %p14_p4 = scmp.ge.s32.totalorder %s17_s24, 4  }
 0x52a   :  { %16 = sbr.rel (!%p14_p4) target bundleno = 1 (0x1), region = 80 }

</bundles_post_ra>
